<compile_context>
chip_gen: v5e
topology: v5e:2x2
jax: 0.10.0
libtpu: 0.0.40
codegen_flags: <defaults>
</compile_context>

<pallas_src>
import functools

import jax
import jax.numpy as jnp
from jax.experimental import pallas as pl
from jax.experimental.pallas import tpu as pltpu

LANE = 128  # TPU lane width


def _round_up(n, m):
    return (n + m - 1) // m * m


# ---------------------------------------------------------------------------
# Kernel body: one grid step processes a (tb, input_dim) slab of the batch.
#   h = sigmoid(x @ W1 + b1)        bf16 MXU inputs, f32 accumulate
#   z = h @ W2 + b2                 class axis pre-padded to 128 lanes
#   o = z - logsumexp(z)            log_softmax in f32
# ---------------------------------------------------------------------------
def _mlp_kernel(x_ref, w1_ref, b1_ref, w2_ref, b2_ref, o_ref, *scratch):
    x_bf = x_ref[...].astype(jnp.bfloat16)  # no-op if the caller supplies bf16 x
    h = jnp.dot(x_bf, w1_ref[...], preferred_element_type=jnp.float32)
    h = jax.nn.sigmoid(h + b1_ref[...])     # f32 VPU/EUP work, hidden under MXU

    if scratch:
        # tb >= 256: a bf16 (tb, hidden) slab would exceed the 64-vreg file,
        # so bound it in an explicit VMEM scratch buffer instead of spilling.
        h_ref, = scratch
        h_ref[...] = h.astype(jnp.bfloat16)
        h_bf = h_ref[...]
    else:
        # tb <= 128: (tb, hidden) bf16 fits the register file -> feed the
        # second matmul directly (no vst->vld serialization).
        h_bf = h.astype(jnp.bfloat16)

    z = jnp.dot(h_bf, w2_ref[...], preferred_element_type=jnp.float32)
    z = z + b2_ref[...]                     # padded classes get ~ -1e30

    m = jnp.max(z, axis=-1, keepdims=True)
    zs = z - m
    lse = jnp.log(jnp.sum(jnp.exp(zs), axis=-1, keepdims=True))
    o_ref[...] = (zs - lse).astype(o_ref.dtype)


# ---------------------------------------------------------------------------
# One-time (init-time) weight prep, hoisted OUT of the forward path:
#   * pad the class axis to a lane-dense 128 (zero W2 columns, -1e30 bias so
#     the padded logits vanish in both the max and the exp of the logsumexp),
#   * cast W1 / W2 to bf16 (full MXU rate, half the weight HBM traffic).
# ---------------------------------------------------------------------------
def prepare_params(w1, b1, w2, b2):
    hidden, n_classes = w2.shape
    n_pad = _round_up(max(n_classes, LANE), LANE)
    w2p = jnp.zeros((hidden, n_pad), jnp.float32).at[:, :n_classes].set(w2)
    b2p = jnp.full((1, n_pad), -1e30, jnp.float32).at[:, :n_classes].set(
        b2.reshape(1, -1))
    return (w1.astype(jnp.bfloat16),
            b1.reshape(1, -1).astype(jnp.float32),
            w2p.astype(jnp.bfloat16),
            b2p,
            n_classes)


def _pick_tb(batch):
    # Fill the 256-wide MXU on v6e/v7x and amortize per-step overhead, while
    # keeping >= 2 grid steps (pipelining / 2-TC split) whenever batch allows.
    if batch >= 4096:
        return 512
    if batch >= 512:
        return 256
    return min(128, _round_up(batch, 8))


def neural_net_forward(x, w1_bf, b1, w2_bf, b2, *, n_classes=10, tb=None,
                       out_dtype=jnp.float32):
    batch, input_dim = x.shape
    hidden = w1_bf.shape[1]
    n_pad = w2_bf.shape[1]

    if tb is None:
        tb = _pick_tb(batch)
    tb = min(tb, _round_up(batch, 8))

    batch_p = _round_up(batch, tb)
    if batch_p != batch:
        x = jnp.pad(x, ((0, batch_p - batch), (0, 0)))

    # bf16 hidden slab goes to VMEM scratch only when it would not fit
    # (half of) the 64 x 4 KiB vreg file.
    use_scratch = (tb * hidden * 2) > (128 * 1024)

    grid = (batch_p // tb,)
    out = pl.pallas_call(
        _mlp_kernel,
        out_shape=jax.ShapeDtypeStruct((batch_p, n_pad), out_dtype),
        grid=grid,
        in_specs=[
            pl.BlockSpec((tb, input_dim), lambda i: (i, 0)),      # x tile (streamed)
            pl.BlockSpec((input_dim, hidden), lambda i: (0, 0)),  # W1 (invariant)
            pl.BlockSpec((1, hidden), lambda i: (0, 0)),          # b1 (invariant)
            pl.BlockSpec((hidden, n_pad), lambda i: (0, 0)),      # W2 (invariant)
            pl.BlockSpec((1, n_pad), lambda i: (0, 0)),           # b2 (invariant)
        ],
        out_specs=pl.BlockSpec((tb, n_pad), lambda i: (i, 0)),
        scratch_shapes=(
            [pltpu.VMEM((tb, hidden), jnp.bfloat16)] if use_scratch else []
        ),
        compiler_params=pltpu.CompilerParams(
            dimension_semantics=("parallel",),   # batch split over both TCs (v7x)
        ),
    )(x, w1_bf, b1, w2_bf, b2)

    # Drop batch/class padding (fuses into the consumer under jit).
    return out[:batch, :n_classes]


def init_params(key, input_dim, size, n_classes=10):
    # Mimics nn.Linear's uniform(-1/sqrt(fan_in), 1/sqrt(fan_in)) init.
    k1, k2, k3, k4 = jax.random.split(key, 4)
    lim1 = 1.0 / jnp.sqrt(jnp.float32(input_dim))
    lim2 = 1.0 / jnp.sqrt(jnp.float32(size))
    w1 = jax.random.uniform(k1, (input_dim, size), jnp.float32, -lim1, lim1)
    b1 = jax.random.uniform(k2, (1, size), jnp.float32, -lim1, lim1)
    w2 = jax.random.uniform(k3, (size, n_classes), jnp.float32, -lim2, lim2)
    b2 = jax.random.uniform(k4, (1, n_classes), jnp.float32, -lim2, lim2)
    return w1, b1, w2, b2


def reference_forward(x, w1, b1, w2, b2):
    # Pure-f32 reference matching the PyTorch module's semantics.
    h = jax.nn.sigmoid(x @ w1 + b1)
    z = h @ w2 + b2
    return jax.nn.log_softmax(z, axis=1)


if __name__ == "__main__":
    input_dim, hidden, n_classes = 28 * 28, 512, 10

    key = jax.random.PRNGKey(0)
    kx1, kx2, kp = jax.random.split(key, 3)
    w1, b1, w2, b2 = init_params(kp, input_dim, hidden, n_classes)

    # One-time weight prep (pad + bf16) -- NOT part of the per-call forward path.
    w1_bf, b1_f, w2p_bf, b2p, nc = prepare_params(w1, b1, w2, b2)

    fwd = jax.jit(functools.partial(neural_net_forward, n_classes=nc))

    # (a) batch=500: tb=128 path, no VMEM scratch, batch padded 500->512, 4 steps.
    # (b) batch=1024: tb=256 path (fills the 256-wide MXU), VMEM scratch for the
    #     hidden slab, 4 grid steps (2 per TensorCore on v7x).
    for batch, kx in ((500, kx1), (1024, kx2)):
        x = jax.random.normal(kx, (batch, input_dim), jnp.float32)
        out = jax.block_until_ready(fwd(x, w1_bf, b1_f, w2p_bf, b2p))
        ref = reference_forward(x, w1, b1, w2, b2)
        assert out.shape == (batch, n_classes)
        # bf16 matmul inputs (f32 accumulation) => relaxed tolerance vs f32 ref.
        assert jnp.allclose(out, ref, atol=3e-2, rtol=3e-2), \
            f"mismatch vs JAX reference at batch={batch}"

    print("KERNEL_OK")
</pallas_src>

<mosaic_0001>
module attributes {stable_mosaic.version = 11 : i64} {
  func.func @_mlp_kernel(%arg0: i32, %arg1: memref<128x784xf32, #tpu.memory_space<vmem>>, %arg2: memref<784x512xbf16, #tpu.memory_space<vmem>>, %arg3: memref<1x512xf32, #tpu.memory_space<vmem>>, %arg4: memref<512x128xbf16, #tpu.memory_space<vmem>>, %arg5: memref<1x128xf32, #tpu.memory_space<vmem>>, %arg6: memref<128x128xf32, #tpu.memory_space<vmem>>) attributes {dimension_semantics = [#tpu.dimension_semantics<parallel>], iteration_bounds = array<i64: 4>, scalar_prefetch = 0 : i64, scratch_operands = 0 : i64, tpu.core_type = #tpu.core_type<tc>, window_params = [{transform_indices = @transform_0, window_bounds = array<i64: 128, 784>}, {pipeline_mode = #tpu.pipeline_mode<synchronous>, transform_indices = @transform_1, window_bounds = array<i64: 784, 512>}, {pipeline_mode = #tpu.pipeline_mode<synchronous>, transform_indices = @transform_2, window_bounds = array<i64: 1, 512>}, {pipeline_mode = #tpu.pipeline_mode<synchronous>, transform_indices = @transform_3, window_bounds = array<i64: 512, 128>}, {pipeline_mode = #tpu.pipeline_mode<synchronous>, transform_indices = @transform_4, window_bounds = array<i64: 1, 128>}, {transform_indices = @transform_5, window_bounds = array<i64: 128, 128>}]} {
    %c0 = arith.constant 0 : index
    %c0_0 = arith.constant 0 : index
    %0 = vector.load %arg1[%c0, %c0_0] : memref<128x784xf32, #tpu.memory_space<vmem>>, vector<128x784xf32>
    %1 = arith.truncf %0 : vector<128x784xf32> to vector<128x784xbf16>
    %c0_1 = arith.constant 0 : index
    %c0_2 = arith.constant 0 : index
    %2 = vector.load %arg2[%c0_1, %c0_2] : memref<784x512xbf16, #tpu.memory_space<vmem>>, vector<784x512xbf16>
    %cst = arith.constant dense<0.000000e+00> : vector<128x512xf32>
    %3 = tpu.matmul %1, %2, %cst {dimension_numbers = #tpu.dot_dimension_numbers<[1], [0], [0], [1], [0, 0, 1, 1], [], []>} : vector<128x784xbf16>, vector<784x512xbf16>, vector<128x512xf32> -> vector<128x512xf32>
    %c0_3 = arith.constant 0 : index
    %c0_4 = arith.constant 0 : index
    %4 = vector.load %arg3[%c0_3, %c0_4] : memref<1x512xf32, #tpu.memory_space<vmem>>, vector<1x512xf32>
    %5 = vector.broadcast %4 : vector<1x512xf32> to vector<128x512xf32>
    %6 = arith.addf %3, %5 : vector<128x512xf32>
    %7 = arith.negf %6 : vector<128x512xf32>
    %8 = math.exp %7 : vector<128x512xf32>
    %cst_5 = arith.constant 1.000000e+00 : f32
    %9 = vector.broadcast %cst_5 : f32 to vector<128x512xf32>
    %10 = arith.addf %9, %8 : vector<128x512xf32>
    %11 = arith.divf %9, %10 : vector<128x512xf32>
    %12 = arith.truncf %11 : vector<128x512xf32> to vector<128x512xbf16>
    %c0_6 = arith.constant 0 : index
    %c0_7 = arith.constant 0 : index
    %13 = vector.load %arg4[%c0_6, %c0_7] : memref<512x128xbf16, #tpu.memory_space<vmem>>, vector<512x128xbf16>
    %cst_8 = arith.constant dense<0.000000e+00> : vector<128x128xf32>
    %14 = tpu.matmul %12, %13, %cst_8 {dimension_numbers = #tpu.dot_dimension_numbers<[1], [0], [0], [1], [0, 0, 1, 1], [], []>} : vector<128x512xbf16>, vector<512x128xbf16>, vector<128x128xf32> -> vector<128x128xf32>
    %c0_9 = arith.constant 0 : index
    %c0_10 = arith.constant 0 : index
    %15 = vector.load %arg5[%c0_9, %c0_10] : memref<1x128xf32, #tpu.memory_space<vmem>>, vector<1x128xf32>
    %16 = vector.broadcast %15 : vector<1x128xf32> to vector<128x128xf32>
    %17 = arith.addf %14, %16 : vector<128x128xf32>
    %cst_11 = arith.constant dense<0xFF800000> : vector<128xf32>
    %18 = vector.multi_reduction <maximumf>, %17, %cst_11 [1] : vector<128x128xf32> to vector<128xf32>
    %19 = vector.shape_cast %18 : vector<128xf32> to vector<128x1xf32>
    %20 = vector.broadcast %19 : vector<128x1xf32> to vector<128x128xf32>
    %21 = arith.subf %17, %20 : vector<128x128xf32>
    %22 = math.exp %21 : vector<128x128xf32>
    %cst_12 = arith.constant dense<0.000000e+00> : vector<128xf32>
    %23 = vector.multi_reduction <add>, %22, %cst_12 [1] : vector<128x128xf32> to vector<128xf32>
    %24 = vector.shape_cast %23 : vector<128xf32> to vector<128x1xf32>
    %25 = math.log %24 : vector<128x1xf32>
    %26 = vector.broadcast %25 : vector<128x1xf32> to vector<128x128xf32>
    %27 = arith.subf %21, %26 : vector<128x128xf32>
    %c0_13 = arith.constant 0 : index
    %c0_14 = arith.constant 0 : index
    %28 = vector.load %arg6[%c0_13, %c0_14] : memref<128x128xf32, #tpu.memory_space<vmem>>, vector<128x128xf32>
    tpu.vector_store %arg6[%c0_13, %c0_14], %27 {strides = array<i32>} : memref<128x128xf32, #tpu.memory_space<vmem>>, vector<128x128xf32>,
    return
  }
  func.func @transform_0(%arg0: i32) -> (i32, i32) {
    %c0_i32 = arith.constant 0 : i32
    %c0_i32_0 = arith.constant 0 : i32
    return %arg0, %c0_i32 : i32, i32
  }
  func.func @transform_1(%arg0: i32) -> (i32, i32) {
    %c0_i32 = arith.constant 0 : i32
    %c0_i32_0 = arith.constant 0 : i32
    %c0_i32_1 = arith.constant 0 : i32
    return %c0_i32, %c0_i32_0 : i32, i32
  }
  func.func @transform_2(%arg0: i32) -> (i32, i32) {
    %c0_i32 = arith.constant 0 : i32
    %c0_i32_0 = arith.constant 0 : i32
    %c0_i32_1 = arith.constant 0 : i32
    return %c0_i32, %c0_i32_0 : i32, i32
  }
  func.func @transform_3(%arg0: i32) -> (i32, i32) {
    %c0_i32 = arith.constant 0 : i32
    %c0_i32_0 = arith.constant 0 : i32
    %c0_i32_1 = arith.constant 0 : i32
    return %c0_i32, %c0_i32_0 : i32, i32
  }
  func.func @transform_4(%arg0: i32) -> (i32, i32) {
    %c0_i32 = arith.constant 0 : i32
    %c0_i32_0 = arith.constant 0 : i32
    %c0_i32_1 = arith.constant 0 : i32
    return %c0_i32, %c0_i32_0 : i32, i32
  }
  func.func @transform_5(%arg0: i32) -> (i32, i32) {
    %c0_i32 = arith.constant 0 : i32
    %c0_i32_0 = arith.constant 0 : i32
    return %arg0, %c0_i32 : i32, i32
  }
}

</mosaic_0001>

<bundles_post_ra>
// kernel: neural_net_forward.1
= control target key start
LH: loop header
LB: loop body
LE: loop exit
PB: predicated region body
PF: predicated region fallthrough
CT: control target
= control target key end

     0   :  { %s6536_s18 = smov 0   ;;  %s10129_s0 = inlined_call_operand.vmem [shape: f32[512,784], index: 0, kind: input, shape index: {}]   ;;  %s10130_s1 = inlined_call_operand.vmem [shape: bf16[784,512], index: 1, kind: input, shape index: {}]   ;;  %s10131_s2 = inlined_call_operand.vmem [shape: f32[1,512], index: 2, kind: input, shape index: {}]   ;;  %s10132_s3 = inlined_call_operand.vmem [shape: bf16[512,128], index: 3, kind: input, shape index: {}]   ;;  %s10133_s4 = inlined_call_operand.vmem [shape: f32[1,128], index: 4, kind: input, shape index: {}]   ;;  %s10134_s5 = inlined_call_operand.vmem [shape: f32[512,128], index: 5, kind: output, shape index: {}]  }
   0x1 LB: > { %s4919_s19 = sadd.s32 4294967295, %s6504_s18   ;;  %p4923_p0 = scmp.ge.s32.totalorder %s6504_s18, 1  ;;  %s6504_s18 = sphi %s6536_s18, %s15_s18  }
   0x2   : > { %p189_p1 = scmp.lt.s32.totalorder %s6504_s18, 5 }
   0x4   : > { %p190_p2 = pnand %p4923_p0, %p189_p1 }
   0x6   : > { %193 = sbr.rel (%p190_p2) target bundleno = 1501 (0x5dd), region = 40 }
   0xb   : > { %v5042_v0 = vld [vmem:[%s10130_s1 + $0xe0] sm:$0xf]  ;;  %v5968_v1 = vld [vmem:[%s10130_s1 + $0xec] sm:$0xf0]  ;;  %s4924_s11 = sshll.u32 %s4919_s19, 4  ;;  %vm1586_vm0 = vcmask 130048  }
   0xc   : > { %v5170_v2 = vld [vmem:[%s10130_s1 + $0x1e0] sm:$0xf]  ;;  %v5043_v3 = vor.u32 %v5968_v1, %v5042_v0  ;;  %v6000_v4 = vld [vmem:[%s10130_s1 + $0x1ec] sm:$0xf0]  ;;  %p219_p3 = scmp.lt.s32.totalorder %s4924_s11, 63 }
   0xd   : > { %v5298_v5 = vld [vmem:[%s10130_s1 + $0x2e0] sm:$0xf]  ;;  %v6032_v6 = vld [vmem:[%s10130_s1 + $0x2ec] sm:$0xf0]  ;;  %v5171_v7 = vor.u32 %v6000_v4, %v5170_v2 }
   0xe   : > { %v5299_v8 = vor.u32 %v6032_v6, %v5298_v5  ;;  %v5426_v9 = vld [vmem:[%s10130_s1 + $0x3e0] sm:$0xf]  ;;  %v6064_v10 = vld [vmem:[%s10130_s1 + $0x3ec] sm:$0xf0]  ;;  %1611 = vmatpush.bf16.msra.mxu0 %v5043_v3  ;;  %s10553_s11 = smov (!%p219_p3, %s4924_s11), 63 }
   0xf   : > { %v5026_v11 = vld [vmem:[%s10130_s1 + $0xc0] sm:$0xf]  ;;  %v5427_v12 = vor.u32 %v6064_v10, %v5426_v9  ;;  %v5964_v13 = vld [vmem:[%s10130_s1 + $0xcc] sm:$0xf0]  ;;  %1660 = vmatpush.bf16.msra.mxu1 %v5171_v7  ;;  %s6166_s8 = smul.u32 56, %s10553_s11  ;;  %s4927_s14 = sshll.u32 %s10553_s11, 3 }
  0x10   : > { %v5154_v14 = vld [vmem:[%s10130_s1 + $0x1c0] sm:$0xf]  ;;  %v5996_v15 = vld [vmem:[%s10130_s1 + $0x1cc] sm:$0xf0]  ;;  %1709 = vmatpush.bf16.msra.mxu2 %v5299_v8  ;;  %v5027_v16 = vor.u32 %v5964_v13, %v5026_v11  ;;  %s10092_s17 = scalar_lea.vmem %s10134_s5, %s4927_s14 }
  0x11   : > { %v5155_v17 = vor.u32 %v5996_v15, %v5154_v14  ;;  %v5282_v18 = vld [vmem:[%s10130_s1 + $0x2c0] sm:$0xf]  ;;  %v6028_v19 = vld [vmem:[%s10130_s1 + $0x2cc] sm:$0xf0]  ;;  %1758 = vmatpush.bf16.msra.mxu3 %v5427_v12  ;;  %s6759_s23 = scalar_lea.vmem %s10129_s0, %s6166_s8 }
  0x12   : > { %v5410_v20 = vld [vmem:[%s10130_s1 + $0x3c0] sm:$0xf]  ;;  %v5283_v21 = vor.u32 %v6028_v19, %v5282_v18  ;;  %v6060_v22 = vld [vmem:[%s10130_s1 + $0x3cc] sm:$0xf0]  ;;  %1612 = vmatpush.bf16.msra.mxu0 %v5027_v16 }
  0x13   : > { %v5010_v23 = vld [vmem:[%s10130_s1 + $0xa0] sm:$0xf]  ;;  %v5960_v24 = vld [vmem:[%s10130_s1 + $0xac] sm:$0xf0]  ;;  %v5411_v25 = vor.u32 %v6060_v22, %v5410_v20  ;;  %1661 = vmatpush.bf16.msra.mxu1 %v5155_v17 }
  0x14   : > { %v5138_v26 = vld [vmem:[%s10130_s1 + $0x1a0] sm:$0xf]  ;;  %v5992_v27 = vld [vmem:[%s10130_s1 + $0x1ac] sm:$0xf0]  ;;  %v5011_v29 = vor.u32 %v5960_v24, %v5010_v23  ;;  %1710 = vmatpush.bf16.msra.mxu2 %v5283_v21 }
  0x15   : > { %v5266_v28 = vld [vmem:[%s10130_s1 + $0x2a0] sm:$0xf]  ;;  %v6024_v30 = vld [vmem:[%s10130_s1 + $0x2ac] sm:$0xf0]  ;;  %v5139_v33 = vor.u32 %v5992_v27, %v5138_v26  ;;  %1759 = vmatpush.bf16.msra.mxu3 %v5411_v25 }
  0x16   : > { %v5394_v31 = vld [vmem:[%s10130_s1 + $0x3a0] sm:$0xf]  ;;  %v6056_v32 = vld [vmem:[%s10130_s1 + $0x3ac] sm:$0xf0]  ;;  %v5267_v34 = vor.u32 %v6024_v30, %v5266_v28  ;;  %1613 = vmatpush.bf16.msra.mxu0 %v5011_v29 }
  0x17   : > { %v4994_v35 = vld [vmem:[%s10130_s1 + $0x80] sm:$0xf]  ;;  %v5956_v36 = vld [vmem:[%s10130_s1 + $0x8c] sm:$0xf0]  ;;  %v5395_v38 = vor.u32 %v6056_v32, %v5394_v31  ;;  %1662 = vmatpush.bf16.msra.mxu1 %v5139_v33  ;;  %v5966_v32 = vld [vmem:[%s10130_s1 + $0xe4] sm:$0xf] }
  0x18   : > { %v5122_v37 = vld [vmem:[%s10130_s1 + $0x180] sm:$0xf]  ;;  %v5988_v39 = vld [vmem:[%s10130_s1 + $0x18c] sm:$0xf0]  ;;  %v4995_v44 = vor.u32 %v5956_v36, %v4994_v35  ;;  %1711 = vmatpush.bf16.msra.mxu2 %v5267_v34  ;;  %v5044_v33 = vld [vmem:[%s10130_s1 + $0xf0] sm:$0xf0] }
  0x19   : > { %v5250_v40 = vld [vmem:[%s10130_s1 + $0x280] sm:$0xf]  ;;  %v6020_v41 = vld [vmem:[%s10130_s1 + $0x28c] sm:$0xf0]  ;;  %v5123_v45 = vor.u32 %v5988_v39, %v5122_v37  ;;  %1760 = vmatpush.bf16.msra.mxu3 %v5395_v38 }
  0x1a   : > { %v5378_v42 = vld [vmem:[%s10130_s1 + $0x380] sm:$0xf]  ;;  %v6052_v43 = vld [vmem:[%s10130_s1 + $0x38c] sm:$0xf0]  ;;  %v5251_v46 = vor.u32 %v6020_v41, %v5250_v40  ;;  %1614 = vmatpush.bf16.msra.mxu0 %v4995_v44  ;;  %v239_v41 = vld [vmem:[%s6759_s23 + $0x38] sm:$0xff] }
  0x1b   : > { %v4978_v47 = vld [vmem:[%s10130_s1 + $0x60] sm:$0xf]  ;;  %v5952_v48 = vld [vmem:[%s10130_s1 + $0x6c] sm:$0xf0]  ;;  %v5379_v50 = vor.u32 %v6052_v43, %v5378_v42  ;;  %1663 = vmatpush.bf16.msra.mxu1 %v5123_v45  ;;  %v233_v42 = vld [vmem:[%s6759_s23 + $0x8] sm:$0xff] }
  0x1c   : > { %v5106_v49 = vld [vmem:[%s10130_s1 + $0x160] sm:$0xf]  ;;  %v5984_v51 = vld [vmem:[%s10130_s1 + $0x16c] sm:$0xf0]  ;;  %v4979_v56 = vor.u32 %v5952_v48, %v4978_v47  ;;  %1712 = vmatpush.bf16.msra.mxu2 %v5251_v46  ;;  %v5962_v44 = vld [vmem:[%s10130_s1 + $0xc4] sm:$0xf] }
  0x1d   : > { %v5234_v52 = vld [vmem:[%s10130_s1 + $0x260] sm:$0xf]  ;;  %v6016_v53 = vld [vmem:[%s10130_s1 + $0x26c] sm:$0xf0]  ;;  %v5107_v57 = vor.u32 %v5984_v51, %v5106_v49  ;;  %1761 = vmatpush.bf16.msra.mxu3 %v5379_v50  ;;  %v241_v48 = vld [vmem:[%s6759_s23 + $0x48] sm:$0xff]  ;;  %v5047_v49 = vor.u32 %v5966_v32, %v5044_v33 }
  0x1e   : > { %v5362_v54 = vld [vmem:[%s10130_s1 + $0x360] sm:$0xf]  ;;  %v6048_v55 = vld [vmem:[%s10130_s1 + $0x36c] sm:$0xf0]  ;;  %v5235_v58 = vor.u32 %v6016_v53, %v5234_v52  ;;  %1615 = vmatpush.bf16.msra.mxu0 %v4979_v56  ;;  %v235_v52 = vld [vmem:[%s6759_s23 + $0x18] sm:$0xff] }
  0x1f   : > { %v4962_v59 = vld [vmem:[%s10130_s1 + $0x40] sm:$0xf]  ;;  %v5948_v60 = vld [vmem:[%s10130_s1 + $0x4c] sm:$0xf0]  ;;  %v5363_v62 = vor.u32 %v6048_v55, %v5362_v54  ;;  %1664 = vmatpush.bf16.msra.mxu1 %v5107_v57  ;;  %v5028_v54 = vld [vmem:[%s10130_s1 + $0xd0] sm:$0xf0] }
  0x20   : > { %v5090_v61 = vld [vmem:[%s10130_s1 + $0x140] sm:$0xf]  ;;  %v5980_v63 = vld [vmem:[%s10130_s1 + $0x14c] sm:$0xf0]  ;;  %v4963_v4 = vor.u32 %v5948_v60, %v4962_v59  ;;  %1713 = vmatpush.bf16.msra.mxu2 %v5235_v58  ;;  %v5031_v60 = vor.u32 %v5962_v44, %v5028_v54  ;;  %v267_v32 = vld [vmem:[%s6759_s23 + $0x118] sm:$0xff] }
  0x21   : > { %v5218_v0 = vld [vmem:[%s10130_s1 + $0x240] sm:$0xf]  ;;  %v6012_v1 = vld [vmem:[%s10130_s1 + $0x24c] sm:$0xf0]  ;;  %v5091_v6 = vor.u32 %v5980_v63, %v5090_v61  ;;  %1762 = vmatpush.bf16.msra.mxu3 %v5363_v62  ;;  %v261_v33 = vld [vmem:[%s6759_s23 + $0xe8] sm:$0xff] }
  0x22   : > { %v5346_v2 = vld [vmem:[%s10130_s1 + $0x340] sm:$0xf]  ;;  %v6044_v3 = vld [vmem:[%s10130_s1 + $0x34c] sm:$0xf0]  ;;  %v5219_v7 = vor.u32 %v6012_v1, %v5218_v0  ;;  %1616 = vmatpush.bf16.msra.mxu0 %v4963_v4  ;;  %v5012_v4 = vld [vmem:[%s10130_s1 + $0xb0] sm:$0xf0] }
  0x23   : > { %v4946_v5 = vld [vmem:[%s10130_s1 + $0x20] sm:$0xf]  ;;  %v5944_v8 = vld [vmem:[%s10130_s1 + $0x2c] sm:$0xf0]  ;;  %v5347_v11 = vor.u32 %v6044_v3, %v5346_v2  ;;  %1665 = vmatpush.bf16.msra.mxu1 %v5091_v6  ;;  %v5958_v3 = vld [vmem:[%s10130_s1 + $0xa4] sm:$0xf] }
  0x24   : > { %v5074_v9 = vld [vmem:[%s10130_s1 + $0x120] sm:$0xf]  ;;  %v5976_v10 = vld [vmem:[%s10130_s1 + $0x12c] sm:$0xf0]  ;;  %v4947_v16 = vor.u32 %v5944_v8, %v4946_v5  ;;  %1714 = vmatpush.bf16.msra.mxu2 %v5219_v7  ;;  %v5015_v7 = vor.u32 %v5958_v3, %v5012_v4 }
  0x25   : > { %v5202_v12 = vld [vmem:[%s10130_s1 + $0x220] sm:$0xf]  ;;  %v6008_v13 = vld [vmem:[%s10130_s1 + $0x22c] sm:$0xf0]  ;;  %v5075_v20 = vor.u32 %v5976_v10, %v5074_v9  ;;  %1763 = vmatpush.bf16.msra.mxu3 %v5347_v11  ;;  %v253_v11 = vld [vmem:[%s6759_s23 + $0xa8] sm:$0xff] }
  0x26   : > { %v5330_v14 = vld [vmem:[%s10130_s1 + $0x320] sm:$0xf]  ;;  %v6040_v15 = vld [vmem:[%s10130_s1 + $0x32c] sm:$0xf0]  ;;  %v5203_v21 = vor.u32 %v6008_v13, %v5202_v12  ;;  %1617 = vmatpush.bf16.msra.mxu0 %v4947_v16  ;;  %v247_v12 = vld [vmem:[%s6759_s23 + $0x78] sm:$0xff] }
  0x27   : > { %v4930_v17 = vld [vmem:[%s10130_s1] sm:$0xf]  ;;  %v5940_v18 = vld [vmem:[%s10130_s1 + $0xc] sm:$0xf0]  ;;  %v5331_v24 = vor.u32 %v6040_v15, %v5330_v14  ;;  %1666 = vmatpush.bf16.msra.mxu1 %v5075_v20  ;;  %v255_v15 = vld [vmem:[%s6759_s23 + $0xb8] sm:$0xff] }
  0x28   : > { %v5058_v19 = vld [vmem:[%s10130_s1 + $0x100] sm:$0xf]  ;;  %v5972_v22 = vld [vmem:[%s10130_s1 + $0x10c] sm:$0xf0]  ;;  %v4931_v30 = vor.u32 %v5940_v18, %v4930_v17  ;;  %1715 = vmatpush.bf16.msra.mxu2 %v5203_v21  ;;  %v249_v16 = vld [vmem:[%s6759_s23 + $0x88] sm:$0xff] }
  0x29   : > { %v5186_v23 = vld [vmem:[%s10130_s1 + $0x200] sm:$0xf]  ;;  %v6004_v25 = vld [vmem:[%s10130_s1 + $0x20c] sm:$0xf0]  ;;  %v5059_v34 = vor.u32 %v5972_v22, %v5058_v19  ;;  %1764 = vmatpush.bf16.msra.mxu3 %v5331_v24  ;;  %v5954_v24 = vld [vmem:[%s10130_s1 + $0x84] sm:$0xf] }
  0x2a   : > { %v5314_v26 = vld [vmem:[%s10130_s1 + $0x300] sm:$0xf]  ;;  %v6036_v27 = vld [vmem:[%s10130_s1 + $0x30c] sm:$0xf0]  ;;  %v5187_v35 = vor.u32 %v6004_v25, %v5186_v23  ;;  %1618 = vmatpush.bf16.msra.mxu0 %v4931_v30 }
  0x2b   : > { %v5698_v28 = vld [vmem:[%s10130_s1 + $0x600] sm:$0xf]  ;;  %v6132_v29 = vld [vmem:[%s10130_s1 + $0x60c] sm:$0xf0]  ;;  %v5315_v39 = vor.u32 %v6036_v27, %v5314_v26  ;;  %1667 = vmatpush.bf16.msra.mxu1 %v5059_v34  ;;  %v4996_v26 = vld [vmem:[%s10130_s1 + $0x90] sm:$0xf0] }
  0x2c   : > { %v5554_v31 = vld [vmem:[%s10130_s1 + $0x4e0] sm:$0xf]  ;;  %v6096_v36 = vld [vmem:[%s10130_s1 + $0x4ec] sm:$0xf0]  ;;  %v5699_v43 = vor.u32 %v6132_v29, %v5698_v28  ;;  %1716 = vmatpush.bf16.msra.mxu2 %v5187_v35  ;;  %v4999_v29 = vor.u32 %v5954_v24, %v4996_v26 }
  0x2d   : > { %v5682_v37 = vld [vmem:[%s10130_s1 + $0x5e0] sm:$0xf]  ;;  %v6128_v38 = vld [vmem:[%s10130_s1 + $0x5ec] sm:$0xf0]  ;;  %v5555_v56 = vor.u32 %v6096_v36, %v5554_v31  ;;  %1765 = vmatpush.bf16.msra.mxu3 %v5315_v39  ;;  %v269_v36 = vld [vmem:[%s6759_s23 + $0x128] sm:$0xff] }
  0x2e   : > { %v232_v40 = vld [vmem:[%s6759_s23] sm:$0xff]  ;;  %v234_v47 = vld [vmem:[%s6759_s23 + $0x10] sm:$0xff]  ;;  %v5683_v57 = vor.u32 %v6128_v38, %v5682_v37  ;;  %v263_v37 = vld [vmem:[%s6759_s23 + $0xf8] sm:$0xff] }
  0x2f   : > { %v6776_v45 = vpack.c.bf16 %v239_v41, %v232_v40  ;;  %v240_v46 = vld [vmem:[%s6759_s23 + $0x40] sm:$0xff]  ;;  %v6783_v51 = vpack.c.bf16 %v241_v48, %v234_v47  ;;  %v242_v53 = vld [vmem:[%s6759_s23 + $0x50] sm:$0xff]  ;;  %1807 = vmatpush.bf16.msrb.mxu0 %v5555_v56 }
  0x30   : > { %v6781_v50 = vpack.c.bf16 %v240_v46, %v233_v42  ;;  %v6790_v55 = vpack.c.bf16 %v242_v53, %v235_v52  ;;  %1912 = vmatpush.bf16.msrb.mxu2 %v5699_v43  ;;  %v5538_v58 = vld [vmem:[%s10130_s1 + $0x4c0] sm:$0xf]  ;;  %v6092_v59 = vld [vmem:[%s10130_s1 + $0x4cc] sm:$0xf0]  ;;  %1856 = vmatpush.bf16.msrb.mxu1 %v5683_v57  ;;  %v5950_v46 = vld [vmem:[%s10130_s1 + $0x64] sm:$0xf] }
  0x31   : > { %10247 = vst [vmem:[#allocation2_spill] sm:$0xff] %v6776_v45  ;;  %1619 = vmatmul.bf16.vlgmr.msra.gmra.mxu0 %v6776_v45  ;;  %1954 = vmatpush.bf16.msrb.mxu3 %v5047_v49  ;;  %v5666_v61 = vld [vmem:[%s10130_s1 + $0x5c0] sm:$0xf]  ;;  %v6124_v62 = vld [vmem:[%s10130_s1 + $0x5cc] sm:$0xf0]  ;;  %v5539_v63 = vor.u32 %v6092_v59, %v5538_v58  ;;  %v281_v57 = vld [vmem:[%s6759_s23 + $0x188] sm:$0xff] }
  0x32   : > { %10248 = vst [vmem:[#allocation3_spill] sm:$0xff] %v6781_v50  ;;  %1668 = vmatmul.bf16.vlgmr.msra.gmra.mxu1 %v6781_v50  ;;  %1717 = vmatmul.bf16.vlgmr.msra.gmra.mxu2 %v6783_v51  ;;  %v5667_v0 = vor.u32 %v6124_v62, %v5666_v61  ;;  %v5522_v1 = vld [vmem:[%s10130_s1 + $0x4a0] sm:$0xf]  ;;  %v6088_v2 = vld [vmem:[%s10130_s1 + $0x4ac] sm:$0xf0]  ;;  %v275_v58 = vld [vmem:[%s6759_s23 + $0x158] sm:$0xff] }
  0x33   : > { %10249 = vst [vmem:[#allocation4_spill] sm:$0xff] %v6783_v51  ;;  %1766 = vmatmul.bf16.vlgmr.msra.gmra.mxu3 %v6790_v55  ;;  %v5650_v5 = vld [vmem:[%s10130_s1 + $0x5a0] sm:$0xf]  ;;  %v6120_v6 = vld [vmem:[%s10130_s1 + $0x5ac] sm:$0xf0]  ;;  %1808 = vmatpush.bf16.msrb.mxu0 %v5539_v63  ;;  %v5523_v8 = vor.u32 %v6088_v2, %v5522_v1  ;;  %v283_v61 = vld [vmem:[%s6759_s23 + $0x198] sm:$0xff] }
  0x34   : > { %10250 = vst [vmem:[#allocation5_spill] sm:$0xff] %v6790_v55  ;;  %1857 = vmatpush.bf16.msrb.mxu1 %v5667_v0  ;;  %v5651_v9 = vor.u32 %v6120_v6, %v5650_v5  ;;  %v246_v10 = vld [vmem:[%s6759_s23 + $0x70] sm:$0xff]  ;;  %v248_v14 = vld [vmem:[%s6759_s23 + $0x80] sm:$0xff]  ;;  %v277_v62 = vld [vmem:[%s6759_s23 + $0x168] sm:$0xff] }
  0x35   : > { %1955 = vmatpush.bf16.msrb.mxu3 %v5031_v60  ;;  %v254_v13 = vld [vmem:[%s6759_s23 + $0xb0] sm:$0xff]  ;;  %v256_v17 = vld [vmem:[%s6759_s23 + $0xc0] sm:$0xff]  ;;  %v6834_v18 = vpack.c.bf16 %v253_v11, %v246_v10  ;;  %v6838_v20 = vpack.c.bf16 %v255_v15, %v248_v14  ;;  %v295_v14 = vld [vmem:[%s6759_s23 + $0x1f8] sm:$0xff] }
  0x36   : > { %v6836_v19 = vpack.c.bf16 %v254_v13, %v247_v12  ;;  %v6840_v21 = vpack.c.bf16 %v256_v17, %v249_v16  ;;  %v5506_v22 = vld [vmem:[%s10130_s1 + $0x480] sm:$0xf]  ;;  %v6084_v23 = vld [vmem:[%s10130_s1 + $0x48c] sm:$0xf0]  ;;  %v4980_v48 = vld [vmem:[%s10130_s1 + $0x70] sm:$0xf0] }
  0x37   : > { %1809 = vmatpush.bf16.msrb.mxu0 %v5523_v8  ;;  %10251 = vst [vmem:[#allocation6_spill] sm:$0xff] %v6834_v18  ;;  %v5507_v25 = vor.u32 %v6084_v23, %v5506_v22  ;;  %v5634_v27 = vld [vmem:[%s10130_s1 + $0x580] sm:$0xf]  ;;  %v6116_v28 = vld [vmem:[%s10130_s1 + $0x58c] sm:$0xf0]  ;;  %v4983_v53 = vor.u32 %v5950_v46, %v4980_v48  ;;  %v289_v15 = vld [vmem:[%s6759_s23 + $0x1c8] sm:$0xff] }
  0x38   : > { %1858 = vmatpush.bf16.msrb.mxu1 %v5651_v9  ;;  %10252 = vst [vmem:[#allocation7_spill] sm:$0xff] %v6836_v19  ;;  %v5635_v30 = vor.u32 %v6116_v28, %v5634_v27  ;;  %v260_v31 = vld [vmem:[%s6759_s23 + $0xe0] sm:$0xff]  ;;  %v262_v35 = vld [vmem:[%s6759_s23 + $0xf0] sm:$0xff]  ;;  %v297_v22 = vld [vmem:[%s6759_s23 + $0x208] sm:$0xff] }
  0x39   : > { %1956 = vmatpush.bf16.msrb.mxu3 %v5015_v7  ;;  %10253 = vst [vmem:[#allocation8_spill] sm:$0xff] %v6838_v20  ;;  %v268_v34 = vld [vmem:[%s6759_s23 + $0x120] sm:$0xff]  ;;  %v270_v38 = vld [vmem:[%s6759_s23 + $0x130] sm:$0xff]  ;;  %v6872_v39 = vpack.c.bf16 %v267_v32, %v260_v31  ;;  %v6876_v41 = vpack.c.bf16 %v269_v36, %v262_v35  ;;  %v291_v23 = vld [vmem:[%s6759_s23 + $0x1d8] sm:$0xff] }
  0x3a   : > { %10254 = vst [vmem:[#allocation9_spill] sm:$0xff] %v6840_v21  ;;  %v6874_v40 = vpack.c.bf16 %v268_v34, %v261_v33  ;;  %v6878_v42 = vpack.c.bf16 %v270_v38, %v263_v37  ;;  %v5490_v43 = vld [vmem:[%s10130_s1 + $0x460] sm:$0xf]  ;;  %v6080_v44 = vld [vmem:[%s10130_s1 + $0x46c] sm:$0xf0]  ;;  %v311_v48 = vld [vmem:[%s6759_s23 + $0x278] sm:$0xff] }
  0x3b   : > { %1810 = vmatpush.bf16.msrb.mxu0 %v5507_v25  ;;  %10255 = vst [vmem:[#allocation10_spill] sm:$0xff] %v6872_v39  ;;  %v5491_v47 = vor.u32 %v6080_v44, %v5490_v43  ;;  %v5618_v49 = vld [vmem:[%s10130_s1 + $0x560] sm:$0xf]  ;;  %v6112_v52 = vld [vmem:[%s10130_s1 + $0x56c] sm:$0xf0]  ;;  %v309_v43 = vld [vmem:[%s6759_s23 + $0x268] sm:$0xff] }
  0x3c   : > { %1859 = vmatpush.bf16.msrb.mxu1 %v5635_v30  ;;  %10256 = vst [vmem:[#allocation11_spill] sm:$0xff] %v6876_v41  ;;  %v5619_v54 = vor.u32 %v6112_v52, %v5618_v49  ;;  %v274_v56 = vld [vmem:[%s6759_s23 + $0x150] sm:$0xff]  ;;  %v276_v60 = vld [vmem:[%s6759_s23 + $0x160] sm:$0xff]  ;;  %v303_v44 = vld [vmem:[%s6759_s23 + $0x238] sm:$0xff] }
  0x3d   : > { %1957 = vmatpush.bf16.msrb.mxu3 %v4999_v29  ;;  %10257 = vst [vmem:[#allocation12_spill] sm:$0xff] %v6878_v42  ;;  %v282_v59 = vld [vmem:[%s6759_s23 + $0x190] sm:$0xff]  ;;  %v284_v63 = vld [vmem:[%s6759_s23 + $0x1a0] sm:$0xff]  ;;  %v6910_v0 = vpack.c.bf16 %v281_v57, %v274_v56  ;;  %v6914_v2 = vpack.c.bf16 %v283_v61, %v276_v60  ;;  %v305_v49 = vld [vmem:[%s6759_s23 + $0x248] sm:$0xff] }
  0x3e   : > { %v6912_v1 = vpack.c.bf16 %v282_v59, %v275_v58  ;;  %v6916_v3 = vpack.c.bf16 %v284_v63, %v277_v62  ;;  %v5474_v4 = vld [vmem:[%s10130_s1 + $0x440] sm:$0xf]  ;;  %v6076_v5 = vld [vmem:[%s10130_s1 + $0x44c] sm:$0xf0]  ;;  %v5946_v6 = vld [vmem:[%s10130_s1 + $0x44] sm:$0xf] }
  0x3f   : > { %1811 = vmatpush.bf16.msrb.mxu0 %v5491_v47  ;;  %10258 = vst [vmem:[#allocation13_spill] sm:$0xff] %v6910_v0  ;;  %v5475_v7 = vor.u32 %v6076_v5, %v5474_v4  ;;  %v4964_v8 = vld [vmem:[%s10130_s1 + $0x50] sm:$0xf0]  ;;  %v5602_v9 = vld [vmem:[%s10130_s1 + $0x540] sm:$0xf] }
  0x40   : > { %1860 = vmatpush.bf16.msrb.mxu1 %v5619_v54  ;;  %10259 = vst [vmem:[#allocation14_spill] sm:$0xff] %v6912_v1  ;;  %v6108_v10 = vld [vmem:[%s10130_s1 + $0x54c] sm:$0xf0]  ;;  %v4967_v11 = vor.u32 %v5946_v6, %v4964_v8  ;;  %v288_v13 = vld [vmem:[%s6759_s23 + $0x1c0] sm:$0xff]  ;;  %v4948_v33 = vld [vmem:[%s10130_s1 + $0x30] sm:$0xf0] }
  0x41   : > { %1624 = vmatmul.bf16.gmra.mxu0 %v6834_v18  ;;  %1958 = vmatpush.bf16.msrb.mxu3 %v4983_v53  ;;  %v5603_v12 = vor.u32 %v6108_v10, %v5602_v9  ;;  %v296_v16 = vld [vmem:[%s6759_s23 + $0x200] sm:$0xff]  ;;  %v290_v17 = vld [vmem:[%s6759_s23 + $0x1d0] sm:$0xff]  ;;  %v6948_v25 = vpack.c.bf16 %v295_v14, %v288_v13  ;;  %v323_v8 = vld [vmem:[%s6759_s23 + $0x2d8] sm:$0xff] }
  0x42   : > { %1673 = vmatmul.bf16.gmra.mxu1 %v6836_v19  ;;  %1722 = vmatmul.bf16.gmra.mxu2 %v6838_v20  ;;  %v298_v24 = vld [vmem:[%s6759_s23 + $0x210] sm:$0xff]  ;;  %v6950_v26 = vpack.c.bf16 %v296_v16, %v289_v15  ;;  %v6952_v27 = vpack.c.bf16 %v297_v22, %v290_v17  ;;  %v5458_v29 = vld [vmem:[%s10130_s1 + $0x420] sm:$0xf]  ;;  %v5942_v31 = vld [vmem:[%s10130_s1 + $0x24] sm:$0xf] }
  0x43   : > { %1771 = vmatmul.bf16.gmra.mxu3 %v6840_v21  ;;  %1812 = vmatpush.bf16.msrb.mxu0 %v5475_v7  ;;  %10260 = vst [vmem:[#allocation15_spill] sm:$0xff] %v6948_v25  ;;  %v6954_v28 = vpack.c.bf16 %v298_v24, %v291_v23  ;;  %v6072_v30 = vld [vmem:[%s10130_s1 + $0x42c] sm:$0xf0]  ;;  %v5586_v34 = vld [vmem:[%s10130_s1 + $0x520] sm:$0xf]  ;;  %v4951_v36 = vor.u32 %v5942_v31, %v4948_v33  ;;  %v317_v9 = vld [vmem:[%s6759_s23 + $0x2a8] sm:$0xff] }
  0x44   : > { %1861 = vmatpush.bf16.msrb.mxu1 %v5603_v12  ;;  %10261 = vst [vmem:[#allocation16_spill] sm:$0xff] %v6950_v26  ;;  %v5459_v32 = vor.u32 %v6072_v30, %v5458_v29  ;;  %v6104_v35 = vld [vmem:[%s10130_s1 + $0x52c] sm:$0xf0]  ;;  %v304_v47 = vld [vmem:[%s6759_s23 + $0x240] sm:$0xff]  ;;  %v4932_v62 = vld [vmem:[%s10130_s1 + $0x10] sm:$0xf0] }
  0x45   : > { %1959 = vmatpush.bf16.msrb.mxu3 %v4967_v11  ;;  %v5587_v37 = vor.u32 %v6104_v35, %v5586_v34  ;;  %v302_v38 = vld [vmem:[%s6759_s23 + $0x230] sm:$0xff]  ;;  %v312_v52 = vld [vmem:[%s6759_s23 + $0x280] sm:$0xff]  ;;  %v6990_v56 = vpack.c.bf16 %v311_v48, %v304_v47  ;;  %v325_v12 = vld [vmem:[%s6759_s23 + $0x2e8] sm:$0xff] }
  0x46   : > { %v310_v46 = vld [vmem:[%s6759_s23 + $0x270] sm:$0xff]  ;;  %v6986_v53 = vpack.c.bf16 %v309_v43, %v302_v38  ;;  %v6992_v57 = vpack.c.bf16 %v312_v52, %v305_v49  ;;  %v5442_v58 = vld [vmem:[%s10130_s1 + $0x400] sm:$0xf]  ;;  %v5938_v60 = vld [vmem:[%s10130_s1 + $0x4] sm:$0xf] }
  0x47   : > { %1813 = vmatpush.bf16.msrb.mxu0 %v5459_v32  ;;  %v6988_v54 = vpack.c.bf16 %v310_v46, %v303_v44  ;;  %v6068_v59 = vld [vmem:[%s10130_s1 + $0x40c] sm:$0xf0]  ;;  %v5570_v63 = vld [vmem:[%s10130_s1 + $0x500] sm:$0xf]  ;;  %v4935_v5 = vor.u32 %v5938_v60, %v4932_v62  ;;  %v319_v13 = vld [vmem:[%s6759_s23 + $0x2b8] sm:$0xff] }
  0x48   : > { %1862 = vmatpush.bf16.msrb.mxu1 %v5587_v37  ;;  %10262 = vst [vmem:[#allocation17_spill] sm:$0xff] %v6986_v53  ;;  %v5443_v61 = vor.u32 %v6068_v59, %v5442_v58  ;;  %v6100_v4 = vld [vmem:[%s10130_s1 + $0x50c] sm:$0xf0]  ;;  %v316_v7 = vld [vmem:[%s6759_s23 + $0x2a0] sm:$0xff]  ;;  %v5428_v24 = vld [vmem:[%s10130_s1 + $0x3f0] sm:$0xf0] }
  0x49   : > { %1960 = vmatpush.bf16.msrb.mxu3 %v4951_v36  ;;  %10263 = vst [vmem:[#allocation18_spill] sm:$0xff] %v6988_v54  ;;  %v5571_v6 = vor.u32 %v6100_v4, %v5570_v63  ;;  %v324_v10 = vld [vmem:[%s6759_s23 + $0x2e0] sm:$0xff]  ;;  %v318_v11 = vld [vmem:[%s6759_s23 + $0x2b0] sm:$0xff]  ;;  %v7024_v15 = vpack.c.bf16 %v323_v8, %v316_v7  ;;  %v337_v44 = vld [vmem:[%s6759_s23 + $0x348] sm:$0xff] }
  0x4a   : > { %v326_v14 = vld [vmem:[%s6759_s23 + $0x2f0] sm:$0xff]  ;;  %v7026_v16 = vpack.c.bf16 %v324_v10, %v317_v9  ;;  %v7028_v17 = vpack.c.bf16 %v325_v12, %v318_v11  ;;  %v6062_v23 = vld [vmem:[%s10130_s1 + $0x3e4] sm:$0xf]  ;;  %v331_v46 = vld [vmem:[%s6759_s23 + $0x318] sm:$0xff] }
  0x4b   : > { %1814 = vmatpush.bf16.msrb.mxu0 %v5443_v61  ;;  %10264 = vst [vmem:[#allocation19_spill] sm:$0xff] %v7024_v15  ;;  %v7030_v22 = vpack.c.bf16 %v326_v14, %v319_v13  ;;  %v5998_v29 = vld [vmem:[%s10130_s1 + $0x1e4] sm:$0xf]  ;;  %v5431_v30 = vor.u32 %v6062_v23, %v5428_v24  ;;  %v5172_v31 = vld [vmem:[%s10130_s1 + $0x1f0] sm:$0xf0]  ;;  %v339_v49 = vld [vmem:[%s6759_s23 + $0x358] sm:$0xff] }
  0x4c   : > { %1863 = vmatpush.bf16.msrb.mxu1 %v5571_v6  ;;  %10265 = vst [vmem:[#allocation20_spill] sm:$0xff] %v7026_v16  ;;  %v6094_v32 = vld [vmem:[%s10130_s1 + $0x4e4] sm:$0xf]  ;;  %v5556_v33 = vld [vmem:[%s10130_s1 + $0x4f0] sm:$0xf0]  ;;  %v5175_v34 = vor.u32 %v5998_v29, %v5172_v31  ;;  %v333_v52 = vld [vmem:[%s6759_s23 + $0x328] sm:$0xff] }
  0x4d   : > { %1961 = vmatpush.bf16.msrb.mxu3 %v4935_v5  ;;  %v5559_v35 = vor.u32 %v6094_v32, %v5556_v33  ;;  %2101 = vmatpush.bf16.msra.mxu2 %v5431_v30  ;;  %v6030_v36 = vld [vmem:[%s10130_s1 + $0x2e4] sm:$0xf]  ;;  %v5300_v37 = vld [vmem:[%s10130_s1 + $0x2f0] sm:$0xf0]  ;;  %v596_v12 = vld [vmem:[%s10131_s2] sm:$0xf] }
  0x4e   : > { %v5303_v38 = vor.u32 %v6030_v36, %v5300_v37  ;;  %v330_v43 = vld [vmem:[%s6759_s23 + $0x310] sm:$0xff]  ;;  %v332_v48 = vld [vmem:[%s6759_s23 + $0x320] sm:$0xff]  ;;  %v243_v29 = vld [vmem:[%s6759_s23 + $0x58] sm:$0xff]  ;;  %v7110_v31 = vperm.slane %v596_v12, 0 }
  0x4f   : > { %2003 = vmatpush.bf16.msra.mxu0 %v5175_v34  ;;  %v338_v47 = vld [vmem:[%s6759_s23 + $0x350] sm:$0xff]  ;;  %v340_v58 = vld [vmem:[%s6759_s23 + $0x360] sm:$0xff]  ;;  %v7068_v59 = vpack.c.bf16 %v337_v44, %v330_v43  ;;  %v7072_v61 = vpack.c.bf16 %v339_v49, %v332_v48  ;;  %v237_v30 = vld [vmem:[%s6759_s23 + $0x28] sm:$0xff] }
  0x50   : > { %2052 = vmatpush.bf16.msra.mxu1 %v5303_v38  ;;  %v7070_v60 = vpack.c.bf16 %v338_v47, %v331_v46  ;;  %v7074_v62 = vpack.c.bf16 %v340_v58, %v333_v52  ;;  %v6058_v63 = vld [vmem:[%s10130_s1 + $0x3c4] sm:$0xf]  ;;  %v5412_v4 = vld [vmem:[%s10130_s1 + $0x3d0] sm:$0xf0]  ;;  %v245_v34 = vld [vmem:[%s6759_s23 + $0x68] sm:$0xff] }
  0x51   : > { %1629 = vmatmul.bf16.gmra.mxu0 %v6872_v39  ;;  %2150 = vmatpush.bf16.msra.mxu3 %v5559_v35  ;;  %10266 = vst [vmem:[#allocation21_spill] sm:$0xff] %v7068_v59  ;;  %v5994_v5 = vld [vmem:[%s10130_s1 + $0x1c4] sm:$0xf]  ;;  %v5415_v6 = vor.u32 %v6058_v63, %v5412_v4  ;;  %v5156_v7 = vld [vmem:[%s10130_s1 + $0x1d0] sm:$0xf0] }
  0x52   : > { %1678 = vmatmul.bf16.gmra.mxu1 %v6874_v40  ;;  %1727 = vmatmul.bf16.gmra.mxu2 %v6876_v41  ;;  %10267 = vst [vmem:[#allocation22_spill] sm:$0xff] %v7070_v60  ;;  %v6090_v8 = vld [vmem:[%s10130_s1 + $0x4c4] sm:$0xf]  ;;  %v5540_v9 = vld [vmem:[%s10130_s1 + $0x4d0] sm:$0xf0]  ;;  %v5159_v10 = vor.u32 %v5994_v5, %v5156_v7 }
  0x53   : > { %1776 = vmatmul.bf16.gmra.mxu3 %v6878_v42  ;;  %10268 = vst [vmem:[#allocation23_spill] sm:$0xff] %v7072_v61  ;;  %v5543_v11 = vor.u32 %v6090_v8, %v5540_v9  ;;  %2102 = vmatpush.bf16.msra.mxu2 %v5415_v6  ;;  %v6026_v13 = vld [vmem:[%s10130_s1 + $0x2c4] sm:$0xf]  ;;  %v5284_v14 = vld [vmem:[%s10130_s1 + $0x2d0] sm:$0xf0] }
  0x54   : > { %10269 = vst [vmem:[#allocation24_spill] sm:$0xff] %v7074_v62  ;;  %2004 = vmatpush.bf16.msra.mxu0 %v5159_v10  ;;  %v5287_v23 = vor.u32 %v6026_v13, %v5284_v14  ;;  %v236_v24 = vld [vmem:[%s6759_s23 + $0x20] sm:$0xff]  ;;  %v238_v33 = vld [vmem:[%s6759_s23 + $0x30] sm:$0xff] }
  0x55   : > { %2151 = vmatpush.bf16.msra.mxu3 %v5543_v11  ;;  %v244_v32 = vld [vmem:[%s6759_s23 + $0x60] sm:$0xff]  ;;  %v7115_v35 = vpack.c.bf16 %v243_v29, %v236_v24  ;;  %v7119_v38 = vpack.c.bf16 %v245_v34, %v238_v33  ;;  %v5396_v48 = vld [vmem:[%s10130_s1 + $0x3b0] sm:$0xf0]  ;;  %v251_v33 = vld [vmem:[%s6759_s23 + $0x98] sm:$0xff] }
  0x56   : > { %2053 = vmatpush.bf16.msra.mxu1 %v5287_v23  ;;  %v7117_v37 = vpack.c.bf16 %v244_v32, %v237_v30  ;;  %v6054_v47 = vld [vmem:[%s10130_s1 + $0x3a4] sm:$0xf]  ;;  %v5140_v58 = vld [vmem:[%s10130_s1 + $0x1b0] sm:$0xf0]  ;;  %v257_v32 = vld [vmem:[%s6759_s23 + $0xc8] sm:$0xff] }
  0x57   : > { %10270 = vst [vmem:[#allocation25_spill] sm:$0xff] %v7115_v35  ;;  %v5990_v49 = vld [vmem:[%s10130_s1 + $0x1a4] sm:$0xf]  ;;  %v5399_v52 = vor.u32 %v6054_v47, %v5396_v48  ;;  %v5524_v4 = vld [vmem:[%s10130_s1 + $0x4b0] sm:$0xf0] }
  0x58   : > { %10271 = vst [vmem:[#allocation26_spill] sm:$0xff] %v7117_v37  ;;  %v6086_v63 = vld [vmem:[%s10130_s1 + $0x4a4] sm:$0xf]  ;;  %v5143_v6 = vor.u32 %v5990_v49, %v5140_v58  ;;  %v5268_v23 = vld [vmem:[%s10130_s1 + $0x2b0] sm:$0xf0] }
  0x59   : > { %10272 = vst [vmem:[#allocation27_spill] sm:$0xff] %v7119_v38  ;;  %v5527_v7 = vor.u32 %v6086_v63, %v5524_v4  ;;  %2103 = vmatpush.bf16.msra.mxu2 %v5399_v52  ;;  %v6022_v14 = vld [vmem:[%s10130_s1 + $0x2a4] sm:$0xf]  ;;  %v250_v30 = vld [vmem:[%s6759_s23 + $0x90] sm:$0xff] }
  0x5a   : > { %2005 = vmatpush.bf16.msra.mxu0 %v5143_v6  ;;  %v5271_v29 = vor.u32 %v6022_v14, %v5268_v23  ;;  %v258_v34 = vld [vmem:[%s6759_s23 + $0xd0] sm:$0xff] }
  0x5b   : > { %2152 = vmatpush.bf16.msra.mxu3 %v5527_v7  ;;  %v7162_v52 = vpack.c.bf16 %v258_v34, %v251_v33  ;;  %v6050_v7 = vld [vmem:[%s10130_s1 + $0x384] sm:$0xf]  ;;  %v5508_v14 = vld [vmem:[%s10130_s1 + $0x490] sm:$0xf0] }
  0x5c   : > { %2054 = vmatpush.bf16.msra.mxu1 %v5271_v29 }
  0x5d   : > { %10274 = vst [vmem:[#allocation29_spill] sm:$0xff] %v7162_v52 }
  0x61   : > { %1634 = vmatmul.bf16.gmra.mxu0 %v6910_v0 }
  0x62   : > { %1683 = vmatmul.bf16.gmra.mxu1 %v6912_v1  ;;  %1732 = vmatmul.bf16.gmra.mxu2 %v6914_v2 }
  0x63   : > { %1781 = vmatmul.bf16.gmra.mxu3 %v6916_v3 }
  0x71   : > { %1639 = vmatmul.bf16.gmra.mxu0 %v6948_v25 }
  0x72   : > { %1688 = vmatmul.bf16.gmra.mxu1 %v6950_v26  ;;  %1737 = vmatmul.bf16.gmra.mxu2 %v6952_v27 }
  0x73   : > { %1786 = vmatmul.bf16.gmra.mxu3 %v6954_v28 }
  0x81   : > { %1644 = vmatmul.bf16.gmra.mxu0 %v6986_v53 }
  0x82   : > { %1693 = vmatmul.bf16.gmra.mxu1 %v6988_v54  ;;  %1742 = vmatmul.bf16.gmra.mxu2 %v6990_v56 }
  0x83   : > { %1791 = vmatmul.bf16.gmra.mxu3 %v6992_v57 }
  0x91   : > { %1649 = vmatmul.bf16.gmra.mxu0 %v7024_v15 }
  0x92   : > { %1698 = vmatmul.bf16.gmra.mxu1 %v7026_v16  ;;  %1747 = vmatmul.bf16.gmra.mxu2 %v7028_v17 }
  0x93   : > { %1796 = vmatmul.bf16.gmra.mxu3 %v7030_v22 }
  0xa1   : > { %1654 = vmatmul.bf16.gmra.mxu0 %v7068_v59 }
  0xa2   : > { %1703 = vmatmul.bf16.gmra.mxu1 %v7070_v60  ;;  %1752 = vmatmul.bf16.gmra.mxu2 %v7072_v61 }
  0xa3   : > { %1801 = vmatmul.bf16.gmra.mxu3 %v7074_v62  ;;  %v342_v62 = vld [vmem:[%s6759_s23 + $0x370] sm:$0xff] }
  0xae   : > { %v1620_v36 = vpop.f32.mrf.mxu0 }
  0xaf   : > { %v1621_v43 = vadd.f32 %v1620_v36, %v7110_v31  ;;  %v1669_v44 = vpop.f32.mrf.mxu1  ;;  %v252_v36 = vld [vmem:[%s6759_s23 + $0xa0] sm:$0xff] }
  0xb1   : > { %v1670_v46 = vadd.f32 %v1669_v44, %v1621_v43  ;;  %1815 = vmatmul.bf16.vlgmr.msrb.gmra.mxu0 %v7115_v35  ;;  %v259_v43 = vld [vmem:[%s6759_s23 + $0xd8] sm:$0xff] }
  0xb2   : > { %1864 = vmatmul.bf16.vlgmr.msrb.gmra.mxu1 %v7117_v37  ;;  %5712 = vmatmul.msk.bf16.vlgmr.msrb.gmra.mxu2 %vm1586_vm0, %v7119_v38  ;;  %v7164_v58 = vpack.c.bf16 %v259_v43, %v252_v36  ;;  %v335_v37 = vld [vmem:[%s6759_s23 + $0x338] sm:$0xff] }
  0xb3   : > { %1962 = vmatmul.bf16.vlgmr.msrb.gmra.mxu3 %v6776_v45  ;;  %v7438_v61 = vpack.c.bf16 %v342_v62, %v335_v37 }
  0xb4   : > { %10275 = vst [vmem:[#allocation30_spill] sm:$0xff] %v7164_v58 }
  0xb5   : > { %v1718_v5 = vpop.f32.mrf.mxu2  ;;  %10289 = vst [vmem:[#allocation44_spill] sm:$0xff] %v7438_v61 }
  0xb6   : > { %v1719_v8 = vadd.f32 %v1718_v5, %v1670_v46  ;;  %v1767_v9 = vpop.f32.mrf.mxu3  ;;  %v1622_v10 = vpop.f32.mrf.mxu0  ;;  %v7160_v46 = vpack.c.bf16 %v257_v32, %v250_v30 }
  0xb7   : > { %v1623_v11 = vadd.f32 %v1622_v10, %v7110_v31  ;;  %v1671_v12 = vpop.f32.mrf.mxu1 }
  0xb8   : > { %v7146_v13 = vadd.f32 %v1767_v9, %v1719_v8  ;;  %10273 = vst [vmem:[#allocation28_spill] sm:$0xff] %v7160_v46  ;;  %v5380_v8 = vld [vmem:[%s10130_s1 + $0x390] sm:$0xf0]  ;;  %v5986_v9 = vld [vmem:[%s10130_s1 + $0x184] sm:$0xf] }
  0xb9   : > { %v1672_v24 = vadd.f32 %v1671_v12, %v1623_v11  ;;  %v5383_v10 = vor.u32 %v6050_v7, %v5380_v8  ;;  %v5124_v11 = vld [vmem:[%s10130_s1 + $0x190] sm:$0xf0]  ;;  %v6082_v12 = vld [vmem:[%s10130_s1 + $0x484] sm:$0xf] }
  0xba   : > { %v5511_v29 = vor.u32 %v6082_v12, %v5508_v14  ;;  %v272_v7 = vld [vmem:[%s6759_s23 + $0x140] sm:$0xff]  ;;  %v266_v8 = vld [vmem:[%s6759_s23 + $0x110] sm:$0xff] }
  0xbb   : > { %2104 = vmatpush.bf16.msra.mxu2 %v5383_v10 }
  0xbc   : > { %2153 = vmatpush.bf16.msra.mxu3 %v5511_v29 }
  0xbd   : > { %v1720_v44 = vpop.f32.mrf.mxu2 }
  0xbe   : > { %v1721_v47 = vadd.f32 %v1720_v44, %v1672_v24  ;;  %v1769_v48 = vpop.f32.mrf.mxu3  ;;  %v1625_v49 = vpop.f32.mrf.mxu0  ;;  %v5127_v24 = vor.u32 %v5986_v9, %v5124_v11  ;;  %v6018_v44 = vld [vmem:[%s10130_s1 + $0x284] sm:$0xf]  ;;  %v273_v9 = vld [vmem:[%s6759_s23 + $0x148] sm:$0xff] }
  0xbf   : > { %v1626_v63 = vadd.f32 %v1625_v49, %v7110_v31  ;;  %v1674_v4 = vpop.f32.mrf.mxu1  ;;  %v7211_v29 = vpack.c.bf16 %v273_v9, %v266_v8 }
  0xc0   : > { %v7167_v5 = vadd.f32 %v1769_v48, %v1721_v47  ;;  %2006 = vmatpush.bf16.msra.mxu0 %v5127_v24  ;;  %v5252_v47 = vld [vmem:[%s10130_s1 + $0x290] sm:$0xf0] }
  0xc1   : > { %v1675_v6 = vadd.f32 %v1674_v4, %v1626_v63  ;;  %1820 = vmatmul.bf16.gmra.mxu0 %v7160_v46  ;;  %v5255_v49 = vor.u32 %v6018_v44, %v5252_v47  ;;  %v264_v63 = vld [vmem:[%s6759_s23 + $0x100] sm:$0xff]  ;;  %v271_v4 = vld [vmem:[%s6759_s23 + $0x138] sm:$0xff]  ;;  %10278 = vst [vmem:[#allocation33_spill] sm:$0xff] %v7211_v29  ;;  %v5364_v44 = vld [vmem:[%s10130_s1 + $0x370] sm:$0xf0] }
  0xc2   : > { %1869 = vmatmul.bf16.gmra.mxu1 %v7162_v52  ;;  %5713 = vmatmul.msk.bf16.gmra.mxu2 %vm1586_vm0, %v7164_v58  ;;  %v7207_v11 = vpack.c.bf16 %v271_v4, %v264_v63  ;;  %v5982_v47 = vld [vmem:[%s10130_s1 + $0x164] sm:$0xf]  ;;  %v5492_v4 = vld [vmem:[%s10130_s1 + $0x470] sm:$0xf0] }
  0xc3   : > { %1967 = vmatmul.bf16.gmra.mxu3 %v6834_v18  ;;  %2055 = vmatpush.bf16.msra.mxu1 %v5255_v49  ;;  %v5108_v49 = vld [vmem:[%s10130_s1 + $0x170] sm:$0xf0]  ;;  %v6078_v63 = vld [vmem:[%s10130_s1 + $0x464] sm:$0xf] }
  0xc4   : > { %10276 = vst [vmem:[#allocation31_spill] sm:$0xff] %v7207_v11  ;;  %v5495_v8 = vor.u32 %v6078_v63, %v5492_v4  ;;  %v286_v63 = vld [vmem:[%s6759_s23 + $0x1b0] sm:$0xff]  ;;  %v280_v4 = vld [vmem:[%s6759_s23 + $0x180] sm:$0xff] }
  0xc5   : > { %v1723_v23 = vpop.f32.mrf.mxu2 }
  0xc6   : > { %v1724_v30 = vadd.f32 %v1723_v23, %v1675_v6  ;;  %v1772_v32 = vpop.f32.mrf.mxu3  ;;  %v1627_v33 = vpop.f32.mrf.mxu0  ;;  %v265_v6 = vld [vmem:[%s6759_s23 + $0x108] sm:$0xff]  ;;  %2154 = vmatpush.bf16.msra.mxu3 %v5495_v8 }
  0xc7   : > { %v1628_v34 = vadd.f32 %v1627_v33, %v7110_v31  ;;  %v1676_v36 = vpop.f32.mrf.mxu1  ;;  %v7209_v24 = vpack.c.bf16 %v272_v7, %v265_v6  ;;  %v5111_v7 = vor.u32 %v5982_v47, %v5108_v49  ;;  %v278_v47 = vld [vmem:[%s6759_s23 + $0x170] sm:$0xff]  ;;  %v285_v49 = vld [vmem:[%s6759_s23 + $0x1a8] sm:$0xff] }
  0xc8   : > { %v7193_v43 = vadd.f32 %v1772_v32, %v1724_v30  ;;  %v7254_v8 = vpack.c.bf16 %v285_v49, %v278_v47  ;;  %v5978_v47 = vld [vmem:[%s10130_s1 + $0x144] sm:$0xf] }
  0xc9   : > { %v1677_v48 = vadd.f32 %v1676_v36, %v1628_v34  ;;  %10277 = vst [vmem:[#allocation32_spill] sm:$0xff] %v7209_v24  ;;  %v6046_v36 = vld [vmem:[%s10130_s1 + $0x364] sm:$0xf]  ;;  %2007 = vmatpush.bf16.msra.mxu0 %v5111_v7 }
  0xcd   : > { %v1725_v10 = vpop.f32.mrf.mxu2 }
  0xce   : > { %v1726_v12 = vadd.f32 %v1725_v10, %v1677_v48  ;;  %v1774_v14 = vpop.f32.mrf.mxu3  ;;  %v1630_v23 = vpop.f32.mrf.mxu0  ;;  %v5367_v48 = vor.u32 %v6046_v36, %v5364_v44 }
  0xcf   : > { %v1631_v30 = vadd.f32 %v1630_v23, %v7110_v31  ;;  %v1679_v32 = vpop.f32.mrf.mxu1 }
  0xd0   : > { %v7214_v33 = vadd.f32 %v1774_v14, %v1726_v12  ;;  %2105 = vmatpush.bf16.msra.mxu2 %v5367_v48  ;;  %v279_v48 = vld [vmem:[%s6759_s23 + $0x178] sm:$0xff] }
  0xd1   : > { %v1680_v34 = vadd.f32 %v1679_v32, %v1631_v30  ;;  %1825 = vmatmul.bf16.gmra.mxu0 %v7207_v11  ;;  %v6014_v32 = vld [vmem:[%s10130_s1 + $0x264] sm:$0xf] }
  0xd2   : > { %1874 = vmatmul.bf16.gmra.mxu1 %v7209_v24  ;;  %5714 = vmatmul.msk.bf16.gmra.mxu2 %vm1586_vm0, %v7211_v29 }
  0xd3   : > { %1972 = vmatmul.bf16.gmra.mxu3 %v6872_v39  ;;  %v7256_v39 = vpack.c.bf16 %v286_v63, %v279_v48  ;;  %v5092_v48 = vld [vmem:[%s10130_s1 + $0x150] sm:$0xf0]  ;;  %v6074_v63 = vld [vmem:[%s10130_s1 + $0x444] sm:$0xf] }
  0xd5   : > { %v1728_v6 = vpop.f32.mrf.mxu2  ;;  %10279 = vst [vmem:[#allocation34_spill] sm:$0xff] %v7256_v39 }
  0xd6   : > { %v1729_v9 = vadd.f32 %v1728_v6, %v1680_v34  ;;  %v1777_v10 = vpop.f32.mrf.mxu3  ;;  %v1632_v12 = vpop.f32.mrf.mxu0  ;;  %v5236_v34 = vld [vmem:[%s10130_s1 + $0x270] sm:$0xf0]  ;;  %v287_v6 = vld [vmem:[%s6759_s23 + $0x1b8] sm:$0xff] }
  0xd7   : > { %v1633_v14 = vadd.f32 %v1632_v12, %v7110_v31  ;;  %v1681_v23 = vpop.f32.mrf.mxu1  ;;  %v5239_v44 = vor.u32 %v6014_v32, %v5236_v34  ;;  %v7258_v29 = vpack.c.bf16 %v287_v6, %v280_v4  ;;  %v5476_v4 = vld [vmem:[%s10130_s1 + $0x450] sm:$0xf0] }
  0xd8   : > { %v7240_v30 = vadd.f32 %v1777_v10, %v1729_v9 }
  0xd9   : > { %v1682_v36 = vadd.f32 %v1681_v23, %v1633_v14  ;;  %2056 = vmatpush.bf16.msra.mxu1 %v5239_v44  ;;  %10280 = vst [vmem:[#allocation35_spill] sm:$0xff] %v7258_v29  ;;  %v5348_v44 = vld [vmem:[%s10130_s1 + $0x350] sm:$0xf0] }
  0xdd   : > { %v1730_v7 = vpop.f32.mrf.mxu2 }
  0xde   : > { %v1731_v9 = vadd.f32 %v1730_v7, %v1682_v36  ;;  %v1779_v10 = vpop.f32.mrf.mxu3  ;;  %v1635_v12 = vpop.f32.mrf.mxu0  ;;  %v6042_v36 = vld [vmem:[%s10130_s1 + $0x344] sm:$0xf]  ;;  %v5095_v7 = vor.u32 %v5978_v47, %v5092_v48 }
  0xdf   : > { %v1636_v14 = vadd.f32 %v1635_v12, %v7110_v31  ;;  %v1684_v23 = vpop.f32.mrf.mxu1  ;;  %v5351_v49 = vor.u32 %v6042_v36, %v5348_v44  ;;  %v6010_v47 = vld [vmem:[%s10130_s1 + $0x244] sm:$0xf] }
  0xe0   : > { %v7261_v32 = vadd.f32 %v1779_v10, %v1731_v9  ;;  %v5479_v9 = vor.u32 %v6074_v63, %v5476_v4  ;;  %2008 = vmatpush.bf16.msra.mxu0 %v5095_v7  ;;  %v292_v4 = vld [vmem:[%s6759_s23 + $0x1e0] sm:$0xff] }
  0xe1   : > { %v1685_v34 = vadd.f32 %v1684_v23, %v1636_v14  ;;  %1830 = vmatmul.bf16.gmra.mxu0 %v7254_v8  ;;  %2106 = vmatpush.bf16.msra.mxu2 %v5351_v49  ;;  %v293_v49 = vld [vmem:[%s6759_s23 + $0x1e8] sm:$0xff] }
  0xe2   : > { %1879 = vmatmul.bf16.gmra.mxu1 %v7256_v39  ;;  %5715 = vmatmul.msk.bf16.gmra.mxu2 %vm1586_vm0, %v7258_v29  ;;  %v301_v29 = vld [vmem:[%s6759_s23 + $0x228] sm:$0xff] }
  0xe3   : > { %1977 = vmatmul.bf16.gmra.mxu3 %v6910_v0  ;;  %v300_v0 = vld [vmem:[%s6759_s23 + $0x220] sm:$0xff] }
  0xe4   : > { %2155 = vmatpush.bf16.msra.mxu3 %v5479_v9  ;;  %v7303_v24 = vpack.c.bf16 %v300_v0, %v293_v49  ;;  %v6038_v0 = vld [vmem:[%s10130_s1 + $0x324] sm:$0xf] }
  0xe5   : > { %v1733_v6 = vpop.f32.mrf.mxu2 }
  0xe6   : > { %v1734_v10 = vadd.f32 %v1733_v6, %v1685_v34  ;;  %v1782_v12 = vpop.f32.mrf.mxu3  ;;  %v1637_v14 = vpop.f32.mrf.mxu0  ;;  %v5220_v34 = vld [vmem:[%s10130_s1 + $0x250] sm:$0xf0]  ;;  %v299_v6 = vld [vmem:[%s6759_s23 + $0x218] sm:$0xff]  ;;  %10281 = vst [vmem:[#allocation36_spill] sm:$0xff] %v7303_v24 }
  0xe7   : > { %v1638_v23 = vadd.f32 %v1637_v14, %v7110_v31  ;;  %v1686_v36 = vpop.f32.mrf.mxu1  ;;  %v5223_v63 = vor.u32 %v6010_v47, %v5220_v34  ;;  %v294_v14 = vld [vmem:[%s6759_s23 + $0x1f0] sm:$0xff]  ;;  %v7301_v9 = vpack.c.bf16 %v299_v6, %v292_v4  ;;  %v6070_v4 = vld [vmem:[%s10130_s1 + $0x424] sm:$0xf] }
  0xe8   : > { %v7287_v44 = vadd.f32 %v1782_v12, %v1734_v10  ;;  %v7305_v18 = vpack.c.bf16 %v301_v29, %v294_v14  ;;  %v5974_v29 = vld [vmem:[%s10130_s1 + $0x124] sm:$0xf]  ;;  %v5460_v6 = vld [vmem:[%s10130_s1 + $0x430] sm:$0xf0] }
  0xe9   : > { %v1687_v48 = vadd.f32 %v1686_v36, %v1638_v23  ;;  %2057 = vmatpush.bf16.msra.mxu1 %v5223_v63  ;;  %v5076_v63 = vld [vmem:[%s10130_s1 + $0x130] sm:$0xf0] }
  0xea   : > { %10282 = vst [vmem:[#allocation37_spill] sm:$0xff] %v7305_v18  ;;  %v5079_v14 = vor.u32 %v5974_v29, %v5076_v63  ;;  %v6006_v29 = vld [vmem:[%s10130_s1 + $0x224] sm:$0xf] }
  0xec   : > { %2009 = vmatpush.bf16.msra.mxu0 %v5079_v14 }
  0xed   : > { %v1735_v7 = vpop.f32.mrf.mxu2 }
  0xee   : > { %v1736_v10 = vadd.f32 %v1735_v7, %v1687_v48  ;;  %v1784_v12 = vpop.f32.mrf.mxu3  ;;  %v1640_v39 = vpop.f32.mrf.mxu0  ;;  %v5463_v7 = vor.u32 %v6070_v4, %v5460_v6  ;;  %v306_v6 = vld [vmem:[%s6759_s23 + $0x250] sm:$0xff] }
  0xef   : > { %v1641_v23 = vadd.f32 %v1640_v39, %v7110_v31  ;;  %v1689_v36 = vpop.f32.mrf.mxu1  ;;  %v5332_v39 = vld [vmem:[%s10130_s1 + $0x330] sm:$0xf0] }
  0xf0   : > { %v7308_v47 = vadd.f32 %v1784_v12, %v1736_v10  ;;  %v5335_v48 = vor.u32 %v6038_v0, %v5332_v39  ;;  %2156 = vmatpush.bf16.msra.mxu3 %v5463_v7 }
  0xf1   : > { %v1690_v34 = vadd.f32 %v1689_v36, %v1641_v23  ;;  %1835 = vmatmul.bf16.gmra.mxu0 %v7301_v9 }
  0xf2   : > { %1884 = vmatmul.bf16.gmra.mxu1 %v7303_v24  ;;  %5716 = vmatmul.msk.bf16.gmra.mxu2 %vm1586_vm0, %v7305_v18  ;;  %v315_v18 = vld [vmem:[%s6759_s23 + $0x298] sm:$0xff] }
  0xf3   : > { %1982 = vmatmul.bf16.gmra.mxu3 %v6948_v25  ;;  %2107 = vmatpush.bf16.msra.mxu2 %v5335_v48  ;;  %v307_v48 = vld [vmem:[%s6759_s23 + $0x258] sm:$0xff]  ;;  %v314_v25 = vld [vmem:[%s6759_s23 + $0x290] sm:$0xff] }
  0xf4   : > { %v7350_v58 = vpack.c.bf16 %v314_v25, %v307_v48  ;;  %v5316_v25 = vld [vmem:[%s10130_s1 + $0x310] sm:$0xf0] }
  0xf5   : > { %v1738_v49 = vpop.f32.mrf.mxu2 }
  0xf6   : > { %v1739_v10 = vadd.f32 %v1738_v49, %v1690_v34  ;;  %v1787_v12 = vpop.f32.mrf.mxu3  ;;  %v1642_v23 = vpop.f32.mrf.mxu0  ;;  %v5204_v34 = vld [vmem:[%s10130_s1 + $0x230] sm:$0xf0]  ;;  %v313_v49 = vld [vmem:[%s6759_s23 + $0x288] sm:$0xff]  ;;  %10283 = vst [vmem:[#allocation38_spill] sm:$0xff] %v7350_v58 }
  0xf7   : > { %v1643_v36 = vadd.f32 %v1642_v23, %v7110_v31  ;;  %v1691_v0 = vpop.f32.mrf.mxu1  ;;  %v5207_v4 = vor.u32 %v6006_v29, %v5204_v34  ;;  %v308_v23 = vld [vmem:[%s6759_s23 + $0x260] sm:$0xff]  ;;  %v7348_v7 = vpack.c.bf16 %v313_v49, %v306_v6  ;;  %v5444_v49 = vld [vmem:[%s10130_s1 + $0x410] sm:$0xf0] }
  0xf8   : > { %v7334_v39 = vadd.f32 %v1787_v12, %v1739_v10  ;;  %v7352_v52 = vpack.c.bf16 %v315_v18, %v308_v23  ;;  %v6034_v18 = vld [vmem:[%s10130_s1 + $0x304] sm:$0xf] }
  0xf9   : > { %v1692_v63 = vadd.f32 %v1691_v0, %v1643_v36  ;;  %2058 = vmatpush.bf16.msra.mxu1 %v5207_v4  ;;  %v5060_v4 = vld [vmem:[%s10130_s1 + $0x110] sm:$0xf0]  ;;  %v6066_v6 = vld [vmem:[%s10130_s1 + $0x404] sm:$0xf] }
  0xfa   : > { %10284 = vst [vmem:[#allocation39_spill] sm:$0xff] %v7352_v52 }
  0xfd   : > { %v1740_v14 = vpop.f32.mrf.mxu2 }
  0xfe   : > { %v1741_v10 = vadd.f32 %v1740_v14, %v1692_v63  ;;  %v1789_v12 = vpop.f32.mrf.mxu3  ;;  %v1645_v24 = vpop.f32.mrf.mxu0  ;;  %v5319_v63 = vor.u32 %v6034_v18, %v5316_v25  ;;  %v5447_v14 = vor.u32 %v6066_v6, %v5444_v49  ;;  %v320_v49 = vld [vmem:[%s6759_s23 + $0x2c0] sm:$0xff] }
  0xff   : > { %v1646_v36 = vadd.f32 %v1645_v24, %v7110_v31  ;;  %v1694_v0 = vpop.f32.mrf.mxu1  ;;  %v5970_v24 = vld [vmem:[%s10130_s1 + $0x104] sm:$0xf] }
 0x100   : > { %v7355_v29 = vadd.f32 %v1789_v12, %v1741_v10  ;;  %v5063_v23 = vor.u32 %v5970_v24, %v5060_v4  ;;  %2108 = vmatpush.bf16.msra.mxu2 %v5319_v63  ;;  %2157 = vmatpush.bf16.msra.mxu3 %v5447_v14  ;;  %v6002_v24 = vld [vmem:[%s10130_s1 + $0x204] sm:$0xf]  ;;  %v321_v63 = vld [vmem:[%s6759_s23 + $0x2c8] sm:$0xff] }
 0x101   : > { %v1695_v34 = vadd.f32 %v1694_v0, %v1646_v36  ;;  %1840 = vmatmul.bf16.gmra.mxu0 %v7348_v7 }
 0x102   : > { %1889 = vmatmul.bf16.gmra.mxu1 %v7350_v58  ;;  %5717 = vmatmul.msk.bf16.gmra.mxu2 %vm1586_vm0, %v7352_v52  ;;  %v329_v52 = vld [vmem:[%s6759_s23 + $0x308] sm:$0xff] }
 0x103   : > { %1987 = vmatmul.bf16.gmra.mxu3 %v6986_v53  ;;  %2010 = vmatpush.bf16.msra.mxu0 %v5063_v23  ;;  %v328_v53 = vld [vmem:[%s6759_s23 + $0x300] sm:$0xff] }
 0x104   : > { %v7397_v45 = vpack.c.bf16 %v328_v53, %v321_v63  ;;  %v5050_v53 = vld [vmem:[%s10130_s1 + $0xe8] sm:$0xf] }
 0x105   : > { %v1743_v48 = vpop.f32.mrf.mxu2 }
 0x106   : > { %v1744_v10 = vadd.f32 %v1743_v48, %v1695_v34  ;;  %v1792_v12 = vpop.f32.mrf.mxu3  ;;  %v1647_v36 = vpop.f32.mrf.mxu0  ;;  %v5188_v34 = vld [vmem:[%s10130_s1 + $0x210] sm:$0xf0]  ;;  %v327_v48 = vld [vmem:[%s6759_s23 + $0x2f8] sm:$0xff]  ;;  %10286 = vst [vmem:[#allocation41_spill] sm:$0xff] %v7397_v45 }
 0x107   : > { %v1648_v0 = vadd.f32 %v1647_v36, %v7110_v31  ;;  %v1696_v18 = vpop.f32.mrf.mxu1  ;;  %v5191_v6 = vor.u32 %v6002_v24, %v5188_v34  ;;  %v322_v36 = vld [vmem:[%s6759_s23 + $0x2d0] sm:$0xff]  ;;  %v7395_v14 = vpack.c.bf16 %v327_v48, %v320_v49  ;;  %v5178_v49 = vld [vmem:[%s10130_s1 + $0x1e8] sm:$0xf]  ;;  %v6001_v48 = vld [vmem:[%s10130_s1 + $0x1f4] sm:$0xf0] }
 0x108   : > { %v7381_v25 = vadd.f32 %v1792_v12, %v1744_v10  ;;  %v7399_v38 = vpack.c.bf16 %v329_v52, %v322_v36  ;;  %v5969_v52 = vld [vmem:[%s10130_s1 + $0xf4] sm:$0xf0] }
 0x109   : > { %v1697_v4 = vadd.f32 %v1696_v18, %v1648_v0  ;;  %2059 = vmatpush.bf16.msra.mxu1 %v5191_v6  ;;  %10285 = vst [vmem:[#allocation40_spill] sm:$0xff] %v7395_v14  ;;  %v5684_v6 = vld [vmem:[%s10130_s1 + $0x5f0] sm:$0xf0] }
 0x10a   : > { %10287 = vst [vmem:[#allocation42_spill] sm:$0xff] %v7399_v38 }
 0x10d   : > { %v1745_v23 = vpop.f32.mrf.mxu2 }
 0x10e   : > { %v1746_v10 = vadd.f32 %v1745_v23, %v1697_v4  ;;  %v1794_v12 = vpop.f32.mrf.mxu3  ;;  %v1650_v58 = vpop.f32.mrf.mxu0  ;;  %v5051_v4 = vor.u32 %v5969_v52, %v5050_v53  ;;  %v5179_v23 = vor.u32 %v6001_v48, %v5178_v49 }
 0x10f   : > { %v1651_v0 = vadd.f32 %v1650_v58, %v7110_v31  ;;  %v1699_v18 = vpop.f32.mrf.mxu1  ;;  %v6126_v58 = vld [vmem:[%s10130_s1 + $0x5e4] sm:$0xf] }
 0x110   : > { %v7402_v24 = vadd.f32 %v1794_v12, %v1746_v10  ;;  %v5687_v36 = vor.u32 %v6126_v58, %v5684_v6  ;;  %2297 = vmatpush.bf16.msrb.mxu2 %v5051_v4  ;;  %2346 = vmatpush.bf16.msrb.mxu3 %v5179_v23  ;;  %v336_v58 = vld [vmem:[%s6759_s23 + $0x340] sm:$0xff]  ;;  %v343_v6 = vld [vmem:[%s6759_s23 + $0x378] sm:$0xff] }
 0x111   : > { %v1700_v34 = vadd.f32 %v1699_v18, %v1651_v0  ;;  %1845 = vmatmul.bf16.gmra.mxu0 %v7395_v14 }
 0x112   : > { %1894 = vmatmul.bf16.gmra.mxu1 %v7397_v45  ;;  %5718 = vmatmul.msk.bf16.gmra.mxu2 %vm1586_vm0, %v7399_v38  ;;  %v334_v38 = vld [vmem:[%s6759_s23 + $0x330] sm:$0xff]  ;;  %v341_v45 = vld [vmem:[%s6759_s23 + $0x368] sm:$0xff] }
 0x113   : > { %1992 = vmatmul.bf16.gmra.mxu3 %v7024_v15  ;;  %2199 = vmatpush.bf16.msrb.mxu0 %v5687_v36  ;;  %v7436_v48 = vpack.c.bf16 %v341_v45, %v334_v38 }
 0x115   : > { %v1748_v63 = vpop.f32.mrf.mxu2  ;;  %10288 = vst [vmem:[#allocation43_spill] sm:$0xff] %v7436_v48 }
 0x116   : > { %v1749_v10 = vadd.f32 %v1748_v63, %v1700_v34  ;;  %v1797_v12 = vpop.f32.mrf.mxu3  ;;  %v1652_v0 = vpop.f32.mrf.mxu0 }
 0x117   : > { %v1653_v18 = vadd.f32 %v1652_v0, %v7110_v31  ;;  %v1701_v53 = vpop.f32.mrf.mxu1  ;;  %v7440_v0 = vpack.c.bf16 %v343_v6, %v336_v58 }
 0x118   : > { %v7428_v52 = vadd.f32 %v1797_v12, %v1749_v10 }
 0x119   : > { %v1702_v15 = vadd.f32 %v1701_v53, %v1653_v18  ;;  %10290 = vst [vmem:[#allocation45_spill] sm:$0xff] %v7440_v0 }
 0x11d   : > { %v1750_v49 = vpop.f32.mrf.mxu2 }
 0x11e   : > { %v1751_v34 = vadd.f32 %v1750_v49, %v1702_v15  ;;  %v1799_v63 = vpop.f32.mrf.mxu3  ;;  %v1655_v4 = vpop.f32.mrf.mxu0 }
 0x11f   : > { %v1656_v36 = vadd.f32 %v1655_v4, %v7110_v31  ;;  %v1704_v23 = vpop.f32.mrf.mxu1  ;;  %v6130_v4 = vld [vmem:[%s10130_s1 + $0x604] sm:$0xf] }
 0x120   : > { %v7443_v10 = vadd.f32 %v1799_v63, %v1751_v34 }
 0x121   : > { %v1705_v12 = vadd.f32 %v1704_v23, %v1656_v36  ;;  %1850 = vmatmul.bf16.gmra.mxu0 %v7436_v48  ;;  %v5700_v36 = vld [vmem:[%s10130_s1 + $0x610] sm:$0xf0] }
 0x122   : > { %1899 = vmatmul.bf16.gmra.mxu1 %v7438_v61  ;;  %5719 = vmatmul.msk.bf16.gmra.mxu2 %vm1586_vm0, %v7440_v0 }
 0x123   : > { %1997 = vmatmul.bf16.gmra.mxu3 %v7068_v59 }
 0x125   : > { %v1753_v45 = vpop.f32.mrf.mxu2 }
 0x126   : > { %v1754_v15 = vadd.f32 %v1753_v45, %v1705_v12  ;;  %v1802_v62 = vpop.f32.mrf.mxu3  ;;  %v1657_v37 = vpop.f32.mrf.mxu0 }
 0x127   : > { %v1658_v38 = vadd.f32 %v1657_v37, %v7110_v31  ;;  %v1706_v18 = vpop.f32.mrf.mxu1  ;;  %v5703_v31 = vor.u32 %v6130_v4, %v5700_v36  ;;  %v5668_v4 = vld [vmem:[%s10130_s1 + $0x5d0] sm:$0xf0]  ;;  %v5162_v36 = vld [vmem:[%s10130_s1 + $0x1c8] sm:$0xf] }
 0x128   : > { %v7451_v53 = vadd.f32 %v1802_v62, %v1754_v15 }
 0x129   : > { %v1707_v58 = vadd.f32 %v1706_v18, %v1658_v38  ;;  %2255 = vmatpush.bf16.msrb.mxu1 %v5703_v31 }
 0x12d   : > { %v1755_v6 = vpop.f32.mrf.mxu2 }
 0x12e   : > { %v1756_v49 = vadd.f32 %v1755_v6, %v1707_v58  ;;  %v1804_v34 = vpop.f32.mrf.mxu3  ;;  %v1816_v63 = vpop.f32.mrf.mxu0  ;;  %v5965_v58 = vld [vmem:[%s10130_s1 + $0xd4] sm:$0xf0]  ;;  %v6122_v6 = vld [vmem:[%s10130_s1 + $0x5c4] sm:$0xf] }
 0x12f   : > { %v1817_v23 = vadd.f32 %v1816_v63, %v7146_v13  ;;  %v1865_v12 = vpop.f32.mrf.mxu1  ;;  %v5034_v13 = vld [vmem:[%s10130_s1 + $0xc8] sm:$0xf]  ;;  %v5671_v31 = vor.u32 %v6122_v6, %v5668_v4 }
 0x130   : > { %v7460_v45 = vadd.f32 %v1804_v34, %v1756_v49  ;;  %v5035_v63 = vor.u32 %v5965_v58, %v5034_v13  ;;  %v6118_v13 = vld [vmem:[%s10130_s1 + $0x5a4] sm:$0xf]  ;;  %v5652_v58 = vld [vmem:[%s10130_s1 + $0x5b0] sm:$0xf0]  ;;  %v5146_v6 = vld [vmem:[%s10130_s1 + $0x1a8] sm:$0xf] }
 0x131   : > { %v1866_v15 = vadd.f32 %v1865_v12, %v1817_v23  ;;  %2011 = vmatmul.bf16.vlgmr.msra.gmra.mxu0 %v6781_v50  ;;  %v5997_v23 = vld [vmem:[%s10130_s1 + $0x1d4] sm:$0xf0] }
 0x132   : > { %2060 = vmatmul.bf16.vlgmr.msra.gmra.mxu1 %v6783_v51  ;;  %2109 = vmatmul.bf16.vlgmr.msra.gmra.mxu2 %v6790_v55 }
 0x133   : > { %2158 = vmatmul.bf16.vlgmr.msra.gmra.mxu3 %v7115_v35  ;;  %2298 = vmatpush.bf16.msrb.mxu2 %v5035_v63  ;;  %v5655_v63 = vor.u32 %v6118_v13, %v5652_v58 }
 0x134   : > { %2200 = vmatpush.bf16.msrb.mxu0 %v5671_v31 }
 0x135   : > { %v1914_v62 = vpop.f32.mrf.mxu2 }
 0x136   : > { %v1915_v37 = vadd.f32 %v1914_v62, %v1866_v15  ;;  %v7466_v38 = vpop.f32.mrf.mxu3  ;;  %v1818_v18 = vpop.f32.mrf.mxu0  ;;  %v5163_v15 = vor.u32 %v5997_v23, %v5162_v36 }
 0x137   : > { %v1819_v49 = vadd.f32 %v1818_v18, %v7167_v5  ;;  %v1867_v34 = vpop.f32.mrf.mxu1  ;;  %v5018_v5 = vld [vmem:[%s10130_s1 + $0xa8] sm:$0xf]  ;;  %v5961_v18 = vld [vmem:[%s10130_s1 + $0xb4] sm:$0xf0] }
 0x138   : > { %v5744_v12 = vmul.f32 -1.442695, %v1915_v37  ;;  %2347 = vmatpush.bf16.msrb.mxu3 %v5163_v15  ;;  %v5019_v37 = vor.u32 %v5961_v18, %v5018_v5  ;;  %2201 = vmatpush.bf16.msrb.mxu0 %v5655_v63 }
 0x139   : > { %v1868_v62 = vadd.f32 %v1867_v34, %v1819_v49  ;;  %v5993_v49 = vld [vmem:[%s10130_s1 + $0x1b4] sm:$0xf0] }
 0x13a   : > { %6176 = vpow2.f32 %v5744_v12  ;;  %v5147_v4 = vor.u32 %v5993_v49, %v5146_v6  ;;  %2299 = vmatpush.bf16.msrb.mxu2 %v5019_v37 }
 0x13c   : > { %2348 = vmatpush.bf16.msrb.mxu3 %v5147_v4 }
 0x13d   : > { %v1916_v34 = vpop.f32.mrf.mxu2 }
 0x13e   : > { %v1917_v36 = vadd.f32 %v1916_v34, %v1868_v62  ;;  %v7505_v23 = vpop.f32.mrf.mxu3  ;;  %v1821_v12 = vpop.f32.mrf.mxu0 }
 0x13f   : > { %v1822_v31 = vadd.f32 %v1821_v12, %v7193_v43  ;;  %v1870_v15 = vpop.f32.mrf.mxu1 }
 0x140   : > { %v6177_v5 = vpop.eup %6176  ;;  %v5748_v18 = vmul.f32 -1.442695, %v1917_v36 }
 0x141   : > { %v7508_v35 = vadd.f32 1.0, %v6177_v5  ;;  %v1871_v55 = vadd.f32 %v1870_v15, %v1822_v31  ;;  %2016 = vmatmul.bf16.gmra.mxu0 %v6836_v19  ;;  %v6114_v5 = vld [vmem:[%s10130_s1 + $0x584] sm:$0xf] }
 0x142   : > { %6178 = vpow2.f32 %v5748_v18  ;;  %2065 = vmatmul.bf16.gmra.mxu1 %v6838_v20  ;;  %2114 = vmatmul.bf16.gmra.mxu2 %v6840_v21  ;;  %v5636_v18 = vld [vmem:[%s10130_s1 + $0x590] sm:$0xf0] }
 0x143   : > { %6180 = vrcp.f32 %v7508_v35  ;;  %2163 = vmatmul.bf16.gmra.mxu3 %v7160_v46  ;;  %vm3244_vm2 = vweird.f32 %v7508_v35 }
 0x145   : > { %v1919_v43 = vpop.f32.mrf.mxu2 }
 0x146   : > { %v1920_v62 = vadd.f32 %v1919_v43, %v1871_v55  ;;  %v7515_v13 = vpop.f32.mrf.mxu3  ;;  %v1823_v37 = vpop.f32.mrf.mxu0  ;;  %v5002_v55 = vld [vmem:[%s10130_s1 + $0x88] sm:$0xf] }
 0x147   : > { %v1824_v58 = vadd.f32 %v1823_v37, %v7214_v33  ;;  %v1872_v6 = vpop.f32.mrf.mxu1  ;;  %v5957_v33 = vld [vmem:[%s10130_s1 + $0x94] sm:$0xf0]  ;;  %v5130_v37 = vld [vmem:[%s10130_s1 + $0x188] sm:$0xf] }
 0x148   : > { %v6179_v49 = vpop.eup %6178  ;;  %v5752_v34 = vmul.f32 -1.442695, %v1920_v62  ;;  %v5003_v15 = vor.u32 %v5957_v33, %v5002_v55  ;;  %v5639_v62 = vor.u32 %v6114_v5, %v5636_v18 }
 0x149   : > { %v7518_v63 = vpop.eup %6180  ;;  %v7520_v4 = vadd.f32 1.0, %v6179_v49  ;;  %v1873_v36 = vadd.f32 %v1872_v6, %v1824_v58  ;;  %v5989_v58 = vld [vmem:[%s10130_s1 + $0x194] sm:$0xf0] }
 0x14a   : > { %v3240_v12 = vmul.f32 %v7518_v63, %v7508_v35  ;;  %6182 = vpow2.f32 %v5752_v34  ;;  %2300 = vmatpush.bf16.msrb.mxu2 %v5003_v15  ;;  %2202 = vmatpush.bf16.msrb.mxu0 %v5639_v62  ;;  %vm3245_vm1 = vweird.f32 %v7518_v63  ;;  %v3248_v62 = vand.u32 2147483647, %v7508_v35 }
 0x14b   : > { %6184 = vrcp.f32 %v7520_v4  ;;  %v3310_v15 = vand.u32 2147483648, %v7520_v4  ;;  %vm7564_vm4 = vmor %vm3244_vm2, %vm3245_vm1  ;;  %vm3304_vm5 = vweird.f32 %v7520_v4 }
 0x14c   : > { %v3241_v31 = vsub.f32 1.0, %v3240_v12  ;;  %v5131_v12 = vor.u32 %v5989_v58, %v5130_v37  ;;  %vm3249_vm6 = vcmp.eq.f32.partialorder %v3248_v62, 8.507059e+37 }
 0x14d   : > { %v1921_v43 = vpop.f32.mrf.mxu2 }
 0x14e   : > { %v1922_v6 = vadd.f32 %v1921_v43, %v1873_v36  ;;  %v7543_v49 = vpop.f32.mrf.mxu3  ;;  %v1826_v34 = vpop.f32.mrf.mxu0  ;;  %v3242_v5 = vmul.f32 %v7518_v63, %v3241_v31  ;;  %2349 = vmatpush.bf16.msrb.mxu3 %v5131_v12  ;;  %v3308_v12 = vand.u32 2147483647, %v7520_v4 }
 0x14f   : > { %v1827_v55 = vadd.f32 %v1826_v34, %v7240_v30  ;;  %v1875_v33 = vpop.f32.mrf.mxu1  ;;  %v3250_v30 = vand.u32 2147483648, %v7508_v35 }
 0x150   : > { %v6183_v46 = vpop.eup %6182  ;;  %v5756_v18 = vmul.f32 -1.442695, %v1922_v6  ;;  %v3243_v31 = vadd.f32 %v7518_v63, %v3242_v5  ;;  %vm3309_vm8 = vcmp.eq.f32.partialorder %v3308_v12, 8.507059e+37  ;;  %v5985_v12 = vld [vmem:[%s10130_s1 + $0x174] sm:$0xf0] }
 0x151   : > { %v6185_v21 = vpop.eup %6184  ;;  %v7547_v20 = vadd.f32 1.0, %v6183_v46  ;;  %v1876_v51 = vadd.f32 %v1875_v33, %v1827_v55  ;;  %2021 = vmatmul.bf16.gmra.mxu0 %v6874_v40  ;;  %v3251_v33 = vor.u32 1.1754944e-38, %v3250_v30  ;;  %v3311_v30 = vor.u32 1.1754944e-38, %v3310_v15  ;;  %v6110_v15 = vld [vmem:[%s10130_s1 + $0x564] sm:$0xf] }
 0x152   : > { %v3300_v36 = vmul.f32 %v6185_v21, %v7520_v4  ;;  %6186 = vpow2.f32 %v5756_v18  ;;  %2070 = vmatmul.bf16.gmra.mxu1 %v6876_v41  ;;  %2119 = vmatmul.bf16.gmra.mxu2 %v6878_v42  ;;  %vm3305_vm3 = vweird.f32 %v6185_v21 }
 0x153   : > { %6188 = vrcp.f32 %v7547_v20  ;;  %2168 = vmatmul.bf16.gmra.mxu3 %v7207_v11  ;;  %vm3306_vm7 = vmor %vm3304_vm5, %vm3305_vm3  ;;  %vm3364_vm10 = vweird.f32 %v7547_v20 }
 0x154   : > { %v3301_v46 = vsub.f32 1.0, %v3300_v36 }
 0x155   : > { %v1924_v43 = vpop.f32.mrf.mxu2 }
 0x156   : > { %v3302_v37 = vmul.f32 %v6185_v21, %v3301_v46  ;;  %v1925_v58 = vadd.f32 %v1924_v43, %v1876_v51  ;;  %v7561_v6 = vpop.f32.mrf.mxu3  ;;  %v1828_v34 = vpop.f32.mrf.mxu0  ;;  %v3247_v51 = vsel %vm7564_vm4, %v7518_v63, %v3243_v31  ;;  %v4986_v63 = vld [vmem:[%s10130_s1 + $0x68] sm:$0xf]  ;;  %v5953_v31 = vld [vmem:[%s10130_s1 + $0x74] sm:$0xf0] }
 0x157   : > { %v1829_v5 = vadd.f32 %v1828_v34, %v7261_v32  ;;  %v1877_v18 = vpop.f32.mrf.mxu1  ;;  %v7590_v62 = vsel %vm3249_vm6, %v3251_v33, %v3247_v51  ;;  %v5114_v34 = vld [vmem:[%s10130_s1 + $0x168] sm:$0xf] }
 0x158   : > { %v6187_v36 = vpop.eup %6186  ;;  %v5760_v35 = vmul.f32 -1.442695, %v1925_v58  ;;  %v3303_v46 = vadd.f32 %v6185_v21, %v3302_v37  ;;  %10293 = vst [vmem:[#allocation46_spill] sm:$0xff] %v7590_v62  ;;  %v5620_v58 = vld [vmem:[%s10130_s1 + $0x570] sm:$0xf0] }
 0x159   : > { %v7573_v43 = vpop.eup %6188  ;;  %v7575_v11 = vadd.f32 1.0, %v6187_v36  ;;  %v1878_v42 = vadd.f32 %v1877_v18, %v1829_v5  ;;  %v5623_v5 = vor.u32 %v6110_v15, %v5620_v58  ;;  %v5115_v18 = vor.u32 %v5985_v12, %v5114_v34 }
 0x15a   : > { %v3360_v32 = vmul.f32 %v7573_v43, %v7547_v20  ;;  %6190 = vpow2.f32 %v5760_v35  ;;  %v3307_v4 = vsel %vm3306_vm7, %v6185_v21, %v3303_v46  ;;  %v4987_v21 = vor.u32 %v5953_v31, %v4986_v63 }
 0x15b   : > { %6192 = vrcp.f32 %v7575_v11  ;;  %v7592_v37 = vsel %vm3309_vm8, %v3311_v30, %v3307_v4  ;;  %2203 = vmatpush.bf16.msrb.mxu0 %v5623_v5  ;;  %2350 = vmatpush.bf16.msrb.mxu3 %v5115_v18  ;;  %vm3365_vm9 = vweird.f32 %v7573_v43  ;;  %v3370_v34 = vand.u32 2147483648, %v7547_v20 }
 0x15c   : > { %10294 = vst [vmem:[#allocation47_spill] sm:$0xff] %v7592_v37  ;;  %v3361_v36 = vsub.f32 1.0, %v3360_v32  ;;  %2301 = vmatpush.bf16.msrb.mxu2 %v4987_v21  ;;  %v3430_v12 = vand.u32 2147483648, %v7575_v11  ;;  %vm7627_vm12 = vmor %vm3364_vm10, %vm3365_vm9  ;;  %vm3424_vm14 = vweird.f32 %v7575_v11 }
 0x15d   : > { %v1926_v33 = vpop.f32.mrf.mxu2 }
 0x15e   : > { %v1927_v35 = vadd.f32 %v1926_v33, %v1878_v42  ;;  %v7605_v51 = vpop.f32.mrf.mxu3  ;;  %v1831_v46 = vpop.f32.mrf.mxu0  ;;  %v3362_v41 = vmul.f32 %v7573_v43, %v3361_v36 }
 0x15f   : > { %v1832_v30 = vadd.f32 %v1831_v46, %v7287_v44  ;;  %v1880_v4 = vpop.f32.mrf.mxu1  ;;  %v3368_v44 = vand.u32 2147483647, %v7547_v20 }
 0x160   : > { %v6191_v63 = vpop.eup %6190  ;;  %v5764_v31 = vmul.f32 -1.442695, %v1927_v35  ;;  %v3363_v32 = vadd.f32 %v7573_v43, %v3362_v41  ;;  %v3428_v35 = vand.u32 2147483647, %v7575_v11 }
 0x161   : > { %v6193_v59 = vpop.eup %6192  ;;  %v7609_v55 = vadd.f32 1.0, %v6191_v63  ;;  %v1881_v15 = vadd.f32 %v1880_v4, %v1832_v30  ;;  %2026 = vmatmul.bf16.gmra.mxu0 %v6912_v1  ;;  %vm7631_vm13 = vcmp.eq.f32.partialorder %v3368_v44, 8.507059e+37  ;;  %v3431_v44 = vor.u32 1.1754944e-38, %v3430_v12 }
 0x162   : > { %6194 = vpow2.f32 %v5764_v31  ;;  %2075 = vmatmul.bf16.gmra.mxu1 %v6914_v2  ;;  %2124 = vmatmul.bf16.gmra.mxu2 %v6916_v3  ;;  %v3420_v42 = vmul.f32 %v6193_v59, %v7575_v11  ;;  %vm3425_vm11 = vweird.f32 %v6193_v59  ;;  %v3367_v31 = vsel %vm7627_vm12, %v7573_v43, %v3363_v32  ;;  %v4970_v11 = vld [vmem:[%s10130_s1 + $0x48] sm:$0xf]  ;;  %v5949_v43 = vld [vmem:[%s10130_s1 + $0x54] sm:$0xf0]  ;;  %v6106_v32 = vld [vmem:[%s10130_s1 + $0x544] sm:$0xf] }
 0x163   : > { %6196 = vrcp.f32 %v7609_v55  ;;  %2173 = vmatmul.bf16.gmra.mxu3 %v7254_v8  ;;  %vm3426_vm15 = vmor %vm3424_vm14, %vm3425_vm11  ;;  %vm3429_vm1 = vcmp.eq.f32.partialorder %v3428_v35, 8.507059e+37  ;;  %v4971_v12 = vor.u32 %v5949_v43, %v4970_v11  ;;  %v5098_v35 = vld [vmem:[%s10130_s1 + $0x148] sm:$0xf]  ;;  %vm3484_vm3 = vweird.f32 %v7609_v55 }
 0x164   : > { %v3421_v21 = vsub.f32 1.0, %v3420_v42 }
 0x165   : > { %v1929_v58 = vpop.f32.mrf.mxu2  ;;  %2302 = vmatpush.bf16.msrb.mxu2 %v4971_v12 }
 0x166   : > { %v1930_v33 = vadd.f32 %v1929_v58, %v1881_v15  ;;  %v7623_v5 = vpop.f32.mrf.mxu3  ;;  %v1833_v18 = vpop.f32.mrf.mxu0  ;;  %v3422_v36 = vmul.f32 %v6193_v59, %v3421_v21  ;;  %v3371_v58 = vor.u32 1.1754944e-38, %v3370_v34 }
 0x167   : > { %v1834_v41 = vadd.f32 %v1833_v18, %v7308_v47  ;;  %v1882_v46 = vpop.f32.mrf.mxu1 }
 0x168   : > { %v6195_v20 = vpop.eup %6194  ;;  %v5768_v63 = vmul.f32 -1.442695, %v1930_v33  ;;  %v3423_v15 = vadd.f32 %v6193_v59, %v3422_v36  ;;  %v7658_v34 = vsel %vm7631_vm13, %v3371_v58, %v3367_v31  ;;  %v5604_v36 = vld [vmem:[%s10130_s1 + $0x550] sm:$0xf0] }
 0x169   : > { %v7639_v42 = vpop.eup %6196  ;;  %v7641_v47 = vadd.f32 1.0, %v6195_v20  ;;  %v1883_v21 = vadd.f32 %v1882_v46, %v1834_v41  ;;  %10299 = vst [vmem:[#allocation48_spill] sm:$0xff] %v7658_v34  ;;  %v5981_v41 = vld [vmem:[%s10130_s1 + $0x154] sm:$0xf0]  ;;  %v5607_v4 = vor.u32 %v6106_v32, %v5604_v36 }
 0x16a   : > { %v3480_v18 = vmul.f32 %v7639_v42, %v7609_v55  ;;  %6198 = vpow2.f32 %v5768_v63  ;;  %v3427_v33 = vsel %vm3426_vm15, %v6193_v59, %v3423_v15  ;;  %v5099_v20 = vor.u32 %v5981_v41, %v5098_v35 }
 0x16b   : > { %6200 = vrcp.f32 %v7641_v47  ;;  %v7660_v59 = vsel %vm3429_vm1, %v3431_v44, %v3427_v33  ;;  %2204 = vmatpush.bf16.msrb.mxu0 %v5607_v4  ;;  %vm3485_vm2 = vweird.f32 %v7639_v42  ;;  %v3490_v35 = vand.u32 2147483648, %v7609_v55 }
 0x16c   : > { %10300 = vst [vmem:[#allocation49_spill] sm:$0xff] %v7660_v59  ;;  %v3481_v63 = vsub.f32 1.0, %v3480_v18  ;;  %2351 = vmatpush.bf16.msrb.mxu3 %v5099_v20  ;;  %v3550_v41 = vand.u32 2147483648, %v7641_v47  ;;  %vm7695_vm5 = vmor %vm3484_vm3, %vm3485_vm2  ;;  %vm3544_vm7 = vweird.f32 %v7641_v47 }
 0x16d   : > { %v1931_v30 = vpop.f32.mrf.mxu2 }
 0x16e   : > { %v1932_v31 = vadd.f32 %v1931_v30, %v1883_v21  ;;  %v7673_v15 = vpop.f32.mrf.mxu3  ;;  %v1836_v58 = vpop.f32.mrf.mxu0  ;;  %v3482_v62 = vmul.f32 %v7639_v42, %v3481_v63  ;;  %v3488_v21 = vand.u32 2147483647, %v7609_v55 }
 0x16f   : > { %v1837_v44 = vadd.f32 %v1836_v58, %v7334_v39  ;;  %v1885_v33 = vpop.f32.mrf.mxu1 }
 0x170   : > { %v6199_v11 = vpop.eup %6198  ;;  %v5772_v43 = vmul.f32 -1.442695, %v1932_v31  ;;  %v3483_v18 = vadd.f32 %v7639_v42, %v3482_v62  ;;  %v3548_v31 = vand.u32 2147483647, %v7641_v47  ;;  %vm7699_vm6 = vcmp.eq.f32.partialorder %v3488_v21, 8.507059e+37 }
 0x171   : > { %v6201_v37 = vpop.eup %6200  ;;  %v7677_v46 = vadd.f32 1.0, %v6199_v11  ;;  %v1886_v32 = vadd.f32 %v1885_v33, %v1837_v44  ;;  %2031 = vmatmul.bf16.gmra.mxu0 %v6950_v26  ;;  %v3551_v21 = vor.u32 1.1754944e-38, %v3550_v41 }
 0x172   : > { %6202 = vpow2.f32 %v5772_v43  ;;  %2080 = vmatmul.bf16.gmra.mxu1 %v6952_v27  ;;  %2129 = vmatmul.bf16.gmra.mxu2 %v6954_v28  ;;  %v3540_v39 = vmul.f32 %v6201_v37, %v7641_v47  ;;  %vm3545_vm4 = vweird.f32 %v6201_v37  ;;  %v3487_v43 = vsel %vm7695_vm5, %v7639_v42, %v3483_v18  ;;  %v4954_v42 = vld [vmem:[%s10130_s1 + $0x28] sm:$0xf]  ;;  %v5945_v47 = vld [vmem:[%s10130_s1 + $0x34] sm:$0xf0]  ;;  %v6102_v18 = vld [vmem:[%s10130_s1 + $0x524] sm:$0xf] }
 0x173   : > { %6204 = vrcp.f32 %v7677_v46  ;;  %2178 = vmatmul.bf16.gmra.mxu3 %v7301_v9  ;;  %vm3546_vm8 = vmor %vm3544_vm7, %vm3545_vm4  ;;  %vm3549_vm9 = vcmp.eq.f32.partialorder %v3548_v31, 8.507059e+37  ;;  %v4955_v41 = vor.u32 %v5945_v47, %v4954_v42  ;;  %v5082_v31 = vld [vmem:[%s10130_s1 + $0x128] sm:$0xf]  ;;  %vm3604_vm11 = vweird.f32 %v7677_v46 }
 0x174   : > { %v3541_v12 = vsub.f32 1.0, %v3540_v39 }
 0x175   : > { %v1934_v36 = vpop.f32.mrf.mxu2  ;;  %2303 = vmatpush.bf16.msrb.mxu2 %v4955_v41 }
 0x176   : > { %v1935_v30 = vadd.f32 %v1934_v36, %v1886_v32  ;;  %v7691_v4 = vpop.f32.mrf.mxu3  ;;  %v1838_v20 = vpop.f32.mrf.mxu0  ;;  %v3542_v63 = vmul.f32 %v6201_v37, %v3541_v12  ;;  %v3491_v36 = vor.u32 1.1754944e-38, %v3490_v35 }
 0x177   : > { %v1839_v62 = vadd.f32 %v1838_v20, %v7355_v29  ;;  %v1887_v58 = vpop.f32.mrf.mxu1 }
 0x178   : > { %v6203_v55 = vpop.eup %6202  ;;  %v5776_v11 = vmul.f32 -1.442695, %v1935_v30  ;;  %v3543_v32 = vadd.f32 %v6201_v37, %v3542_v63  ;;  %v7726_v35 = vsel %vm7699_vm6, %v3491_v36, %v3487_v43  ;;  %v5588_v63 = vld [vmem:[%s10130_s1 + $0x530] sm:$0xf0] }
 0x179   : > { %v7707_v39 = vpop.eup %6204  ;;  %v7709_v29 = vadd.f32 1.0, %v6203_v55  ;;  %v1888_v12 = vadd.f32 %v1887_v58, %v1839_v62  ;;  %10305 = vst [vmem:[#allocation50_spill] sm:$0xff] %v7726_v35  ;;  %v5977_v62 = vld [vmem:[%s10130_s1 + $0x134] sm:$0xf0]  ;;  %v5591_v33 = vor.u32 %v6102_v18, %v5588_v63 }
 0x17a   : > { %v3600_v20 = vmul.f32 %v7707_v39, %v7677_v46  ;;  %6206 = vpow2.f32 %v5776_v11  ;;  %v3547_v30 = vsel %vm3546_vm8, %v6201_v37, %v3543_v32  ;;  %v5083_v55 = vor.u32 %v5977_v62, %v5082_v31 }
 0x17b   : > { %6208 = vrcp.f32 %v7709_v29  ;;  %v7728_v37 = vsel %vm3549_vm9, %v3551_v21, %v3547_v30  ;;  %2205 = vmatpush.bf16.msrb.mxu0 %v5591_v33  ;;  %vm3605_vm10 = vweird.f32 %v7707_v39  ;;  %v3610_v31 = vand.u32 2147483648, %v7677_v46 }
 0x17c   : > { %10306 = vst [vmem:[#allocation51_spill] sm:$0xff] %v7728_v37  ;;  %v3601_v11 = vsub.f32 1.0, %v3600_v20  ;;  %2352 = vmatpush.bf16.msrb.mxu3 %v5083_v55  ;;  %v3670_v62 = vand.u32 2147483648, %v7709_v29  ;;  %vm7763_vm13 = vmor %vm3604_vm11, %vm3605_vm10  ;;  %vm3664_vm15 = vweird.f32 %v7709_v29 }
 0x17d   : > { %v1936_v44 = vpop.f32.mrf.mxu2 }
 0x17e   : > { %v1937_v43 = vadd.f32 %v1936_v44, %v1888_v12  ;;  %v7741_v32 = vpop.f32.mrf.mxu3  ;;  %v1841_v36 = vpop.f32.mrf.mxu0  ;;  %v3602_v34 = vmul.f32 %v7707_v39, %v3601_v11  ;;  %v3608_v12 = vand.u32 2147483647, %v7677_v46 }
 0x17f   : > { %v1842_v21 = vadd.f32 %v1841_v36, %v7381_v25  ;;  %v1890_v30 = vpop.f32.mrf.mxu1 }
 0x180   : > { %v6207_v42 = vpop.eup %6206  ;;  %v5780_v47 = vmul.f32 -1.442695, %v1937_v43  ;;  %v3603_v20 = vadd.f32 %v7707_v39, %v3602_v34  ;;  %v3668_v43 = vand.u32 2147483647, %v7709_v29  ;;  %vm7767_vm14 = vcmp.eq.f32.partialorder %v3608_v12, 8.507059e+37 }
 0x181   : > { %v6209_v59 = vpop.eup %6208  ;;  %v7745_v58 = vadd.f32 1.0, %v6207_v42  ;;  %v1891_v18 = vadd.f32 %v1890_v30, %v1842_v21  ;;  %2036 = vmatmul.bf16.gmra.mxu0 %v6988_v54  ;;  %v3671_v12 = vor.u32 1.1754944e-38, %v3670_v62 }
 0x182   : > { %6210 = vpow2.f32 %v5780_v47  ;;  %2085 = vmatmul.bf16.gmra.mxu1 %v6990_v56  ;;  %2134 = vmatmul.bf16.gmra.mxu2 %v6992_v57  ;;  %v3660_v25 = vmul.f32 %v6209_v59, %v7709_v29  ;;  %vm3665_vm12 = vweird.f32 %v6209_v59  ;;  %v3607_v47 = vsel %vm7763_vm13, %v7707_v39, %v3603_v20  ;;  %v4938_v39 = vld [vmem:[%s10130_s1 + $0x8] sm:$0xf]  ;;  %v5941_v29 = vld [vmem:[%s10130_s1 + $0x14] sm:$0xf0]  ;;  %v6098_v20 = vld [vmem:[%s10130_s1 + $0x504] sm:$0xf] }
 0x183   : > { %6212 = vrcp.f32 %v7745_v58  ;;  %2183 = vmatmul.bf16.gmra.mxu3 %v7348_v7  ;;  %vm3666_vm1 = vmor %vm3664_vm15, %vm3665_vm12  ;;  %vm3669_vm2 = vcmp.eq.f32.partialorder %v3668_v43, 8.507059e+37  ;;  %v4939_v62 = vor.u32 %v5941_v29, %v4938_v39  ;;  %v5066_v43 = vld [vmem:[%s10130_s1 + $0x108] sm:$0xf]  ;;  %vm3724_vm4 = vweird.f32 %v7745_v58 }
 0x184   : > { %v3661_v41 = vsub.f32 1.0, %v3660_v25 }
 0x185   : > { %v1939_v63 = vpop.f32.mrf.mxu2  ;;  %2304 = vmatpush.bf16.msrb.mxu2 %v4939_v62 }
 0x186   : > { %v1940_v44 = vadd.f32 %v1939_v63, %v1891_v18  ;;  %v7759_v33 = vpop.f32.mrf.mxu3  ;;  %v1843_v55 = vpop.f32.mrf.mxu0  ;;  %v3662_v11 = vmul.f32 %v6209_v59, %v3661_v41  ;;  %v3611_v63 = vor.u32 1.1754944e-38, %v3610_v31 }
 0x187   : > { %v1844_v34 = vadd.f32 %v1843_v55, %v7402_v24  ;;  %v1892_v36 = vpop.f32.mrf.mxu1 }
 0x188   : > { %v6211_v46 = vpop.eup %6210  ;;  %v5784_v42 = vmul.f32 -1.442695, %v1940_v44  ;;  %v3663_v18 = vadd.f32 %v6209_v59, %v3662_v11  ;;  %v7794_v31 = vsel %vm7767_vm14, %v3611_v63, %v3607_v47  ;;  %v5572_v11 = vld [vmem:[%s10130_s1 + $0x510] sm:$0xf0] }
 0x189   : > { %v7775_v25 = vpop.eup %6212  ;;  %v7777_v24 = vadd.f32 1.0, %v6211_v46  ;;  %v1893_v41 = vadd.f32 %v1892_v36, %v1844_v34  ;;  %10311 = vst [vmem:[#allocation52_spill] sm:$0xff] %v7794_v31  ;;  %v5973_v34 = vld [vmem:[%s10130_s1 + $0x114] sm:$0xf0]  ;;  %v5575_v30 = vor.u32 %v6098_v20, %v5572_v11 }
 0x18a   : > { %v3720_v55 = vmul.f32 %v7775_v25, %v7745_v58  ;;  %6214 = vpow2.f32 %v5784_v42  ;;  %v3667_v44 = vsel %vm3666_vm1, %v6209_v59, %v3663_v18  ;;  %v5067_v46 = vor.u32 %v5973_v34, %v5066_v43 }
 0x18b   : > { %6216 = vrcp.f32 %v7777_v24  ;;  %v7796_v59 = vsel %vm3669_vm2, %v3671_v12, %v3667_v44  ;;  %2206 = vmatpush.bf16.msrb.mxu0 %v5575_v30  ;;  %vm3725_vm3 = vweird.f32 %v7775_v25  ;;  %v3730_v43 = vand.u32 2147483648, %v7745_v58 }
 0x18c   : > { %10312 = vst [vmem:[#allocation53_spill] sm:$0xff] %v7796_v59  ;;  %v3721_v42 = vsub.f32 1.0, %v3720_v55  ;;  %2353 = vmatpush.bf16.msrb.mxu3 %v5067_v46  ;;  %v3790_v34 = vand.u32 2147483648, %v7777_v24  ;;  %vm7831_vm6 = vmor %vm3724_vm4, %vm3725_vm3  ;;  %vm3784_vm8 = vweird.f32 %v7777_v24 }
 0x18d   : > { %v1941_v21 = vpop.f32.mrf.mxu2 }
 0x18e   : > { %v1942_v47 = vadd.f32 %v1941_v21, %v1893_v41  ;;  %v7809_v18 = vpop.f32.mrf.mxu3  ;;  %v1846_v63 = vpop.f32.mrf.mxu0  ;;  %v3722_v35 = vmul.f32 %v7775_v25, %v3721_v42  ;;  %v3728_v41 = vand.u32 2147483647, %v7745_v58 }
 0x18f   : > { %v1847_v12 = vadd.f32 %v1846_v63, %v7428_v52  ;;  %v1895_v44 = vpop.f32.mrf.mxu1 }
 0x190   : > { %v6215_v39 = vpop.eup %6214  ;;  %v5788_v29 = vmul.f32 -1.442695, %v1942_v47  ;;  %v3723_v55 = vadd.f32 %v7775_v25, %v3722_v35  ;;  %v3788_v47 = vand.u32 2147483647, %v7777_v24  ;;  %vm7835_vm7 = vcmp.eq.f32.partialorder %v3728_v41, 8.507059e+37 }
 0x191   : > { %v6217_v37 = vpop.eup %6216  ;;  %v7813_v36 = vadd.f32 1.0, %v6215_v39  ;;  %v1896_v20 = vadd.f32 %v1895_v44, %v1847_v12  ;;  %2041 = vmatmul.bf16.gmra.mxu0 %v7026_v16  ;;  %v3791_v41 = vor.u32 1.1754944e-38, %v3790_v34 }
 0x192   : > { %6218 = vpow2.f32 %v5788_v29  ;;  %2090 = vmatmul.bf16.gmra.mxu1 %v7028_v17  ;;  %2139 = vmatmul.bf16.gmra.mxu2 %v7030_v22  ;;  %v3780_v52 = vmul.f32 %v6217_v37, %v7777_v24  ;;  %vm3785_vm5 = vweird.f32 %v6217_v37  ;;  %v3727_v29 = vsel %vm7831_vm6, %v7775_v25, %v3723_v55  ;;  %v5562_v25 = vld [vmem:[%s10130_s1 + $0x4e8] sm:$0xf]  ;;  %v6097_v24 = vld [vmem:[%s10130_s1 + $0x4f4] sm:$0xf0] }
 0x193   : > { %6220 = vrcp.f32 %v7813_v36  ;;  %2188 = vmatmul.bf16.gmra.mxu3 %v7395_v14  ;;  %vm3786_vm9 = vmor %vm3784_vm8, %vm3785_vm5  ;;  %vm3789_vm10 = vcmp.eq.f32.partialorder %v3788_v47, 8.507059e+37  ;;  %v5306_v55 = vld [vmem:[%s10130_s1 + $0x2e8] sm:$0xf]  ;;  %v5563_v34 = vor.u32 %v6097_v24, %v5562_v25  ;;  %vm3844_vm12 = vweird.f32 %v7813_v36 }
 0x194   : > { %v3781_v62 = vsub.f32 1.0, %v3780_v52  ;;  %v5690_v47 = vld [vmem:[%s10130_s1 + $0x5e8] sm:$0xf]  ;;  %v3848_v59 = vand.u32 2147483647, %v7813_v36 }
 0x195   : > { %v1944_v11 = vpop.f32.mrf.mxu2  ;;  %2493 = vmatpush.bf16.msra.mxu2 %v5563_v34  ;;  %v10319_v34 = vld [vmem:[#allocation23_spill] sm:$0xff] }
 0x196   : > { %v1945_v21 = vadd.f32 %v1944_v11, %v1896_v20  ;;  %v7827_v30 = vpop.f32.mrf.mxu3  ;;  %v1848_v46 = vpop.f32.mrf.mxu0  ;;  %v3782_v42 = vmul.f32 %v6217_v37, %v3781_v62  ;;  %v3731_v11 = vor.u32 1.1754944e-38, %v3730_v43  ;;  %vm3849_vm2 = vcmp.eq.f32.partialorder %v3848_v59, 8.507059e+37 }
 0x197   : > { %v1849_v35 = vadd.f32 %v1848_v46, %v7443_v10  ;;  %v1897_v63 = vpop.f32.mrf.mxu1 }
 0x198   : > { %v6219_v58 = vpop.eup %6218  ;;  %v5792_v39 = vmul.f32 -1.442695, %v1945_v21  ;;  %v3783_v20 = vadd.f32 %v6217_v37, %v3782_v42  ;;  %v7862_v43 = vsel %vm7835_vm7, %v3731_v11, %v3727_v29  ;;  %v6033_v42 = vld [vmem:[%s10130_s1 + $0x2f4] sm:$0xf0] }
 0x199   : > { %v7843_v52 = vpop.eup %6220  ;;  %v7845_v10 = vadd.f32 1.0, %v6219_v58  ;;  %v1898_v62 = vadd.f32 %v1897_v63, %v1849_v35  ;;  %10317 = vst [vmem:[#allocation54_spill] sm:$0xff] %v7862_v43  ;;  %v6129_v35 = vld [vmem:[%s10130_s1 + $0x5f4] sm:$0xf0]  ;;  %v5307_v44 = vor.u32 %v6033_v42, %v5306_v55 }
 0x19a   : > { %v3840_v46 = vmul.f32 %v7843_v52, %v7813_v36  ;;  %6222 = vpow2.f32 %v5792_v39  ;;  %v3787_v21 = vsel %vm3786_vm9, %v6217_v37, %v3783_v20  ;;  %v5691_v58 = vor.u32 %v6129_v35, %v5690_v47  ;;  %v5434_v39 = vld [vmem:[%s10130_s1 + $0x3e8] sm:$0xf]  ;;  %v6065_v29 = vld [vmem:[%s10130_s1 + $0x3f4] sm:$0xf0] }
 0x19b   : > { %6224 = vrcp.f32 %v7845_v10  ;;  %v7864_v37 = vsel %vm3789_vm10, %v3791_v41, %v3787_v21  ;;  %v5435_v25 = vor.u32 %v6065_v29, %v5434_v39  ;;  %2395 = vmatpush.bf16.msra.mxu0 %v5307_v44  ;;  %v5290_v39 = vld [vmem:[%s10130_s1 + $0x2c8] sm:$0xf]  ;;  %vm3845_vm11 = vweird.f32 %v7843_v52 }
 0x19c   : > { %10318 = vst [vmem:[#allocation55_spill] sm:$0xff] %v7864_v37  ;;  %v3841_v20 = vsub.f32 1.0, %v3840_v46  ;;  %2542 = vmatpush.bf16.msra.mxu3 %v5691_v58  ;;  %v7895_v46 = vld [vmem:[%s10131_s2] sm:$0xf]  ;;  %v6093_v58 = vld [vmem:[%s10130_s1 + $0x4d4] sm:$0xf0]  ;;  %vm7935_vm13 = vmor %vm3844_vm12, %vm3845_vm11  ;;  %vm3904_vm15 = vweird.f32 %v7845_v10 }
 0x19d   : > { %v1946_v12 = vpop.f32.mrf.mxu2  ;;  %2444 = vmatpush.bf16.msra.mxu1 %v5435_v25 }
 0x19e   : > { %v1947_v11 = vadd.f32 %v1946_v12, %v1898_v62  ;;  %v7883_v41 = vpop.f32.mrf.mxu3  ;;  %v1851_v21 = vpop.f32.mrf.mxu0  ;;  %v3842_v47 = vmul.f32 %v7843_v52, %v3841_v20  ;;  %v10320_v12 = vld [vmem:[#allocation24_spill] sm:$0xff]  ;;  %v6029_v20 = vld [vmem:[%s10130_s1 + $0x2d4] sm:$0xf0] }
 0x19f   : > { %v1852_v24 = vadd.f32 %v1851_v21, %v7451_v53  ;;  %v1900_v63 = vpop.f32.mrf.mxu1  ;;  %v7898_v53 = vperm.slane %v7895_v46, 1  ;;  %v6125_v21 = vld [vmem:[%s10130_s1 + $0x5d4] sm:$0xf0] }
 0x1a0   : > { %v6223_v55 = vpop.eup %6222  ;;  %v5796_v42 = vmul.f32 -1.442695, %v1947_v11  ;;  %v5674_v11 = vld [vmem:[%s10130_s1 + $0x5c8] sm:$0xf]  ;;  %v3843_v25 = vadd.f32 %v7843_v52, %v3842_v47 }
 0x1a1   : > { %v7887_v35 = vpop.eup %6224  ;;  %v7889_v43 = vadd.f32 1.0, %v6223_v55  ;;  %v1901_v62 = vadd.f32 %v1900_v63, %v1852_v24  ;;  %2046 = vmatmul.bf16.gmra.mxu0 %v7070_v60  ;;  %v5546_v63 = vld [vmem:[%s10130_s1 + $0x4c8] sm:$0xf]  ;;  %v5291_v55 = vor.u32 %v6029_v20, %v5290_v39  ;;  %v3908_v39 = vand.u32 2147483647, %v7845_v10 }
 0x1a2   : > { %6226 = vpow2.f32 %v5796_v42  ;;  %2095 = vmatmul.bf16.gmra.mxu1 %v10319_v34  ;;  %2144 = vmatmul.bf16.gmra.mxu2 %v10320_v12  ;;  %v3900_v44 = vmul.f32 %v7887_v35, %v7845_v10  ;;  %v5547_v29 = vor.u32 %v6093_v58, %v5546_v63  ;;  %v5675_v42 = vor.u32 %v6125_v21, %v5674_v11 }
 0x1a3   : > { %6228 = vrcp.f32 %v7889_v43  ;;  %2193 = vmatmul.bf16.gmra.mxu3 %v7436_v48  ;;  %v3850_v48 = vand.u32 2147483648, %v7813_v36  ;;  %v3910_v12 = vand.u32 2147483648, %v7845_v10  ;;  %2396 = vmatpush.bf16.msra.mxu0 %v5291_v55  ;;  %vm3905_vm14 = vweird.f32 %v7887_v35 }
 0x1a4   : > { %v3901_v63 = vsub.f32 1.0, %v3900_v44  ;;  %2494 = vmatpush.bf16.msra.mxu2 %v5547_v29  ;;  %2543 = vmatpush.bf16.msra.mxu3 %v5675_v42  ;;  %v3847_v20 = vsel %vm7935_vm13, %v7843_v52, %v3843_v25  ;;  %vm3906_vm1 = vmor %vm3904_vm15, %vm3905_vm14  ;;  %vm3909_vm3 = vcmp.eq.f32.partialorder %v3908_v39, 8.507059e+37  ;;  %vm3964_vm5 = vweird.f32 %v7889_v43 }
 0x1a5   : > { %v1949_v24 = vpop.f32.mrf.mxu2  ;;  %v3911_v44 = vor.u32 1.1754944e-38, %v3910_v12 }
 0x1a6   : > { %v1950_v58 = vadd.f32 %v1949_v24, %v1901_v62  ;;  %v7927_v37 = vpop.f32.mrf.mxu3  ;;  %v1853_v31 = vpop.f32.mrf.mxu0  ;;  %v3902_v62 = vmul.f32 %v7887_v35, %v3901_v63 }
 0x1a7   : > { %v1854_v47 = vadd.f32 %v1853_v31, %v7460_v45  ;;  %v1902_v34 = vpop.f32.mrf.mxu1  ;;  %v5418_v45 = vld [vmem:[%s10130_s1 + $0x3c8] sm:$0xf]  ;;  %v6061_v31 = vld [vmem:[%s10130_s1 + $0x3d4] sm:$0xf0] }
 0x1a8   : > { %v6227_v36 = vpop.eup %6226  ;;  %v5800_v29 = vmul.f32 -1.442695, %v1950_v58  ;;  %v5419_v55 = vor.u32 %v6061_v31, %v5418_v45  ;;  %v3903_v42 = vadd.f32 %v7887_v35, %v3902_v62  ;;  %v3851_v58 = vor.u32 1.1754944e-38, %v3850_v48 }
 0x1a9   : > { %v7952_v11 = vpop.eup %6228  ;;  %v7954_v21 = vadd.f32 1.0, %v6227_v36  ;;  %v1903_v24 = vadd.f32 %v1902_v34, %v1854_v47  ;;  %v1964_v47 = vadd.f32 %v7466_v38, %v7898_v53  ;;  %v10325_v38 = vld [vmem:[#allocation26_spill] sm:$0xff] }
 0x1aa   : > { %v3960_v63 = vmul.f32 %v7952_v11, %v7889_v43  ;;  %6230 = vpow2.f32 %v5800_v29  ;;  %2445 = vmatpush.bf16.msra.mxu1 %v5419_v55  ;;  %v3907_v52 = vsel %vm3906_vm1, %v7887_v35, %v3903_v42  ;;  %v7963_v10 = vsel %vm3849_vm2, %v3851_v58, %v3847_v20 }
 0x1ab   : > { %6232 = vrcp.f32 %v7954_v21  ;;  %10323 = vst [vmem:[#allocation56_spill] sm:$0xff] %v7963_v10  ;;  %v7965_v34 = vsel %vm3909_vm3, %v3911_v44, %v3907_v52  ;;  %v5530_v44 = vld [vmem:[%s10130_s1 + $0x4a8] sm:$0xf]  ;;  %v6089_v52 = vld [vmem:[%s10130_s1 + $0x4b4] sm:$0xf0]  ;;  %vm3965_vm4 = vweird.f32 %v7952_v11  ;;  %vm4024_vm8 = vweird.f32 %v7954_v21 }
 0x1ac   : > { %10324 = vst [vmem:[#allocation57_spill] sm:$0xff] %v7965_v34  ;;  %v3961_v25 = vsub.f32 1.0, %v3960_v63  ;;  %v10326_v63 = vld [vmem:[#allocation27_spill] sm:$0xff]  ;;  %v3968_v34 = vand.u32 2147483647, %v7889_v43  ;;  %vm8014_vm6 = vmor %vm3964_vm5, %vm3965_vm4 }
 0x1ad   : > { %v1951_v48 = vpop.f32.mrf.mxu2 }
 0x1ae   : > { %v1952_v12 = vadd.f32 %v1951_v48, %v1903_v24  ;;  %v7971_v36 = vpop.f32.mrf.mxu3  ;;  %v2012_v29 = vpop.f32.mrf.mxu0  ;;  %v3962_v31 = vmul.f32 %v7952_v11, %v3961_v25  ;;  %v10327_v24 = vld [vmem:[#allocation2_spill] sm:$0xff]  ;;  %v5274_v25 = vld [vmem:[%s10130_s1 + $0x2a8] sm:$0xf]  ;;  %v5531_v48 = vor.u32 %v6089_v52, %v5530_v44  ;;  %vm3969_vm10 = vcmp.eq.f32.partialorder %v3968_v34, 8.507059e+37 }
 0x1af   : > { %v2013_v59 = vadd.f32 %v2012_v29, %v1964_v47  ;;  %v2061_v45 = vpop.f32.mrf.mxu1  ;;  %v1966_v47 = vadd.f32 %v7505_v23, %v7898_v53  ;;  %v5658_v29 = vld [vmem:[%s10130_s1 + $0x5a8] sm:$0xf] }
 0x1b0   : > { %v6231_v35 = vpop.eup %6230  ;;  %v5804_v39 = vmul.f32 -1.442695, %v1952_v12  ;;  %v6025_v12 = vld [vmem:[%s10130_s1 + $0x2b4] sm:$0xf0]  ;;  %2495 = vmatpush.bf16.msra.mxu2 %v5531_v48 }
 0x1b1   : > { %v7974_v20 = vpop.eup %6232  ;;  %v7976_v55 = vadd.f32 1.0, %v6231_v35  ;;  %v2062_v42 = vadd.f32 %v2061_v45, %v2013_v59  ;;  %2207 = vmatmul.bf16.vlgmr.msrb.gmra.mxu0 %v10325_v38  ;;  %v6121_v59 = vld [vmem:[%s10130_s1 + $0x5b4] sm:$0xf0]  ;;  %v3963_v45 = vadd.f32 %v7952_v11, %v3962_v31 }
 0x1b2   : > { %6234 = vpow2.f32 %v5804_v39  ;;  %5720 = vmatmul.msk.bf16.vlgmr.msrb.gmra.mxu1 %vm1586_vm0, %v10326_v63  ;;  %2305 = vmatmul.bf16.vlgmr.msrb.gmra.mxu2 %v10327_v24  ;;  %v4020_v58 = vmul.f32 %v7974_v20, %v7954_v21  ;;  %v5275_v39 = vor.u32 %v6025_v12, %v5274_v25  ;;  %v5659_v23 = vor.u32 %v6121_v59, %v5658_v29 }
 0x1b3   : > { %6236 = vrcp.f32 %v7976_v55  ;;  %2354 = vmatmul.bf16.vlgmr.msrb.gmra.mxu3 %v6781_v50  ;;  %v3970_v50 = vand.u32 2147483648, %v7889_v43  ;;  %v4030_v24 = vand.u32 2147483648, %v7954_v21  ;;  %vm4025_vm7 = vweird.f32 %v7974_v20 }
 0x1b4   : > { %v4021_v44 = vsub.f32 1.0, %v4020_v58  ;;  %2397 = vmatpush.bf16.msra.mxu0 %v5275_v39  ;;  %2544 = vmatpush.bf16.msra.mxu3 %v5659_v23  ;;  %v4028_v58 = vand.u32 2147483647, %v7954_v21  ;;  %v3967_v12 = vsel %vm8014_vm6, %v7952_v11, %v3963_v45  ;;  %vm4026_vm9 = vmor %vm4024_vm8, %vm4025_vm7  ;;  %v1969_v45 = vadd.f32 %v7515_v13, %v7898_v53  ;;  %v10334_v13 = vld [vmem:[#allocation6_spill] sm:$0xff] }
 0x1b5   : > { %v2110_v35 = vpop.f32.mrf.mxu2  ;;  %vm4084_vm12 = vweird.f32 %v7976_v55 }
 0x1b6   : > { %v2111_v52 = vadd.f32 %v2110_v35, %v2062_v42  ;;  %v2159_v62 = vpop.f32.mrf.mxu3  ;;  %v2014_v10 = vpop.f32.mrf.mxu0  ;;  %v4022_v42 = vmul.f32 %v7974_v20, %v4021_v44  ;;  %v3971_v44 = vor.u32 1.1754944e-38, %v3970_v50  ;;  %vm4029_vm11 = vcmp.eq.f32.partialorder %v4028_v58, 8.507059e+37 }
 0x1b7   : > { %v2015_v63 = vadd.f32 %v2014_v10, %v1966_v47  ;;  %v2063_v31 = vpop.f32.mrf.mxu1  ;;  %v5402_v10 = vld [vmem:[%s10130_s1 + $0x3a8] sm:$0xf]  ;;  %v6057_v47 = vld [vmem:[%s10130_s1 + $0x3b4] sm:$0xf0] }
 0x1b8   : > { %v6235_v48 = vpop.eup %6234  ;;  %v8021_v43 = vadd.f32 %v2159_v62, %v2111_v52  ;;  %v5403_v35 = vor.u32 %v6057_v47, %v5402_v10  ;;  %v4023_v39 = vadd.f32 %v7974_v20, %v4022_v42  ;;  %v4031_v52 = vor.u32 1.1754944e-38, %v4030_v24 }
 0x1b9   : > { %v8033_v29 = vpop.eup %6236  ;;  %v8035_v59 = vadd.f32 1.0, %v6235_v48  ;;  %v2064_v62 = vadd.f32 %v2063_v31, %v2015_v63  ;;  %v8044_v21 = vsel %vm3969_vm10, %v3971_v44, %v3967_v12  ;;  %v10332_v12 = vld [vmem:[#allocation29_spill] sm:$0xff] }
 0x1ba   : > { %v4080_v23 = vmul.f32 %v8033_v29, %v7976_v55  ;;  %2446 = vmatpush.bf16.msra.mxu1 %v5403_v35  ;;  %v4027_v11 = vsel %vm4026_vm9, %v7974_v20, %v4023_v39  ;;  %10330 = vst [vmem:[#allocation58_spill] sm:$0xff] %v8044_v21  ;;  %v10333_v39 = vld [vmem:[#allocation30_spill] sm:$0xff]  ;;  %v6085_v44 = vld [vmem:[%s10130_s1 + $0x494] sm:$0xf0]  ;;  %vm4085_vm13 = vweird.f32 %v8033_v29  ;;  %v4088_v21 = vand.u32 2147483647, %v7976_v55 }
 0x1bb   : > { %6238 = vrcp.f32 %v8035_v59  ;;  %v8046_v63 = vsel %vm4029_vm11, %v4031_v52, %v4027_v11  ;;  %v5258_v52 = vld [vmem:[%s10130_s1 + $0x288] sm:$0xf]  ;;  %v1971_v11 = vadd.f32 %v7543_v49, %v7898_v53  ;;  %vm4086_vm15 = vmor %vm4084_vm12, %vm4085_vm13  ;;  %vm4144_vm1 = vweird.f32 %v8035_v59 }
 0x1bc   : > { %10331 = vst [vmem:[#allocation59_spill] sm:$0xff] %v8046_v63  ;;  %v4081_v25 = vsub.f32 1.0, %v4080_v23  ;;  %v4090_v63 = vand.u32 2147483648, %v7976_v55  ;;  %vm4089_vm3 = vcmp.eq.f32.partialorder %v4088_v21, 8.507059e+37  ;;  %v1974_v55 = vadd.f32 %v7561_v6, %v7898_v53  ;;  %v5498_v6 = vld [vmem:[%s10130_s1 + $0x468] sm:$0xf] }
 0x1bd   : > { %v2112_v31 = vpop.f32.mrf.mxu2 }
 0x1be   : > { %v2113_v24 = vadd.f32 %v2112_v31, %v2064_v62  ;;  %v2161_v42 = vpop.f32.mrf.mxu3  ;;  %v2017_v48 = vpop.f32.mrf.mxu0  ;;  %v4082_v35 = vmul.f32 %v8033_v29, %v4081_v25  ;;  %v5514_v62 = vld [vmem:[%s10130_s1 + $0x488] sm:$0xf]  ;;  %v6021_v31 = vld [vmem:[%s10130_s1 + $0x294] sm:$0xf0] }
 0x1bf   : > { %v2018_v10 = vadd.f32 %v2017_v48, %v1969_v45  ;;  %v2066_v34 = vpop.f32.mrf.mxu1  ;;  %v5515_v45 = vor.u32 %v6085_v44, %v5514_v62  ;;  %v5642_v25 = vld [vmem:[%s10130_s1 + $0x588] sm:$0xf]  ;;  %v5259_v48 = vor.u32 %v6021_v31, %v5258_v52  ;;  %v4148_v52 = vand.u32 2147483647, %v8035_v59 }
 0x1c0   : > { %v8052_v47 = vadd.f32 %v2161_v42, %v2113_v24  ;;  %v6117_v24 = vld [vmem:[%s10130_s1 + $0x594] sm:$0xf0] }
 0x1c1   : > { %v6239_v20 = vpop.eup %6238  ;;  %v2067_v58 = vadd.f32 %v2066_v34, %v2018_v10  ;;  %2212 = vmatmul.bf16.gmra.mxu0 %v10332_v12  ;;  %v5643_v49 = vor.u32 %v6117_v24, %v5642_v25  ;;  %v4083_v10 = vadd.f32 %v8033_v29, %v4082_v35  ;;  %2496 = vmatpush.bf16.msra.mxu2 %v5515_v45  ;;  %v4091_v25 = vor.u32 1.1754944e-38, %v4090_v63 }
 0x1c2   : > { %5721 = vmatmul.msk.bf16.gmra.mxu1 %vm1586_vm0, %v10333_v39  ;;  %2310 = vmatmul.bf16.gmra.mxu2 %v10334_v13  ;;  %v4140_v23 = vmul.f32 %v6239_v20, %v8035_v59  ;;  %vm4145_vm14 = vweird.f32 %v6239_v20  ;;  %vm4149_vm4 = vcmp.eq.f32.partialorder %v4148_v52, 8.507059e+37  ;;  %v5242_v52 = vld [vmem:[%s10130_s1 + $0x268] sm:$0xf] }
 0x1c3   : > { %2359 = vmatmul.bf16.gmra.mxu3 %v6836_v19  ;;  %v4150_v19 = vand.u32 2147483648, %v8035_v59  ;;  %2398 = vmatpush.bf16.msra.mxu0 %v5259_v48  ;;  %v4087_v45 = vsel %vm4086_vm15, %v8033_v29, %v4083_v10  ;;  %vm4146_vm2 = vmor %vm4144_vm1, %vm4145_vm14 }
 0x1c4   : > { %v4141_v34 = vsub.f32 1.0, %v4140_v23  ;;  %2545 = vmatpush.bf16.msra.mxu3 %v5643_v49  ;;  %v6053_v23 = vld [vmem:[%s10130_s1 + $0x394] sm:$0xf0]  ;;  %v8102_v48 = vsel %vm4089_vm3, %v4091_v25, %v4087_v45  ;;  %v1976_v45 = vadd.f32 %v7605_v51, %v7898_v53 }
 0x1c5   : > { %v2115_v42 = vpop.f32.mrf.mxu2  ;;  %v4151_v24 = vor.u32 1.1754944e-38, %v4150_v19  ;;  %10335 = vst [vmem:[#allocation60_spill] sm:$0xff] %v8102_v48  ;;  %v6049_v51 = vld [vmem:[%s10130_s1 + $0x374] sm:$0xf0] }
 0x1c6   : > { %v2116_v62 = vadd.f32 %v2115_v42, %v2067_v58  ;;  %v2164_v44 = vpop.f32.mrf.mxu3  ;;  %v2019_v50 = vpop.f32.mrf.mxu0  ;;  %v4142_v14 = vmul.f32 %v6239_v20, %v4141_v34  ;;  %v5386_v58 = vld [vmem:[%s10130_s1 + $0x388] sm:$0xf]  ;;  %v10338_v34 = vld [vmem:[#allocation33_spill] sm:$0xff] }
 0x1c7   : > { %v2020_v13 = vadd.f32 %v2019_v50, %v1971_v11  ;;  %v2068_v39 = vpop.f32.mrf.mxu1  ;;  %v5387_v11 = vor.u32 %v6053_v23, %v5386_v58  ;;  %v6017_v23 = vld [vmem:[%s10130_s1 + $0x274] sm:$0xf0] }
 0x1c8   : > { %v8088_v35 = vadd.f32 %v2164_v44, %v2116_v62  ;;  %v4143_v31 = vadd.f32 %v6239_v20, %v4142_v14  ;;  %v10339_v62 = vld [vmem:[#allocation10_spill] sm:$0xff]  ;;  %v6081_v44 = vld [vmem:[%s10130_s1 + $0x474] sm:$0xf0]  ;;  %v5243_v25 = vor.u32 %v6017_v23, %v5242_v52 }
 0x1c9   : > { %v2069_v50 = vadd.f32 %v2068_v39, %v2020_v13  ;;  %2447 = vmatpush.bf16.msra.mxu1 %v5387_v11  ;;  %v5499_v58 = vor.u32 %v6081_v44, %v5498_v6  ;;  %v6113_v11 = vld [vmem:[%s10130_s1 + $0x574] sm:$0xf0] }
 0x1ca   : > { %v4147_v42 = vsel %vm4146_vm2, %v6239_v20, %v4143_v31  ;;  %v10337_v20 = vld [vmem:[#allocation32_spill] sm:$0xff]  ;;  %2399 = vmatpush.bf16.msra.mxu0 %v5243_v25  ;;  %v10340_v25 = vld [vmem:[#allocation34_spill] sm:$0xff] }
 0x1cb   : > { %v8104_v49 = vsel %vm4149_vm4, %v4151_v24, %v4147_v42  ;;  %2497 = vmatpush.bf16.msra.mxu2 %v5499_v58 }
 0x1cc   : > { %10336 = vst [vmem:[#allocation61_spill] sm:$0xff] %v8104_v49  ;;  %v5338_v49 = vld [vmem:[%s10130_s1 + $0x328] sm:$0xf] }
 0x1cd   : > { %v2117_v59 = vpop.f32.mrf.mxu2 }
 0x1ce   : > { %v2118_v29 = vadd.f32 %v2117_v59, %v2069_v50  ;;  %v2166_v14 = vpop.f32.mrf.mxu3  ;;  %v2022_v63 = vpop.f32.mrf.mxu0  ;;  %v5626_v50 = vld [vmem:[%s10130_s1 + $0x568] sm:$0xf] }
 0x1cf   : > { %v2023_v13 = vadd.f32 %v2022_v63, %v1974_v55  ;;  %v2071_v19 = vpop.f32.mrf.mxu1  ;;  %v5627_v24 = vor.u32 %v6113_v11, %v5626_v50 }
 0x1d0   : > { %v8110_v10 = vadd.f32 %v2166_v14, %v2118_v29 }
 0x1d1   : > { %v2072_v21 = vadd.f32 %v2071_v19, %v2023_v13  ;;  %2217 = vmatmul.bf16.gmra.mxu0 %v10337_v20  ;;  %2546 = vmatpush.bf16.msra.mxu3 %v5627_v24  ;;  %v5370_v13 = vld [vmem:[%s10130_s1 + $0x368] sm:$0xf] }
 0x1d2   : > { %5722 = vmatmul.msk.bf16.gmra.mxu1 %vm1586_vm0, %v10338_v34  ;;  %2315 = vmatmul.bf16.gmra.mxu2 %v10339_v62  ;;  %v5371_v6 = vor.u32 %v6049_v51, %v5370_v13  ;;  %v10341_v24 = vld [vmem:[#allocation35_spill] sm:$0xff]  ;;  %v6109_v51 = vld [vmem:[%s10130_s1 + $0x554] sm:$0xf0] }
 0x1d3   : > { %2364 = vmatmul.bf16.gmra.mxu3 %v6874_v40  ;;  %v5610_v13 = vld [vmem:[%s10130_s1 + $0x548] sm:$0xf] }
 0x1d4   : > { %2448 = vmatpush.bf16.msra.mxu1 %v5371_v6 }
 0x1d5   : > { %v2120_v31 = vpop.f32.mrf.mxu2 }
 0x1d6   : > { %v2121_v42 = vadd.f32 %v2120_v31, %v2072_v21  ;;  %v2169_v55 = vpop.f32.mrf.mxu3  ;;  %v2024_v59 = vpop.f32.mrf.mxu0  ;;  %v1979_v21 = vadd.f32 %v7623_v5, %v7898_v53  ;;  %v5482_v5 = vld [vmem:[%s10130_s1 + $0x448] sm:$0xf] }
 0x1d7   : > { %v2025_v29 = vadd.f32 %v2024_v59, %v1976_v45  ;;  %v2073_v14 = vpop.f32.mrf.mxu1  ;;  %v5226_v59 = vld [vmem:[%s10130_s1 + $0x248] sm:$0xf] }
 0x1d8   : > { %v8137_v63 = vadd.f32 %v2169_v55, %v2121_v42  ;;  %v10342_v42 = vld [vmem:[#allocation13_spill] sm:$0xff] }
 0x1d9   : > { %v2074_v19 = vadd.f32 %v2073_v14, %v2025_v29  ;;  %v6077_v55 = vld [vmem:[%s10130_s1 + $0x454] sm:$0xf0] }
 0x1da   : > { %v5483_v29 = vor.u32 %v6077_v55, %v5482_v5  ;;  %v6013_v14 = vld [vmem:[%s10130_s1 + $0x254] sm:$0xf0]  ;;  %v5354_v55 = vld [vmem:[%s10130_s1 + $0x348] sm:$0xf] }
 0x1dc   : > { %2498 = vmatpush.bf16.msra.mxu2 %v5483_v29 }
 0x1dd   : > { %v2122_v44 = vpop.f32.mrf.mxu2 }
 0x1de   : > { %v2123_v52 = vadd.f32 %v2122_v44, %v2074_v19  ;;  %v2171_v58 = vpop.f32.mrf.mxu3  ;;  %v2027_v23 = vpop.f32.mrf.mxu0  ;;  %v1981_v19 = vadd.f32 %v7673_v15, %v7898_v53  ;;  %v5611_v44 = vor.u32 %v6109_v51, %v5610_v13  ;;  %v6045_v15 = vld [vmem:[%s10130_s1 + $0x354] sm:$0xf0] }
 0x1df   : > { %v2028_v50 = vadd.f32 %v2027_v23, %v1979_v21  ;;  %v2076_v11 = vpop.f32.mrf.mxu1  ;;  %v5227_v21 = vor.u32 %v6013_v14, %v5226_v59  ;;  %v5355_v14 = vor.u32 %v6045_v15, %v5354_v55  ;;  %v5210_v55 = vld [vmem:[%s10130_s1 + $0x228] sm:$0xf] }
 0x1e0   : > { %v8147_v45 = vadd.f32 %v2171_v58, %v2123_v52  ;;  %2547 = vmatpush.bf16.msra.mxu3 %v5611_v44 }
 0x1e1   : > { %v2077_v31 = vadd.f32 %v2076_v11, %v2028_v50  ;;  %2222 = vmatmul.bf16.gmra.mxu0 %v10340_v25  ;;  %2449 = vmatpush.bf16.msra.mxu1 %v5355_v14  ;;  %v5594_v14 = vld [vmem:[%s10130_s1 + $0x528] sm:$0xf] }
 0x1e2   : > { %5723 = vmatmul.msk.bf16.gmra.mxu1 %vm1586_vm0, %v10341_v24  ;;  %2320 = vmatmul.bf16.gmra.mxu2 %v10342_v42 }
 0x1e3   : > { %2369 = vmatmul.bf16.gmra.mxu3 %v6912_v1  ;;  %2400 = vmatpush.bf16.msra.mxu0 %v5227_v21 }
 0x1e5   : > { %v2125_v6 = vpop.f32.mrf.mxu2 }
 0x1e6   : > { %v2126_v52 = vadd.f32 %v2125_v6, %v2077_v31  ;;  %v2174_v58 = vpop.f32.mrf.mxu3  ;;  %v2029_v23 = vpop.f32.mrf.mxu0  ;;  %v1984_v31 = vadd.f32 %v7691_v4, %v7898_v53  ;;  %v5466_v4 = vld [vmem:[%s10130_s1 + $0x428] sm:$0xf] }
 0x1e7   : > { %v2030_v50 = vadd.f32 %v2029_v23, %v1981_v19  ;;  %v2078_v11 = vpop.f32.mrf.mxu1  ;;  %v10344_v23 = vld [vmem:[#allocation37_spill] sm:$0xff] }
 0x1e8   : > { %v8174_v5 = vadd.f32 %v2174_v58, %v2126_v52  ;;  %v10343_v58 = vld [vmem:[#allocation36_spill] sm:$0xff] }
 0x1e9   : > { %v2079_v59 = vadd.f32 %v2078_v11, %v2030_v50  ;;  %v10345_v50 = vld [vmem:[#allocation15_spill] sm:$0xff]  ;;  %v6073_v11 = vld [vmem:[%s10130_s1 + $0x434] sm:$0xf0] }
 0x1ea   : > { %v5467_v15 = vor.u32 %v6073_v11, %v5466_v4 }
 0x1ec   : > { %2499 = vmatpush.bf16.msra.mxu2 %v5467_v15 }
 0x1ed   : > { %v2127_v29 = vpop.f32.mrf.mxu2 }
 0x1ee   : > { %v2128_v13 = vadd.f32 %v2127_v29, %v2079_v59  ;;  %v2176_v51 = vpop.f32.mrf.mxu3  ;;  %v2032_v19 = vpop.f32.mrf.mxu0  ;;  %v6009_v59 = vld [vmem:[%s10130_s1 + $0x234] sm:$0xf0]  ;;  %v1986_v29 = vadd.f32 %v7741_v32, %v7898_v53 }
 0x1ef   : > { %v2033_v6 = vadd.f32 %v2032_v19, %v1984_v31  ;;  %v2081_v21 = vpop.f32.mrf.mxu1  ;;  %v6105_v31 = vld [vmem:[%s10130_s1 + $0x534] sm:$0xf0] }
 0x1f0   : > { %v8184_v44 = vadd.f32 %v2176_v51, %v2128_v13  ;;  %v5211_v51 = vor.u32 %v6009_v59, %v5210_v55  ;;  %v5595_v19 = vor.u32 %v6105_v31, %v5594_v14  ;;  %v6041_v32 = vld [vmem:[%s10130_s1 + $0x334] sm:$0xf0] }
 0x1f1   : > { %v2082_v52 = vadd.f32 %v2081_v21, %v2033_v6  ;;  %2227 = vmatmul.bf16.gmra.mxu0 %v10343_v58  ;;  %v5339_v59 = vor.u32 %v6041_v32, %v5338_v49  ;;  %v6069_v49 = vld [vmem:[%s10130_s1 + $0x414] sm:$0xf0] }
 0x1f2   : > { %5724 = vmatmul.msk.bf16.gmra.mxu1 %vm1586_vm0, %v10344_v23  ;;  %2325 = vmatmul.bf16.gmra.mxu2 %v10345_v50 }
 0x1f3   : > { %2374 = vmatmul.bf16.gmra.mxu3 %v6950_v26  ;;  %2401 = vmatpush.bf16.msra.mxu0 %v5211_v51 }
 0x1f4   : > { %2548 = vmatpush.bf16.msra.mxu3 %v5595_v19  ;;  %2450 = vmatpush.bf16.msra.mxu1 %v5339_v59  ;;  %v5578_v59 = vld [vmem:[%s10130_s1 + $0x508] sm:$0xf] }
 0x1f5   : > { %v2130_v13 = vpop.f32.mrf.mxu2 }
 0x1f6   : > { %v2131_v6 = vadd.f32 %v2130_v13, %v2082_v52  ;;  %v2179_v21 = vpop.f32.mrf.mxu3  ;;  %v2034_v4 = vpop.f32.mrf.mxu0  ;;  %v1989_v52 = vadd.f32 %v7759_v33, %v7898_v53  ;;  %v5450_v33 = vld [vmem:[%s10130_s1 + $0x408] sm:$0xf] }
 0x1f7   : > { %v2035_v11 = vadd.f32 %v2034_v4, %v1986_v29  ;;  %v2083_v39 = vpop.f32.mrf.mxu1  ;;  %v10347_v4 = vld [vmem:[#allocation39_spill] sm:$0xff]  ;;  %v5451_v32 = vor.u32 %v6069_v49, %v5450_v33 }
 0x1f8   : > { %v8211_v48 = vadd.f32 %v2179_v21, %v2131_v6  ;;  %v10346_v21 = vld [vmem:[#allocation38_spill] sm:$0xff] }
 0x1f9   : > { %v2084_v55 = vadd.f32 %v2083_v39, %v2035_v11  ;;  %v10348_v39 = vld [vmem:[#allocation17_spill] sm:$0xff]  ;;  %v5194_v11 = vld [vmem:[%s10130_s1 + $0x208] sm:$0xf]  ;;  %2500 = vmatpush.bf16.msra.mxu2 %v5451_v32 }
 0x1fd   : > { %v2132_v15 = vpop.f32.mrf.mxu2 }
 0x1fe   : > { %v2133_v14 = vadd.f32 %v2132_v15, %v2084_v55  ;;  %v2181_v31 = vpop.f32.mrf.mxu3  ;;  %v2037_v29 = vpop.f32.mrf.mxu0  ;;  %v6005_v55 = vld [vmem:[%s10130_s1 + $0x214] sm:$0xf0]  ;;  %v1991_v15 = vadd.f32 %v7809_v18, %v7898_v53 }
 0x1ff   : > { %v2038_v13 = vadd.f32 %v2037_v29, %v1989_v52  ;;  %v2086_v51 = vpop.f32.mrf.mxu1  ;;  %v6101_v52 = vld [vmem:[%s10130_s1 + $0x514] sm:$0xf0] }
 0x200   : > { %v8221_v19 = vadd.f32 %v2181_v31, %v2133_v14  ;;  %v5195_v31 = vor.u32 %v6005_v55, %v5194_v11  ;;  %v5579_v29 = vor.u32 %v6101_v52, %v5578_v59  ;;  %v6037_v18 = vld [vmem:[%s10130_s1 + $0x314] sm:$0xf0] }
 0x201   : > { %v2087_v6 = vadd.f32 %v2086_v51, %v2038_v13  ;;  %2232 = vmatmul.bf16.gmra.mxu0 %v10346_v21 }
 0x202   : > { %5725 = vmatmul.msk.bf16.gmra.mxu1 %vm1586_vm0, %v10347_v4  ;;  %2330 = vmatmul.bf16.gmra.mxu2 %v10348_v39  ;;  %v5322_v4 = vld [vmem:[%s10130_s1 + $0x308] sm:$0xf] }
 0x203   : > { %2379 = vmatmul.bf16.gmra.mxu3 %v6988_v54  ;;  %2402 = vmatpush.bf16.msra.mxu0 %v5195_v31  ;;  %v5323_v55 = vor.u32 %v6037_v18, %v5322_v4 }
 0x204   : > { %2549 = vmatpush.bf16.msra.mxu3 %v5579_v29 }
 0x205   : > { %v2135_v14 = vpop.f32.mrf.mxu2  ;;  %2451 = vmatpush.bf16.msra.mxu1 %v5323_v55 }
 0x206   : > { %v2136_v13 = vadd.f32 %v2135_v14, %v2087_v6  ;;  %v2184_v51 = vpop.f32.mrf.mxu3  ;;  %v2039_v33 = vpop.f32.mrf.mxu0  ;;  %v1994_v6 = vadd.f32 %v7827_v30, %v7898_v53  ;;  %v1996_v30 = vadd.f32 %v7883_v41, %v7898_v53 }
 0x207   : > { %v2040_v49 = vadd.f32 %v2039_v33, %v1991_v15  ;;  %v2088_v54 = vpop.f32.mrf.mxu1  ;;  %v10350_v33 = vld [vmem:[#allocation42_spill] sm:$0xff] }
 0x208   : > { %v8248_v39 = vadd.f32 %v2184_v51, %v2136_v13  ;;  %v10349_v51 = vld [vmem:[#allocation41_spill] sm:$0xff] }
 0x209   : > { %v2089_v11 = vadd.f32 %v2088_v54, %v2040_v49  ;;  %v10351_v54 = vld [vmem:[#allocation19_spill] sm:$0xff] }
 0x20d   : > { %v2137_v32 = vpop.f32.mrf.mxu2 }
 0x20e   : > { %v2138_v59 = vadd.f32 %v2137_v32, %v2089_v11  ;;  %v2186_v52 = vpop.f32.mrf.mxu3  ;;  %v2042_v15 = vpop.f32.mrf.mxu0 }
 0x20f   : > { %v2043_v14 = vadd.f32 %v2042_v15, %v1994_v6  ;;  %v2091_v31 = vpop.f32.mrf.mxu1 }
 0x210   : > { %v8258_v29 = vadd.f32 %v2186_v52, %v2138_v59  ;;  %v1999_v52 = vadd.f32 %v7927_v37, %v7898_v53  ;;  %v2001_v37 = vadd.f32 %v7971_v36, %v7898_v53  ;;  %v5706_v53 = vld [vmem:[%s10130_s1 + $0x608] sm:$0xf] }
 0x211   : > { %v2092_v13 = vadd.f32 %v2091_v31, %v2043_v14  ;;  %2237 = vmatmul.bf16.gmra.mxu0 %v10349_v51 }
 0x212   : > { %5726 = vmatmul.msk.bf16.gmra.mxu1 %vm1586_vm0, %v10350_v33  ;;  %2335 = vmatmul.bf16.gmra.mxu2 %v10351_v54 }
 0x213   : > { %2384 = vmatmul.bf16.gmra.mxu3 %v7026_v16 }
 0x215   : > { %v2140_v4 = vpop.f32.mrf.mxu2 }
 0x216   : > { %v2141_v49 = vadd.f32 %v2140_v4, %v2092_v13  ;;  %v2189_v18 = vpop.f32.mrf.mxu3  ;;  %v2044_v11 = vpop.f32.mrf.mxu0  ;;  %v10352_v13 = vld [vmem:[#allocation21_spill] sm:$0xff] }
 0x217   : > { %v2045_v55 = vadd.f32 %v2044_v11, %v1996_v30  ;;  %v2093_v6 = vpop.f32.mrf.mxu1 }
 0x218   : > { %v8267_v32 = vadd.f32 %v2189_v18, %v2141_v49 }
 0x219   : > { %v2094_v59 = vadd.f32 %v2093_v6, %v2045_v55  ;;  %v5180_v6 = vld [vmem:[%s10130_s1 + $0x1f8] sm:$0xf0] }
 0x21d   : > { %v2142_v15 = vpop.f32.mrf.mxu2 }
 0x21e   : > { %v2143_v14 = vadd.f32 %v2142_v15, %v2094_v59  ;;  %v2191_v31 = vpop.f32.mrf.mxu3  ;;  %v2047_v54 = vpop.f32.mrf.mxu0  ;;  %v6133_v59 = vld [vmem:[%s10130_s1 + $0x614] sm:$0xf0]  ;;  %v5308_v15 = vld [vmem:[%s10130_s1 + $0x2f8] sm:$0xf0] }
 0x21f   : > { %v2048_v16 = vadd.f32 %v2047_v54, %v1999_v52  ;;  %v2096_v33 = vpop.f32.mrf.mxu1  ;;  %v6031_v52 = vld [vmem:[%s10130_s1 + $0x2ec] sm:$0xf] }
 0x220   : > { %v8271_v26 = vadd.f32 %v2191_v31, %v2143_v14  ;;  %v5707_v14 = vor.u32 %v6133_v59, %v5706_v53  ;;  %v5311_v31 = vor.u32 %v6031_v52, %v5308_v15  ;;  %v10353_v59 = vld [vmem:[#allocation4_spill] sm:$0xff]  ;;  %v10354_v52 = vld [vmem:[#allocation5_spill] sm:$0xff] }
 0x221   : > { %v2097_v41 = vadd.f32 %v2096_v33, %v2048_v16  ;;  %2242 = vmatmul.bf16.gmra.mxu0 %v7438_v61  ;;  %v5999_v33 = vld [vmem:[%s10130_s1 + $0x1ec] sm:$0xf]  ;;  %v10355_v15 = vld [vmem:[#allocation25_spill] sm:$0xff] }
 0x222   : > { %5727 = vmatmul.msk.bf16.gmra.mxu1 %vm1586_vm0, %v7440_v0  ;;  %2340 = vmatmul.bf16.gmra.mxu2 %v10352_v13  ;;  %v5183_v36 = vor.u32 %v5999_v33, %v5180_v6 }
 0x223   : > { %2389 = vmatmul.bf16.gmra.mxu3 %v7070_v60  ;;  %2598 = vmatpush.bf16.msrb.mxu0 %v5707_v14 }
 0x224   : > { %2689 = vmatpush.bf16.msrb.mxu2 %v5183_v36  ;;  %2738 = vmatpush.bf16.msrb.mxu3 %v5311_v31  ;;  %v8313_v36 = vperm.slane %v7895_v46, 2  ;;  %v5164_v31 = vld [vmem:[%s10130_s1 + $0x1d8] sm:$0xf0] }
 0x225   : > { %v2145_v30 = vpop.f32.mrf.mxu2 }
 0x226   : > { %v2146_v4 = vadd.f32 %v2145_v30, %v2097_v41  ;;  %v2194_v49 = vpop.f32.mrf.mxu3  ;;  %v2049_v54 = vpop.f32.mrf.mxu0  ;;  %v5967_v41 = vld [vmem:[%s10130_s1 + $0xec] sm:$0xf] }
 0x227   : > { %v2050_v18 = vadd.f32 %v2049_v54, %v2001_v37  ;;  %v2098_v11 = vpop.f32.mrf.mxu1  ;;  %v5052_v37 = vld [vmem:[%s10130_s1 + $0xf8] sm:$0xf0] }
 0x228   : > { %v8280_v55 = vadd.f32 %v2194_v49, %v2146_v4  ;;  %v5055_v30 = vor.u32 %v5967_v41, %v5052_v37  ;;  %v6027_v41 = vld [vmem:[%s10130_s1 + $0x2cc] sm:$0xf] }
 0x229   : > { %v2099_v16 = vadd.f32 %v2098_v11, %v2050_v18 }
 0x22a   : > { %2640 = vmatpush.bf16.msrb.mxu1 %v5055_v30 }
 0x22d   : > { %v2147_v4 = vpop.f32.mrf.mxu2 }
 0x22e   : > { %v2148_v49 = vadd.f32 %v2147_v4, %v2099_v16  ;;  %v2196_v54 = vpop.f32.mrf.mxu3  ;;  %v2208_v18 = vpop.f32.mrf.mxu0 }
 0x22f   : > { %v2209_v11 = vadd.f32 %v2208_v18, %v8021_v43  ;;  %v2257_v33 = vpop.f32.mrf.mxu1  ;;  %v5995_v43 = vld [vmem:[%s10130_s1 + $0x1cc] sm:$0xf]  ;;  %v5036_v18 = vld [vmem:[%s10130_s1 + $0xd8] sm:$0xf0] }
 0x230   : > { %v8307_v6 = vadd.f32 %v2196_v54, %v2148_v49  ;;  %v5167_v4 = vor.u32 %v5995_v43, %v5164_v31  ;;  %v5292_v49 = vld [vmem:[%s10130_s1 + $0x2d8] sm:$0xf0]  ;;  %v5963_v54 = vld [vmem:[%s10130_s1 + $0xcc] sm:$0xf] }
 0x231   : > { %v2258_v53 = vadd.f32 %v2257_v33, %v2209_v11  ;;  %2403 = vmatmul.bf16.vlgmr.msra.gmra.mxu0 %v10353_v59 }
 0x232   : > { %2452 = vmatmul.bf16.vlgmr.msra.gmra.mxu1 %v10354_v52  ;;  %2501 = vmatmul.bf16.vlgmr.msra.gmra.mxu2 %v10355_v15 }
 0x233   : > { %v5745_v14 = vmul.f32 -1.442695, %v2258_v53  ;;  %2550 = vmatmul.bf16.vlgmr.msra.gmra.mxu3 %v10325_v38  ;;  %v5295_v53 = vor.u32 %v6027_v41, %v5292_v49  ;;  %2690 = vmatpush.bf16.msrb.mxu2 %v5167_v4  ;;  %v10356_v49 = vld [vmem:[#allocation8_spill] sm:$0xff] }
 0x235   : > { %6240 = vpow2.f32 %v5745_v14  ;;  %v2306_v16 = vpop.f32.mrf.mxu2  ;;  %v5039_v14 = vor.u32 %v5963_v54, %v5036_v18  ;;  %2739 = vmatpush.bf16.msrb.mxu3 %v5295_v53  ;;  %v10357_v54 = vld [vmem:[#allocation9_spill] sm:$0xff]  ;;  %v10358_v18 = vld [vmem:[#allocation28_spill] sm:$0xff]  ;;  %v5991_v53 = vld [vmem:[%s10130_s1 + $0x1ac] sm:$0xf] }
 0x236   : > { %v2307_v46 = vadd.f32 %v2306_v16, %v8313_v36  ;;  %v2355_v37 = vpop.f32.mrf.mxu3  ;;  %v2210_v30 = vpop.f32.mrf.mxu0 }
 0x237   : > { %v2211_v11 = vadd.f32 %v2210_v30, %v8052_v47  ;;  %v2259_v33 = vpop.f32.mrf.mxu1  ;;  %2641 = vmatpush.bf16.msrb.mxu1 %v5039_v14  ;;  %v5148_v14 = vld [vmem:[%s10130_s1 + $0x1b8] sm:$0xf0] }
 0x238   : > { %v8336_v16 = vadd.f32 %v2355_v37, %v2307_v46 }
 0x239   : > { %v2260_v43 = vadd.f32 %v2259_v33, %v2211_v11 }
 0x23b   : > { %v6241_v31 = vpop.eup %6240  ;;  %v5749_v38 = vmul.f32 -1.442695, %v2260_v43  ;;  %v6023_v43 = vld [vmem:[%s10130_s1 + $0x2ac] sm:$0xf] }
 0x23c   : > { %v8338_v15 = vadd.f32 1.0, %v6241_v31 }
 0x23d   : > { %6242 = vpow2.f32 %v5749_v38  ;;  %v2308_v52 = vpop.f32.mrf.mxu2 }
 0x23e   : > { %6244 = vrcp.f32 %v8338_v15  ;;  %v2309_v60 = vadd.f32 %v2308_v52, %v8313_v36  ;;  %v2357_v47 = vpop.f32.mrf.mxu3  ;;  %v2213_v30 = vpop.f32.mrf.mxu0  ;;  %vm3259_vm6 = vweird.f32 %v8338_v15 }
 0x23f   : > { %v2214_v41 = vadd.f32 %v2213_v30, %v8088_v35  ;;  %v2262_v46 = vpop.f32.mrf.mxu1 }
 0x240   : > { %v8343_v37 = vadd.f32 %v2357_v47, %v2309_v60 }
 0x241   : > { %v2263_v4 = vadd.f32 %v2262_v46, %v2214_v41  ;;  %2408 = vmatmul.bf16.gmra.mxu0 %v10356_v49  ;;  %v5276_v41 = vld [vmem:[%s10130_s1 + $0x2b8] sm:$0xf0]  ;;  %v5959_v46 = vld [vmem:[%s10130_s1 + $0xac] sm:$0xf] }
 0x242   : > { %2457 = vmatmul.bf16.gmra.mxu1 %v10357_v54  ;;  %2506 = vmatmul.bf16.gmra.mxu2 %v10358_v18  ;;  %v5279_v18 = vor.u32 %v6023_v43, %v5276_v41 }
 0x243   : > { %v6243_v38 = vpop.eup %6242  ;;  %v5753_v11 = vmul.f32 -1.442695, %v2263_v4  ;;  %2555 = vmatmul.bf16.gmra.mxu3 %v10332_v12  ;;  %v5151_v12 = vor.u32 %v5991_v53, %v5148_v14 }
 0x244   : > { %v8349_v33 = vpop.eup %6244  ;;  %v8351_v52 = vadd.f32 1.0, %v6243_v38  ;;  %2740 = vmatpush.bf16.msrb.mxu3 %v5279_v18 }
 0x245   : > { %v3255_v35 = vmul.f32 %v8349_v33, %v8338_v15  ;;  %6246 = vpow2.f32 %v5753_v11  ;;  %v2311_v60 = vpop.f32.mrf.mxu2  ;;  %2691 = vmatpush.bf16.msrb.mxu2 %v5151_v12  ;;  %vm3260_vm5 = vweird.f32 %v8349_v33 }
 0x246   : > { %6248 = vrcp.f32 %v8351_v52  ;;  %v2312_v31 = vadd.f32 %v2311_v60, %v8313_v36  ;;  %v2360_v47 = vpop.f32.mrf.mxu3  ;;  %v2215_v30 = vpop.f32.mrf.mxu0  ;;  %v5020_v60 = vld [vmem:[%s10130_s1 + $0xb8] sm:$0xf0]  ;;  %vm8396_vm7 = vmor %vm3259_vm6, %vm3260_vm5  ;;  %vm3319_vm9 = vweird.f32 %v8351_v52 }
 0x247   : > { %v3256_v4 = vsub.f32 1.0, %v3255_v35  ;;  %v2216_v38 = vadd.f32 %v2215_v30, %v8110_v10  ;;  %v2264_v11 = vpop.f32.mrf.mxu1  ;;  %v5023_v13 = vor.u32 %v5959_v46, %v5020_v60  ;;  %v3325_v30 = vand.u32 2147483648, %v8351_v52  ;;  %v10361_v60 = vld [vmem:[#allocation11_spill] sm:$0xff] }
 0x248   : > { %v8376_v54 = vadd.f32 %v2360_v47, %v2312_v31  ;;  %v3263_v46 = vand.u32 2147483647, %v8338_v15 }
 0x249   : > { %v2265_v0 = vadd.f32 %v2264_v11, %v2216_v38  ;;  %v3257_v50 = vmul.f32 %v8349_v33, %v3256_v4  ;;  %2642 = vmatpush.bf16.msrb.mxu1 %v5023_v13  ;;  %v3323_v4 = vand.u32 2147483647, %v8351_v52 }
 0x24a   : > { %vm3264_vm10 = vcmp.eq.f32.partialorder %v3263_v46, 8.507059e+37  ;;  %v5132_v46 = vld [vmem:[%s10130_s1 + $0x198] sm:$0xf0] }
 0x24b   : > { %v6247_v23 = vpop.eup %6246  ;;  %v5757_v35 = vmul.f32 -1.442695, %v2265_v0  ;;  %v3258_v31 = vadd.f32 %v8349_v33, %v3257_v50  ;;  %v3265_v0 = vand.u32 2147483648, %v8338_v15  ;;  %vm8416_vm12 = vcmp.eq.f32.partialorder %v3323_v4, 8.507059e+37  ;;  %v6019_v4 = vld [vmem:[%s10130_s1 + $0x28c] sm:$0xf] }
 0x24c   : > { %v6249_v1 = vpop.eup %6248  ;;  %v8379_v10 = vadd.f32 1.0, %v6247_v23 }
 0x24d   : > { %v3315_v53 = vmul.f32 %v6249_v1, %v8351_v52  ;;  %6250 = vpow2.f32 %v5757_v35  ;;  %v2313_v14 = vpop.f32.mrf.mxu2  ;;  %vm3320_vm8 = vweird.f32 %v6249_v1  ;;  %v10363_v35 = vld [vmem:[#allocation31_spill] sm:$0xff]  ;;  %v3262_v15 = vsel %vm8396_vm7, %v8349_v33, %v3258_v31 }
 0x24e   : > { %6252 = vrcp.f32 %v8379_v10  ;;  %v2314_v43 = vadd.f32 %v2313_v14, %v8313_v36  ;;  %v2362_v12 = vpop.f32.mrf.mxu3  ;;  %v2218_v18 = vpop.f32.mrf.mxu0  ;;  %v3266_v14 = vor.u32 1.1754944e-38, %v3265_v0  ;;  %vm8412_vm11 = vmor %vm3319_vm9, %vm3320_vm8  ;;  %v3326_v33 = vor.u32 1.1754944e-38, %v3325_v30  ;;  %v5987_v0 = vld [vmem:[%s10130_s1 + $0x18c] sm:$0xf] }
 0x24f   : > { %v3316_v23 = vsub.f32 1.0, %v3315_v53  ;;  %v2219_v13 = vadd.f32 %v2218_v18, %v8137_v63  ;;  %v2267_v47 = vpop.f32.mrf.mxu1  ;;  %v10362_v63 = vld [vmem:[#allocation12_spill] sm:$0xff]  ;;  %vm3379_vm14 = vweird.f32 %v8379_v10 }
 0x250   : > { %v8390_v41 = vadd.f32 %v2362_v12, %v2314_v43  ;;  %v8431_v50 = vsel %vm3264_vm10, %v3266_v14, %v3262_v15  ;;  %v5004_v15 = vld [vmem:[%s10130_s1 + $0x98] sm:$0xf0] }
 0x251   : > { %v3317_v38 = vmul.f32 %v6249_v1, %v3316_v23  ;;  %v2268_v11 = vadd.f32 %v2267_v47, %v2219_v13  ;;  %2413 = vmatmul.bf16.gmra.mxu0 %v10361_v60  ;;  %10368 = vst [vmem:[#allocation33_spill] sm:$0xff] %v8431_v50 }
 0x252   : > { %2462 = vmatmul.bf16.gmra.mxu1 %v10362_v63  ;;  %2511 = vmatmul.bf16.gmra.mxu2 %v10363_v35  ;;  %v5955_v35 = vld [vmem:[%s10130_s1 + $0x8c] sm:$0xf] }
 0x253   : > { %v6251_v53 = vpop.eup %6250  ;;  %v5761_v43 = vmul.f32 -1.442695, %v2268_v11  ;;  %2560 = vmatmul.bf16.gmra.mxu3 %v10337_v20  ;;  %v3318_v12 = vadd.f32 %v6249_v1, %v3317_v38  ;;  %v5260_v20 = vld [vmem:[%s10130_s1 + $0x298] sm:$0xf0] }
 0x254   : > { %v8408_v18 = vpop.eup %6252  ;;  %v8410_v23 = vadd.f32 1.0, %v6251_v53  ;;  %v5263_v13 = vor.u32 %v6019_v4, %v5260_v20 }
 0x255   : > { %v3375_v52 = vmul.f32 %v8408_v18, %v8379_v10  ;;  %6254 = vpow2.f32 %v5761_v43  ;;  %v2316_v31 = vpop.f32.mrf.mxu2  ;;  %v3322_v30 = vsel %vm8412_vm11, %v6249_v1, %v3318_v12  ;;  %v5135_v43 = vor.u32 %v5987_v0, %v5132_v46 }
 0x256   : > { %6256 = vrcp.f32 %v8410_v23  ;;  %v2317_v38 = vadd.f32 %v2316_v31, %v8313_v36  ;;  %v2365_v11 = vpop.f32.mrf.mxu3  ;;  %v2220_v53 = vpop.f32.mrf.mxu0  ;;  %v8448_v1 = vsel %vm8416_vm12, %v3326_v33, %v3322_v30  ;;  %v5007_v31 = vor.u32 %v5955_v35, %v5004_v15  ;;  %2741 = vmatpush.bf16.msrb.mxu3 %v5263_v13 }
 0x257   : > { %10369 = vst [vmem:[#allocation10_spill] sm:$0xff] %v8448_v1  ;;  %v2221_v14 = vadd.f32 %v2220_v53, %v8147_v45  ;;  %v2269_v12 = vpop.f32.mrf.mxu1  ;;  %2692 = vmatpush.bf16.msrb.mxu2 %v5135_v43  ;;  %v3376_v63 = vsub.f32 1.0, %v3375_v52  ;;  %vm3380_vm13 = vweird.f32 %v8408_v18  ;;  %v3383_v15 = vand.u32 2147483647, %v8379_v10 }
 0x258   : > { %v8453_v46 = vadd.f32 %v2365_v11, %v2317_v38  ;;  %2643 = vmatpush.bf16.msrb.mxu1 %v5007_v31  ;;  %v3385_v11 = vand.u32 2147483648, %v8379_v10  ;;  %vm8472_vm15 = vmor %vm3379_vm14, %vm3380_vm13  ;;  %vm3439_vm2 = vweird.f32 %v8410_v23 }
 0x259   : > { %v2270_v42 = vadd.f32 %v2269_v12, %v2221_v14  ;;  %v3377_v24 = vmul.f32 %v8408_v18, %v3376_v63  ;;  %v3443_v14 = vand.u32 2147483647, %v8410_v23  ;;  %v3445_v12 = vand.u32 2147483648, %v8410_v23 }
 0x25a   : > { %vm3384_vm3 = vcmp.eq.f32.partialorder %v3383_v15, 8.507059e+37 }
 0x25b   : > { %v6255_v47 = vpop.eup %6254  ;;  %v5765_v33 = vmul.f32 -1.442695, %v2270_v42  ;;  %v3378_v38 = vadd.f32 %v8408_v18, %v3377_v24  ;;  %vm8491_vm5 = vcmp.eq.f32.partialorder %v3443_v14, 8.507059e+37 }
 0x25c   : > { %v6257_v30 = vpop.eup %6256  ;;  %v8456_v60 = vadd.f32 1.0, %v6255_v47 }
 0x25d   : > { %6258 = vpow2.f32 %v5765_v33  ;;  %v2318_v20 = vpop.f32.mrf.mxu2  ;;  %v3435_v45 = vmul.f32 %v6257_v30, %v8410_v23  ;;  %vm3440_vm1 = vweird.f32 %v6257_v30  ;;  %v3382_v10 = vsel %vm8472_vm15, %v8408_v18, %v3378_v38  ;;  %v5983_v23 = vld [vmem:[%s10130_s1 + $0x16c] sm:$0xf] }
 0x25e   : > { %6260 = vrcp.f32 %v8456_v60  ;;  %v2319_v35 = vadd.f32 %v2318_v20, %v8313_v36  ;;  %v2367_v4 = vpop.f32.mrf.mxu3  ;;  %v2223_v52 = vpop.f32.mrf.mxu0  ;;  %v3386_v33 = vor.u32 1.1754944e-38, %v3385_v11  ;;  %vm8487_vm4 = vmor %vm3439_vm2, %vm3440_vm1  ;;  %v3446_v18 = vor.u32 1.1754944e-38, %v3445_v12  ;;  %v6015_v11 = vld [vmem:[%s10130_s1 + $0x26c] sm:$0xf] }
 0x25f   : > { %v2224_v63 = vadd.f32 %v2223_v52, %v8174_v5  ;;  %v2272_v42 = vpop.f32.mrf.mxu1  ;;  %v3436_v53 = vsub.f32 1.0, %v3435_v45  ;;  %vm3499_vm7 = vweird.f32 %v8456_v60 }
 0x260   : > { %v8466_v43 = vadd.f32 %v2367_v4, %v2319_v35 }
 0x261   : > { %v2273_v13 = vadd.f32 %v2272_v42, %v2224_v63  ;;  %2418 = vmatmul.bf16.gmra.mxu0 %v6914_v2  ;;  %v3437_v5 = vmul.f32 %v6257_v30, %v3436_v53  ;;  %v5116_v42 = vld [vmem:[%s10130_s1 + $0x178] sm:$0xf0]  ;;  %v8506_v53 = vsel %vm3384_vm3, %v3386_v33, %v3382_v10 }
 0x262   : > { %2467 = vmatmul.bf16.gmra.mxu1 %v6916_v3  ;;  %2516 = vmatmul.bf16.gmra.mxu2 %v7254_v8  ;;  %10376 = vst [vmem:[#allocation34_spill] sm:$0xff] %v8506_v53  ;;  %v5119_v24 = vor.u32 %v5983_v23, %v5116_v42  ;;  %v4988_v10 = vld [vmem:[%s10130_s1 + $0x78] sm:$0xf0] }
 0x263   : > { %v6259_v31 = vpop.eup %6258  ;;  %v5769_v47 = vmul.f32 -1.442695, %v2273_v13  ;;  %2565 = vmatmul.bf16.gmra.mxu3 %v10340_v25  ;;  %v3438_v20 = vadd.f32 %v6257_v30, %v3437_v5  ;;  %v5244_v5 = vld [vmem:[%s10130_s1 + $0x278] sm:$0xf0] }
 0x264   : > { %v8483_v45 = vpop.eup %6260  ;;  %v8485_v35 = vadd.f32 1.0, %v6259_v31  ;;  %v5951_v31 = vld [vmem:[%s10130_s1 + $0x6c] sm:$0xf]  ;;  %2693 = vmatpush.bf16.msrb.mxu2 %v5119_v24 }
 0x265   : > { %v3495_v38 = vmul.f32 %v8483_v45, %v8456_v60  ;;  %6262 = vpow2.f32 %v5769_v47  ;;  %v2321_v63 = vpop.f32.mrf.mxu2  ;;  %v3442_v15 = vsel %vm8487_vm4, %v6257_v30, %v3438_v20  ;;  %v5247_v20 = vor.u32 %v6015_v11, %v5244_v5 }
 0x266   : > { %6264 = vrcp.f32 %v8485_v35  ;;  %v2322_v14 = vadd.f32 %v2321_v63, %v8313_v36  ;;  %v2370_v12 = vpop.f32.mrf.mxu3  ;;  %v2225_v13 = vpop.f32.mrf.mxu0  ;;  %v8523_v30 = vsel %vm8491_vm5, %v3446_v18, %v3442_v15  ;;  %v4991_v4 = vor.u32 %v5951_v31, %v4988_v10 }
 0x267   : > { %10377 = vst [vmem:[#allocation36_spill] sm:$0xff] %v8523_v30  ;;  %v2226_v47 = vadd.f32 %v2225_v13, %v8184_v44  ;;  %v2274_v33 = vpop.f32.mrf.mxu1  ;;  %v3496_v42 = vsub.f32 1.0, %v3495_v38  ;;  %2742 = vmatpush.bf16.msrb.mxu3 %v5247_v20  ;;  %vm3500_vm6 = vweird.f32 %v8483_v45  ;;  %v3505_v5 = vand.u32 2147483648, %v8456_v60 }
 0x268   : > { %v8528_v23 = vadd.f32 %v2370_v12, %v2322_v14  ;;  %2644 = vmatpush.bf16.msrb.mxu1 %v4991_v4  ;;  %v3565_v20 = vand.u32 2147483648, %v8485_v35  ;;  %vm8547_vm8 = vmor %vm3499_vm7, %vm3500_vm6  ;;  %vm3559_vm10 = vweird.f32 %v8485_v35 }
 0x269   : > { %v2275_v0 = vadd.f32 %v2274_v33, %v2226_v47  ;;  %v3497_v50 = vmul.f32 %v8483_v45, %v3496_v42  ;;  %v3503_v47 = vand.u32 2147483647, %v8456_v60  ;;  %v3563_v33 = vand.u32 2147483647, %v8485_v35 }
 0x26b   : > { %v6263_v52 = vpop.eup %6262  ;;  %v5773_v18 = vmul.f32 -1.442695, %v2275_v0  ;;  %v3498_v13 = vadd.f32 %v8483_v45, %v3497_v50  ;;  %vm3504_vm11 = vcmp.eq.f32.partialorder %v3503_v47, 8.507059e+37  ;;  %vm8566_vm13 = vcmp.eq.f32.partialorder %v3563_v33, 8.507059e+37 }
 0x26c   : > { %v6265_v15 = vpop.eup %6264  ;;  %v8531_v1 = vadd.f32 1.0, %v6263_v52 }
 0x26d   : > { %6266 = vpow2.f32 %v5773_v18  ;;  %v2323_v44 = vpop.f32.mrf.mxu2  ;;  %v3555_v11 = vmul.f32 %v6265_v15, %v8485_v35  ;;  %vm3560_vm9 = vweird.f32 %v6265_v15  ;;  %v3502_v60 = vsel %vm8547_vm8, %v8483_v45, %v3498_v13  ;;  %v5979_v35 = vld [vmem:[%s10130_s1 + $0x14c] sm:$0xf] }
 0x26e   : > { %6268 = vrcp.f32 %v8531_v1  ;;  %v2324_v14 = vadd.f32 %v2323_v44, %v8313_v36  ;;  %v2372_v12 = vpop.f32.mrf.mxu3  ;;  %v2228_v38 = vpop.f32.mrf.mxu0  ;;  %v3506_v18 = vor.u32 1.1754944e-38, %v3505_v5  ;;  %vm8562_vm12 = vmor %vm3559_vm10, %vm3560_vm9  ;;  %v3566_v45 = vor.u32 1.1754944e-38, %v3565_v20  ;;  %v6011_v5 = vld [vmem:[%s10130_s1 + $0x24c] sm:$0xf] }
 0x26f   : > { %v2229_v24 = vadd.f32 %v2228_v38, %v8211_v48  ;;  %v2277_v0 = vpop.f32.mrf.mxu1  ;;  %v3556_v31 = vsub.f32 1.0, %v3555_v11  ;;  %vm3619_vm15 = vweird.f32 %v8531_v1 }
 0x270   : > { %v8541_v10 = vadd.f32 %v2372_v12, %v2324_v14 }
 0x271   : > { %v2278_v4 = vadd.f32 %v2277_v0, %v2229_v24  ;;  %2423 = vmatmul.bf16.gmra.mxu0 %v6952_v27  ;;  %v3557_v48 = vmul.f32 %v6265_v15, %v3556_v31  ;;  %v5100_v0 = vld [vmem:[%s10130_s1 + $0x158] sm:$0xf0]  ;;  %v8581_v31 = vsel %vm3504_vm11, %v3506_v18, %v3502_v60 }
 0x272   : > { %2472 = vmatmul.bf16.gmra.mxu1 %v6954_v28  ;;  %2521 = vmatmul.bf16.gmra.mxu2 %v7301_v9  ;;  %10384 = vst [vmem:[#allocation38_spill] sm:$0xff] %v8581_v31  ;;  %v5103_v50 = vor.u32 %v5979_v35, %v5100_v0  ;;  %v4972_v60 = vld [vmem:[%s10130_s1 + $0x58] sm:$0xf0] }
 0x273   : > { %v6267_v42 = vpop.eup %6266  ;;  %v5777_v52 = vmul.f32 -1.442695, %v2278_v4  ;;  %2570 = vmatmul.bf16.gmra.mxu3 %v10343_v58  ;;  %v3558_v44 = vadd.f32 %v6265_v15, %v3557_v48  ;;  %v5228_v48 = vld [vmem:[%s10130_s1 + $0x258] sm:$0xf0] }
 0x274   : > { %v8558_v11 = vpop.eup %6268  ;;  %v8560_v14 = vadd.f32 1.0, %v6267_v42  ;;  %v5947_v42 = vld [vmem:[%s10130_s1 + $0x4c] sm:$0xf]  ;;  %2694 = vmatpush.bf16.msrb.mxu2 %v5103_v50 }
 0x275   : > { %v3615_v13 = vmul.f32 %v8558_v11, %v8531_v1  ;;  %6270 = vpow2.f32 %v5777_v52  ;;  %v2326_v24 = vpop.f32.mrf.mxu2  ;;  %v3562_v47 = vsel %vm8562_vm12, %v6265_v15, %v3558_v44  ;;  %v5231_v44 = vor.u32 %v6011_v5, %v5228_v48 }
 0x276   : > { %6272 = vrcp.f32 %v8560_v14  ;;  %v2327_v33 = vadd.f32 %v2326_v24, %v8313_v36  ;;  %v2375_v20 = vpop.f32.mrf.mxu3  ;;  %v2230_v4 = vpop.f32.mrf.mxu0  ;;  %v8598_v15 = vsel %vm8566_vm13, %v3566_v45, %v3562_v47  ;;  %v4975_v12 = vor.u32 %v5947_v42, %v4972_v60 }
 0x277   : > { %10385 = vst [vmem:[#allocation41_spill] sm:$0xff] %v8598_v15  ;;  %v2231_v52 = vadd.f32 %v2230_v4, %v8221_v19  ;;  %v2279_v18 = vpop.f32.mrf.mxu1  ;;  %v3616_v0 = vsub.f32 1.0, %v3615_v13  ;;  %2743 = vmatpush.bf16.msrb.mxu3 %v5231_v44  ;;  %vm3620_vm14 = vweird.f32 %v8558_v11  ;;  %v3625_v48 = vand.u32 2147483648, %v8531_v1 }
 0x278   : > { %v8603_v35 = vadd.f32 %v2375_v20, %v2327_v33  ;;  %2645 = vmatpush.bf16.msrb.mxu1 %v4975_v12  ;;  %v3685_v44 = vand.u32 2147483648, %v8560_v14  ;;  %vm8622_vm1 = vmor %vm3619_vm15, %vm3620_vm14  ;;  %vm3679_vm3 = vweird.f32 %v8560_v14 }
 0x279   : > { %v2280_v63 = vadd.f32 %v2279_v18, %v2231_v52  ;;  %v3617_v53 = vmul.f32 %v8558_v11, %v3616_v0  ;;  %v3623_v52 = vand.u32 2147483647, %v8531_v1  ;;  %v3683_v18 = vand.u32 2147483647, %v8560_v14 }
 0x27b   : > { %v6271_v38 = vpop.eup %6270  ;;  %v5781_v45 = vmul.f32 -1.442695, %v2280_v63  ;;  %v3618_v4 = vadd.f32 %v8558_v11, %v3617_v53  ;;  %vm3624_vm4 = vcmp.eq.f32.partialorder %v3623_v52, 8.507059e+37  ;;  %vm8641_vm6 = vcmp.eq.f32.partialorder %v3683_v18, 8.507059e+37 }
 0x27c   : > { %v6273_v47 = vpop.eup %6272  ;;  %v8606_v30 = vadd.f32 1.0, %v6271_v38 }
 0x27d   : > { %6274 = vpow2.f32 %v5781_v45  ;;  %v2328_v19 = vpop.f32.mrf.mxu2  ;;  %v3675_v5 = vmul.f32 %v6273_v47, %v8560_v14  ;;  %vm3680_vm2 = vweird.f32 %v6273_v47  ;;  %v3622_v1 = vsel %vm8622_vm1, %v8558_v11, %v3618_v4  ;;  %v5975_v14 = vld [vmem:[%s10130_s1 + $0x12c] sm:$0xf] }
 0x27e   : > { %6276 = vrcp.f32 %v8606_v30  ;;  %v2329_v33 = vadd.f32 %v2328_v19, %v8313_v36  ;;  %v2377_v20 = vpop.f32.mrf.mxu3  ;;  %v2233_v13 = vpop.f32.mrf.mxu0  ;;  %v3626_v45 = vor.u32 1.1754944e-38, %v3625_v48  ;;  %vm8637_vm5 = vmor %vm3679_vm3, %vm3680_vm2  ;;  %v3686_v11 = vor.u32 1.1754944e-38, %v3685_v44  ;;  %v6007_v48 = vld [vmem:[%s10130_s1 + $0x22c] sm:$0xf] }
 0x27f   : > { %v2234_v50 = vadd.f32 %v2233_v13, %v8248_v39  ;;  %v2282_v63 = vpop.f32.mrf.mxu1  ;;  %v3676_v42 = vsub.f32 1.0, %v3675_v5  ;;  %vm3739_vm8 = vweird.f32 %v8606_v30 }
 0x280   : > { %v8616_v60 = vadd.f32 %v2377_v20, %v2329_v33 }
 0x281   : > { %v2283_v12 = vadd.f32 %v2282_v63, %v2234_v50  ;;  %2428 = vmatmul.bf16.gmra.mxu0 %v6990_v56  ;;  %v3677_v39 = vmul.f32 %v6273_v47, %v3676_v42  ;;  %v5084_v63 = vld [vmem:[%s10130_s1 + $0x138] sm:$0xf0]  ;;  %v8656_v42 = vsel %vm3624_vm4, %v3626_v45, %v3622_v1 }
 0x282   : > { %2477 = vmatmul.bf16.gmra.mxu1 %v6992_v57  ;;  %2526 = vmatmul.bf16.gmra.mxu2 %v7348_v7  ;;  %10392 = vst [vmem:[#allocation4_spill] sm:$0xff] %v8656_v42  ;;  %v5087_v53 = vor.u32 %v5975_v14, %v5084_v63  ;;  %v4956_v1 = vld [vmem:[%s10130_s1 + $0x38] sm:$0xf0] }
 0x283   : > { %v6275_v0 = vpop.eup %6274  ;;  %v5785_v38 = vmul.f32 -1.442695, %v2283_v12  ;;  %2575 = vmatmul.bf16.gmra.mxu3 %v10346_v21  ;;  %v3678_v19 = vadd.f32 %v6273_v47, %v3677_v39  ;;  %v5212_v39 = vld [vmem:[%s10130_s1 + $0x238] sm:$0xf0] }
 0x284   : > { %v8633_v5 = vpop.eup %6276  ;;  %v8635_v33 = vadd.f32 1.0, %v6275_v0  ;;  %v5943_v0 = vld [vmem:[%s10130_s1 + $0x2c] sm:$0xf]  ;;  %2695 = vmatpush.bf16.msrb.mxu2 %v5087_v53 }
 0x285   : > { %v3735_v4 = vmul.f32 %v8633_v5, %v8606_v30  ;;  %6278 = vpow2.f32 %v5785_v38  ;;  %v2331_v50 = vpop.f32.mrf.mxu2  ;;  %v3682_v52 = vsel %vm8637_vm5, %v6273_v47, %v3678_v19  ;;  %v5215_v19 = vor.u32 %v6007_v48, %v5212_v39  ;;  %v5196_v39 = vld [vmem:[%s10130_s1 + $0x218] sm:$0xf0] }
 0x286   : > { %6280 = vrcp.f32 %v8635_v33  ;;  %v2332_v18 = vadd.f32 %v2331_v50, %v8313_v36  ;;  %v2380_v44 = vpop.f32.mrf.mxu3  ;;  %v2235_v12 = vpop.f32.mrf.mxu0  ;;  %v8673_v47 = vsel %vm8641_vm6, %v3686_v11, %v3682_v52  ;;  %v4959_v20 = vor.u32 %v5943_v0, %v4956_v1  ;;  %v5939_v0 = vld [vmem:[%s10130_s1 + $0xc] sm:$0xf]  ;;  %v4940_v1 = vld [vmem:[%s10130_s1 + $0x18] sm:$0xf0] }
 0x287   : > { %10393 = vst [vmem:[#allocation8_spill] sm:$0xff] %v8673_v47  ;;  %v2236_v38 = vadd.f32 %v2235_v12, %v8258_v29  ;;  %v2284_v45 = vpop.f32.mrf.mxu1  ;;  %v3736_v63 = vsub.f32 1.0, %v3735_v4  ;;  %2744 = vmatpush.bf16.msrb.mxu3 %v5215_v19  ;;  %v3743_v48 = vand.u32 2147483647, %v8606_v30  ;;  %v5068_v4 = vld [vmem:[%s10130_s1 + $0x118] sm:$0xf0]  ;;  %vm3740_vm7 = vweird.f32 %v8633_v5 }
 0x288   : > { %v8678_v14 = vadd.f32 %v2380_v44, %v2332_v18  ;;  %2646 = vmatpush.bf16.msrb.mxu1 %v4959_v20  ;;  %v5971_v18 = vld [vmem:[%s10130_s1 + $0x10c] sm:$0xf]  ;;  %v4943_v20 = vor.u32 %v5939_v0, %v4940_v1  ;;  %v3803_v42 = vand.u32 2147483647, %v8635_v33  ;;  %vm8725_vm10 = vmor %vm3739_vm8, %vm3740_vm7  ;;  %vm3799_vm12 = vweird.f32 %v8635_v33 }
 0x289   : > { %v2285_v24 = vadd.f32 %v2284_v45, %v2236_v38  ;;  %v3737_v29 = vmul.f32 %v8633_v5, %v3736_v63  ;;  %v5071_v53 = vor.u32 %v5971_v18, %v5068_v4  ;;  %v3745_v63 = vand.u32 2147483648, %v8606_v30 }
 0x28a   : > { %vm8729_vm11 = vcmp.eq.f32.partialorder %v3743_v48, 8.507059e+37  ;;  %vm8750_vm14 = vcmp.eq.f32.partialorder %v3803_v42, 8.507059e+37  ;;  %v6063_v42 = vld [vmem:[%s10130_s1 + $0x3ec] sm:$0xf] }
 0x28b   : > { %v6279_v31 = vpop.eup %6278  ;;  %v5789_v15 = vmul.f32 -1.442695, %v2285_v24  ;;  %v6003_v24 = vld [vmem:[%s10130_s1 + $0x20c] sm:$0xf]  ;;  %2696 = vmatpush.bf16.msrb.mxu2 %v5071_v53  ;;  %v3738_v18 = vadd.f32 %v8633_v5, %v3737_v29  ;;  %v3746_v30 = vor.u32 1.1754944e-38, %v3745_v63 }
 0x28c   : > { %v8680_v13 = vpop.eup %6280  ;;  %v8682_v11 = vadd.f32 1.0, %v6279_v31  ;;  %v5199_v19 = vor.u32 %v6003_v24, %v5196_v39  ;;  %v10394_v24 = vld [vmem:[#allocation40_spill] sm:$0xff]  ;;  %2647 = vmatpush.bf16.msrb.mxu1 %v4943_v20  ;;  %v6127_v63 = vld [vmem:[%s10130_s1 + $0x5ec] sm:$0xf] }
 0x28d   : > { %6282 = vpow2.f32 %v5789_v15  ;;  %v2333_v52 = vpop.f32.mrf.mxu2  ;;  %v3795_v31 = vmul.f32 %v8680_v13, %v8635_v33  ;;  %vm3800_vm9 = vweird.f32 %v8680_v13 }
 0x28e   : > { %6284 = vrcp.f32 %v8682_v11  ;;  %v2334_v15 = vadd.f32 %v2333_v52, %v8313_v36  ;;  %v2382_v44 = vpop.f32.mrf.mxu3  ;;  %v2238_v12 = vpop.f32.mrf.mxu0  ;;  %2745 = vmatpush.bf16.msrb.mxu3 %v5199_v19  ;;  %vm8746_vm13 = vmor %vm3799_vm12, %vm3800_vm9  ;;  %vm3859_vm1 = vweird.f32 %v8682_v11 }
 0x28f   : > { %v2239_v38 = vadd.f32 %v2238_v12, %v8267_v32  ;;  %v2287_v45 = vpop.f32.mrf.mxu1  ;;  %v3796_v4 = vsub.f32 1.0, %v3795_v31  ;;  %v3805_v32 = vand.u32 2147483648, %v8635_v33  ;;  %v10406_v12 = vld [vmem:[#allocation24_spill] sm:$0xff] }
 0x290   : > { %v8710_v52 = vadd.f32 %v2382_v44, %v2334_v15  ;;  %v6131_v44 = vld [vmem:[%s10130_s1 + $0x60c] sm:$0xf] }
 0x291   : > { %v2288_v50 = vadd.f32 %v2287_v45, %v2239_v38  ;;  %2433 = vmatmul.bf16.gmra.mxu0 %v7028_v17  ;;  %v3797_v15 = vmul.f32 %v8680_v13, %v3796_v4 }
 0x292   : > { %2482 = vmatmul.bf16.gmra.mxu1 %v7030_v22  ;;  %2531 = vmatmul.bf16.gmra.mxu2 %v10394_v24 }
 0x293   : > { %v6283_v29 = vpop.eup %6282  ;;  %v5793_v31 = vmul.f32 -1.442695, %v2288_v50  ;;  %2580 = vmatmul.bf16.gmra.mxu3 %v10349_v51  ;;  %v3742_v50 = vsel %vm8725_vm10, %v8633_v5, %v3738_v18  ;;  %v3798_v0 = vadd.f32 %v8680_v13, %v3797_v15  ;;  %v3806_v5 = vor.u32 1.1754944e-38, %v3805_v32  ;;  %v5692_v18 = vld [vmem:[%s10130_s1 + $0x5f8] sm:$0xf0] }
 0x294   : > { %v8733_v53 = vpop.eup %6284  ;;  %v8735_v39 = vadd.f32 1.0, %v6283_v29  ;;  %v5695_v29 = vor.u32 %v6127_v63, %v5692_v18  ;;  %v8780_v38 = vsel %vm8729_vm11, %v3746_v30, %v3742_v50  ;;  %v6095_v63 = vld [vmem:[%s10130_s1 + $0x4ec] sm:$0xf]  ;;  %v5564_v18 = vld [vmem:[%s10130_s1 + $0x4f8] sm:$0xf0] }
 0x295   : > { %v3855_v1 = vmul.f32 %v8733_v53, %v8682_v11  ;;  %6286 = vpow2.f32 %v5793_v31  ;;  %v2336_v48 = vpop.f32.mrf.mxu2  ;;  %v3802_v4 = vsel %vm8746_vm13, %v8680_v13, %v3798_v0  ;;  %v5436_v31 = vld [vmem:[%s10130_s1 + $0x3f8] sm:$0xf0]  ;;  %10403 = vst [vmem:[#allocation40_spill] sm:$0xff] %v8780_v38  ;;  %v5567_v50 = vor.u32 %v6095_v63, %v5564_v18  ;;  %v6059_v38 = vld [vmem:[%s10130_s1 + $0x3cc] sm:$0xf] }
 0x296   : > { %6288 = vrcp.f32 %v8735_v39  ;;  %v2337_v33 = vadd.f32 %v2336_v48, %v8313_v36  ;;  %v2385_v19 = vpop.f32.mrf.mxu3  ;;  %v2240_v20 = vpop.f32.mrf.mxu0  ;;  %v5708_v48 = vld [vmem:[%s10130_s1 + $0x618] sm:$0xf0]  ;;  %v5439_v0 = vor.u32 %v6063_v42, %v5436_v31  ;;  %2885 = vmatpush.bf16.msra.mxu2 %v5695_v29  ;;  %v3865_v29 = vand.u32 2147483648, %v8682_v11 }
 0x297   : > { %v2241_v32 = vadd.f32 %v2240_v20, %v8271_v26  ;;  %v2289_v15 = vpop.f32.mrf.mxu1  ;;  %v8784_v26 = vsel %vm8750_vm14, %v3806_v5, %v3802_v4  ;;  %v5711_v20 = vor.u32 %v6131_v44, %v5708_v48  ;;  %v3856_v45 = vsub.f32 1.0, %v3855_v1  ;;  %2836 = vmatpush.bf16.msra.mxu1 %v5567_v50 }
 0x298   : > { %10404 = vst [vmem:[#allocation62_spill] sm:$0xff] %v8784_v26  ;;  %v8786_v13 = vadd.f32 %v2385_v19, %v2337_v33  ;;  %2787 = vmatpush.bf16.msra.mxu0 %v5439_v0  ;;  %v3863_v44 = vand.u32 2147483647, %v8682_v11  ;;  %v3923_v0 = vand.u32 2147483647, %v8735_v39  ;;  %vm3860_vm15 = vweird.f32 %v8733_v53 }
 0x299   : > { %v2290_v30 = vadd.f32 %v2289_v15, %v2241_v32  ;;  %2941 = vmatpush.bf16.msra.mxu3 %v5711_v20  ;;  %v3857_v19 = vmul.f32 %v8733_v53, %v3856_v45  ;;  %v3925_v45 = vand.u32 2147483648, %v8735_v39  ;;  %vm8815_vm3 = vmor %vm3859_vm1, %vm3860_vm15  ;;  %vm3919_vm6 = vweird.f32 %v8735_v39  ;;  %v5420_v26 = vld [vmem:[%s10130_s1 + $0x3d8] sm:$0xf0] }
 0x29a   : > { %vm8819_vm4 = vcmp.eq.f32.partialorder %v3863_v44, 8.507059e+37  ;;  %vm8823_vm5 = vcmp.eq.f32.partialorder %v3923_v0, 8.507059e+37  ;;  %v5676_v44 = vld [vmem:[%s10130_s1 + $0x5d8] sm:$0xf0] }
 0x29b   : > { %v6287_v5 = vpop.eup %6286  ;;  %v5797_v33 = vmul.f32 -1.442695, %v2290_v30  ;;  %v3858_v18 = vadd.f32 %v8733_v53, %v3857_v19  ;;  %v3926_v19 = vor.u32 1.1754944e-38, %v3925_v45 }
 0x29c   : > { %v6289_v42 = vpop.eup %6288  ;;  %v8797_v4 = vadd.f32 1.0, %v6287_v5 }
 0x29d   : > { %6290 = vpow2.f32 %v5797_v33  ;;  %v2338_v31 = vpop.f32.mrf.mxu2  ;;  %v3915_v48 = vmul.f32 %v6289_v42, %v8735_v39  ;;  %v10405_v33 = vld [vmem:[#allocation23_spill] sm:$0xff]  ;;  %vm3920_vm2 = vweird.f32 %v6289_v42 }
 0x29e   : > { %6292 = vrcp.f32 %v8797_v4  ;;  %v2339_v1 = vadd.f32 %v2338_v31, %v8313_v36  ;;  %v2387_v32 = vpop.f32.mrf.mxu3  ;;  %v2243_v15 = vpop.f32.mrf.mxu0  ;;  %vm3921_vm7 = vmor %vm3919_vm6, %vm3920_vm2  ;;  %vm3979_vm9 = vweird.f32 %v8797_v4 }
 0x29f   : > { %v2244_v20 = vadd.f32 %v2243_v15, %v8280_v55  ;;  %v2292_v63 = vpop.f32.mrf.mxu1  ;;  %v3916_v30 = vsub.f32 1.0, %v3915_v48  ;;  %v10407_v55 = vld [vmem:[#allocation43_spill] sm:$0xff] }
 0x2a0   : > { %v8808_v50 = vadd.f32 %v2387_v32, %v2339_v1  ;;  %v3866_v1 = vor.u32 1.1754944e-38, %v3865_v29  ;;  %v3862_v29 = vsel %vm8815_vm3, %v8733_v53, %v3858_v18  ;;  %v5423_v18 = vor.u32 %v6059_v38, %v5420_v26  ;;  %v6091_v48 = vld [vmem:[%s10130_s1 + $0x4cc] sm:$0xf] }
 0x2a1   : > { %v2293_v5 = vadd.f32 %v2292_v63, %v2244_v20  ;;  %2438 = vmatmul.bf16.gmra.mxu0 %v10405_v33  ;;  %v3917_v31 = vmul.f32 %v6289_v42, %v3916_v30  ;;  %v6123_v20 = vld [vmem:[%s10130_s1 + $0x5cc] sm:$0xf] }
 0x2a2   : > { %2487 = vmatmul.bf16.gmra.mxu1 %v10406_v12  ;;  %2536 = vmatmul.bf16.gmra.mxu2 %v10407_v55  ;;  %v8855_v47 = vsel %vm8819_vm4, %v3866_v1, %v3862_v29  ;;  %v5548_v1 = vld [vmem:[%s10130_s1 + $0x4d8] sm:$0xf0] }
 0x2a3   : > { %v6291_v11 = vpop.eup %6290  ;;  %v5801_v15 = vmul.f32 -1.442695, %v2293_v5  ;;  %2585 = vmatmul.bf16.gmra.mxu3 %v7438_v61  ;;  %v3918_v0 = vadd.f32 %v6289_v42, %v3917_v31  ;;  %v5679_v5 = vor.u32 %v6123_v20, %v5676_v44  ;;  %10414 = vst [vmem:[#allocation23_spill] sm:$0xff] %v8855_v47  ;;  %2788 = vmatpush.bf16.msra.mxu0 %v5423_v18 }
 0x2a4   : > { %v8838_v63 = vpop.eup %6292  ;;  %v8840_v30 = vadd.f32 1.0, %v6291_v11  ;;  %v5551_v29 = vor.u32 %v6091_v48, %v5548_v1 }
 0x2a5   : > { %v3975_v53 = vmul.f32 %v8838_v63, %v8797_v4  ;;  %6294 = vpow2.f32 %v5801_v15  ;;  %v2341_v39 = vpop.f32.mrf.mxu2  ;;  %v3922_v31 = vsel %vm3921_vm7, %v6289_v42, %v3918_v0  ;;  %2886 = vmatpush.bf16.msra.mxu2 %v5679_v5  ;;  %vm3980_vm8 = vweird.f32 %v8838_v63 }
 0x2a6   : > { %6296 = vrcp.f32 %v8840_v30  ;;  %v2342_v11 = vadd.f32 %v2341_v39, %v8313_v36  ;;  %v2390_v20 = vpop.f32.mrf.mxu3  ;;  %v2245_v44 = vpop.f32.mrf.mxu0  ;;  %v8859_v45 = vsel %vm8823_vm5, %v3926_v19, %v3922_v31  ;;  %2837 = vmatpush.bf16.msra.mxu1 %v5551_v29  ;;  %vm8892_vm11 = vmor %vm3979_vm9, %vm3980_vm8  ;;  %vm4039_vm13 = vweird.f32 %v8840_v30 }
 0x2a7   : > { %10415 = vst [vmem:[#allocation24_spill] sm:$0xff] %v8859_v45  ;;  %v2246_v15 = vadd.f32 %v2245_v44, %v8307_v6  ;;  %v2294_v61 = vpop.f32.mrf.mxu1  ;;  %v3976_v26 = vsub.f32 1.0, %v3975_v53 }
 0x2a8   : > { %v8864_v42 = vadd.f32 %v2390_v20, %v2342_v11 }
 0x2a9   : > { %v2295_v32 = vadd.f32 %v2294_v61, %v2246_v15  ;;  %v3977_v5 = vmul.f32 %v8838_v63, %v3976_v26  ;;  %v3983_v61 = vand.u32 2147483647, %v8797_v4 }
 0x2ab   : > { %v6295_v0 = vpop.eup %6294  ;;  %v5805_v6 = vmul.f32 -1.442695, %v2295_v32  ;;  %v3978_v26 = vadd.f32 %v8838_v63, %v3977_v5  ;;  %v3985_v32 = vand.u32 2147483648, %v8797_v4  ;;  %v10417_v5 = vld [vmem:[#allocation2_spill] sm:$0xff]  ;;  %vm8896_vm12 = vcmp.eq.f32.partialorder %v3983_v61, 8.507059e+37 }
 0x2ac   : > { %v6297_v19 = vpop.eup %6296  ;;  %v8873_v39 = vadd.f32 1.0, %v6295_v0  ;;  %v10416_v0 = vld [vmem:[#allocation27_spill] sm:$0xff] }
 0x2ad   : > { %6298 = vpow2.f32 %v5805_v6  ;;  %v2343_v53 = vpop.f32.mrf.mxu2  ;;  %v4035_v18 = vmul.f32 %v6297_v19, %v8840_v30  ;;  %vm4040_vm10 = vweird.f32 %v6297_v19  ;;  %v3982_v61 = vsel %vm8892_vm11, %v8838_v63, %v3978_v26 }
 0x2ae   : > { %6300 = vrcp.f32 %v8873_v39  ;;  %v2344_v31 = vadd.f32 %v2343_v53, %v8313_v36  ;;  %v2392_v11 = vpop.f32.mrf.mxu3  ;;  %v2404_v20 = vpop.f32.mrf.mxu0  ;;  %v4045_v36 = vand.u32 2147483648, %v8840_v30  ;;  %v10418_v53 = vld [vmem:[#allocation3_spill] sm:$0xff]  ;;  %v3986_v38 = vor.u32 1.1754944e-38, %v3985_v32  ;;  %vm4041_vm14 = vmor %vm4039_vm13, %vm4040_vm10 }
 0x2af   : > { %v2405_v44 = vadd.f32 %v2404_v20, %v8336_v16  ;;  %v2453_v15 = vpop.f32.mrf.mxu1  ;;  %v4036_v48 = vsub.f32 1.0, %v4035_v18  ;;  %v4043_v16 = vand.u32 2147483647, %v8840_v30  ;;  %v5660_v20 = vld [vmem:[%s10130_s1 + $0x5b8] sm:$0xf0]  ;;  %vm4099_vm1 = vweird.f32 %v8873_v39 }
 0x2b0   : > { %v8882_v1 = vadd.f32 %v2392_v11, %v2344_v31  ;;  %v6119_v11 = vld [vmem:[%s10130_s1 + $0x5ac] sm:$0xf]  ;;  %v4046_v47 = vor.u32 1.1754944e-38, %v4045_v36 }
 0x2b1   : > { %v2454_v29 = vadd.f32 %v2453_v15, %v2405_v44  ;;  %5728 = vmatmul.msk.bf16.vlgmr.msrb.gmra.mxu0 %vm1586_vm0, %v10416_v0  ;;  %v4037_v6 = vmul.f32 %v6297_v19, %v4036_v48  ;;  %v6055_v44 = vld [vmem:[%s10130_s1 + $0x3ac] sm:$0xf]  ;;  %vm4044_vm15 = vcmp.eq.f32.partialorder %v4043_v16, 8.507059e+37 }
 0x2b2   : > { %2648 = vmatmul.bf16.vlgmr.msrb.gmra.mxu1 %v10417_v5  ;;  %2697 = vmatmul.bf16.vlgmr.msrb.gmra.mxu2 %v10418_v53  ;;  %v5663_v5 = vor.u32 %v6119_v11, %v5660_v20  ;;  %v5404_v53 = vld [vmem:[%s10130_s1 + $0x3b8] sm:$0xf0]  ;;  %v8927_v20 = vsel %vm8896_vm12, %v3986_v38, %v3982_v61 }
 0x2b3   : > { %v6299_v31 = vpop.eup %6298  ;;  %2746 = vmatmul.bf16.vlgmr.msrb.gmra.mxu3 %v10353_v59  ;;  %v4038_v15 = vadd.f32 %v6297_v19, %v4037_v6  ;;  %v5407_v26 = vor.u32 %v6055_v44, %v5404_v53  ;;  %10423 = vst [vmem:[#allocation43_spill] sm:$0xff] %v8927_v20  ;;  %v5532_v38 = vld [vmem:[%s10130_s1 + $0x4b8] sm:$0xf0] }
 0x2b4   : > { %v8914_v59 = vpop.eup %6300  ;;  %v8916_v48 = vadd.f32 1.0, %v6299_v31  ;;  %2887 = vmatpush.bf16.msra.mxu2 %v5663_v5 }
 0x2b5   : > { %v4095_v18 = vmul.f32 %v8914_v59, %v8873_v39  ;;  %v2502_v63 = vpop.f32.mrf.mxu2  ;;  %v4042_v6 = vsel %vm4041_vm14, %v6297_v19, %v4038_v15  ;;  %2789 = vmatpush.bf16.msra.mxu0 %v5407_v26  ;;  %vm4100_vm2 = vweird.f32 %v8914_v59 }
 0x2b6   : > { %6302 = vrcp.f32 %v8916_v48  ;;  %v2503_v30 = vadd.f32 %v2502_v63, %v2454_v29  ;;  %v2551_v31 = vpop.f32.mrf.mxu3  ;;  %v2406_v11 = vpop.f32.mrf.mxu0  ;;  %v8929_v32 = vsel %vm4044_vm15, %v4046_v47, %v4042_v6  ;;  %v6087_v29 = vld [vmem:[%s10130_s1 + $0x4ac] sm:$0xf]  ;;  %vm8960_vm4 = vmor %vm4099_vm1, %vm4100_vm2  ;;  %vm4159_vm5 = vweird.f32 %v8916_v48 }
 0x2b7   : > { %v2407_v36 = vadd.f32 %v2406_v11, %v8343_v37  ;;  %v2455_v45 = vpop.f32.mrf.mxu1  ;;  %v4096_v16 = vsub.f32 1.0, %v4095_v18  ;;  %v5535_v4 = vor.u32 %v6087_v29, %v5532_v38  ;;  %v4103_v11 = vand.u32 2147483647, %v8873_v39  ;;  %v10424_v38 = vld [vmem:[#allocation30_spill] sm:$0xff] }
 0x2b8   : > { %v8934_v44 = vadd.f32 %v2551_v31, %v2503_v30 }
 0x2b9   : > { %v2456_v47 = vadd.f32 %v2455_v45, %v2407_v36  ;;  %2838 = vmatpush.bf16.msra.mxu1 %v5535_v4  ;;  %v4097_v37 = vmul.f32 %v8914_v59, %v4096_v16  ;;  %v4105_v36 = vand.u32 2147483648, %v8873_v39  ;;  %v4165_v16 = vand.u32 2147483648, %v8916_v48  ;;  %v10425_v4 = vld [vmem:[#allocation6_spill] sm:$0xff] }
 0x2ba   : > { %vm4104_vm7 = vcmp.eq.f32.partialorder %v4103_v11, 8.507059e+37  ;;  %v5516_v11 = vld [vmem:[%s10130_s1 + $0x498] sm:$0xf0] }
 0x2bb   : > { %v4098_v30 = vadd.f32 %v8914_v59, %v4097_v37  ;;  %v10426_v37 = vld [vmem:[#allocation7_spill] sm:$0xff] }
 0x2bc   : > { %v6303_v61 = vpop.eup %6302 }
 0x2bd   : > { %v2504_v15 = vpop.f32.mrf.mxu2  ;;  %v4155_v5 = vmul.f32 %v6303_v61, %v8916_v48  ;;  %vm4160_vm3 = vweird.f32 %v6303_v61  ;;  %v4102_v39 = vsel %vm8960_vm4, %v8914_v59, %v4098_v30 }
 0x2be   : > { %v2505_v53 = vadd.f32 %v2504_v15, %v2456_v47  ;;  %v2553_v18 = vpop.f32.mrf.mxu3  ;;  %v2409_v63 = vpop.f32.mrf.mxu0  ;;  %vm4161_vm6 = vmor %vm4159_vm5, %vm4160_vm3 }
 0x2bf   : > { %v2410_v26 = vadd.f32 %v2409_v63, %v8376_v54  ;;  %v2458_v6 = vpop.f32.mrf.mxu1  ;;  %v4156_v45 = vsub.f32 1.0, %v4155_v5  ;;  %v4163_v54 = vand.u32 2147483647, %v8916_v48  ;;  %v6115_v5 = vld [vmem:[%s10130_s1 + $0x58c] sm:$0xf] }
 0x2c0   : > { %v8948_v31 = vadd.f32 %v2553_v18, %v2505_v53  ;;  %v5644_v53 = vld [vmem:[%s10130_s1 + $0x598] sm:$0xf0]  ;;  %v6051_v18 = vld [vmem:[%s10130_s1 + $0x38c] sm:$0xf] }
 0x2c1   : > { %v2459_v29 = vadd.f32 %v2458_v6, %v2410_v26  ;;  %5729 = vmatmul.msk.bf16.gmra.mxu0 %vm1586_vm0, %v10424_v38  ;;  %v4157_v47 = vmul.f32 %v6303_v61, %v4156_v45  ;;  %v5388_v26 = vld [vmem:[%s10130_s1 + $0x398] sm:$0xf0]  ;;  %v4106_v6 = vor.u32 1.1754944e-38, %v4105_v36  ;;  %v4166_v45 = vor.u32 1.1754944e-38, %v4165_v16 }
 0x2c2   : > { %2653 = vmatmul.bf16.gmra.mxu1 %v10425_v4  ;;  %2702 = vmatmul.bf16.gmra.mxu2 %v10426_v37  ;;  %v5391_v37 = vor.u32 %v6051_v18, %v5388_v26  ;;  %vm4164_vm8 = vcmp.eq.f32.partialorder %v4163_v54, 8.507059e+37  ;;  %v10429_v26 = vld [vmem:[#allocation11_spill] sm:$0xff] }
 0x2c3   : > { %2751 = vmatmul.bf16.gmra.mxu3 %v10356_v49  ;;  %v4158_v63 = vadd.f32 %v6303_v61, %v4157_v47  ;;  %v5647_v49 = vor.u32 %v6115_v5, %v5644_v53  ;;  %v8982_v30 = vsel %vm4104_vm7, %v4106_v6, %v4102_v39  ;;  %v6111_v6 = vld [vmem:[%s10130_s1 + $0x56c] sm:$0xf] }
 0x2c4   : > { %2790 = vmatpush.bf16.msra.mxu0 %v5391_v37 }
 0x2c5   : > { %v2507_v4 = vpop.f32.mrf.mxu2  ;;  %v4162_v19 = vsel %vm4161_vm6, %v6303_v61, %v4158_v63  ;;  %2888 = vmatpush.bf16.msra.mxu2 %v5647_v49  ;;  %v6083_v61 = vld [vmem:[%s10130_s1 + $0x48c] sm:$0xf] }
 0x2c6   : > { %v2508_v20 = vadd.f32 %v2507_v4, %v2459_v29  ;;  %v2556_v15 = vpop.f32.mrf.mxu3  ;;  %v2411_v59 = vpop.f32.mrf.mxu0  ;;  %v8984_v48 = vsel %vm4164_vm8, %v4166_v45, %v4162_v19  ;;  %v5519_v19 = vor.u32 %v6083_v61, %v5516_v11  ;;  %v6047_v45 = vld [vmem:[%s10130_s1 + $0x36c] sm:$0xf] }
 0x2c7   : > { %v2412_v47 = vadd.f32 %v2411_v59, %v8390_v41  ;;  %v2460_v5 = vpop.f32.mrf.mxu1 }
 0x2c8   : > { %v8989_v16 = vadd.f32 %v2556_v15, %v2508_v20  ;;  %2839 = vmatpush.bf16.msra.mxu1 %v5519_v19  ;;  %v5500_v19 = vld [vmem:[%s10130_s1 + $0x478] sm:$0xf0] }
 0x2c9   : > { %v2461_v29 = vadd.f32 %v2460_v5, %v2412_v47 }
 0x2cd   : > { %v2509_v54 = vpop.f32.mrf.mxu2 }
 0x2ce   : > { %v2510_v41 = vadd.f32 %v2509_v54, %v2461_v29  ;;  %v2558_v53 = vpop.f32.mrf.mxu3  ;;  %v2414_v18 = vpop.f32.mrf.mxu0  ;;  %v6079_v29 = vld [vmem:[%s10130_s1 + $0x46c] sm:$0xf] }
 0x2cf   : > { %v2415_v39 = vadd.f32 %v2414_v18, %v8453_v46  ;;  %v2463_v63 = vpop.f32.mrf.mxu1  ;;  %v5628_v46 = vld [vmem:[%s10130_s1 + $0x578] sm:$0xf0] }
 0x2d0   : > { %v8998_v20 = vadd.f32 %v2558_v53, %v2510_v41  ;;  %v5631_v4 = vor.u32 %v6111_v6, %v5628_v46  ;;  %v5503_v41 = vor.u32 %v6079_v29, %v5500_v19  ;;  %v10430_v46 = vld [vmem:[#allocation35_spill] sm:$0xff] }
 0x2d1   : > { %v2464_v49 = vadd.f32 %v2463_v63, %v2415_v39  ;;  %5730 = vmatmul.msk.bf16.gmra.mxu0 %vm1586_vm0, %v10338_v34 }
 0x2d2   : > { %2658 = vmatmul.bf16.gmra.mxu1 %v10339_v62  ;;  %2707 = vmatmul.bf16.gmra.mxu2 %v6874_v40  ;;  %v5372_v62 = vld [vmem:[%s10130_s1 + $0x378] sm:$0xf0] }
 0x2d3   : > { %2756 = vmatmul.bf16.gmra.mxu3 %v10429_v26  ;;  %v5375_v37 = vor.u32 %v6047_v45, %v5372_v62  ;;  %2889 = vmatpush.bf16.msra.mxu2 %v5631_v4  ;;  %v10431_v45 = vld [vmem:[#allocation13_spill] sm:$0xff]  ;;  %v10432_v4 = vld [vmem:[#allocation14_spill] sm:$0xff]  ;;  %v6107_v62 = vld [vmem:[%s10130_s1 + $0x54c] sm:$0xf] }
 0x2d4   : > { %2840 = vmatpush.bf16.msra.mxu1 %v5503_v41  ;;  %v6075_v41 = vld [vmem:[%s10130_s1 + $0x44c] sm:$0xf] }
 0x2d5   : > { %v2512_v40 = vpop.f32.mrf.mxu2  ;;  %2791 = vmatpush.bf16.msra.mxu0 %v5375_v37 }
 0x2d6   : > { %v2513_v15 = vadd.f32 %v2512_v40, %v2464_v49  ;;  %v2561_v59 = vpop.f32.mrf.mxu3  ;;  %v2416_v47 = vpop.f32.mrf.mxu0  ;;  %v6043_v40 = vld [vmem:[%s10130_s1 + $0x34c] sm:$0xf] }
 0x2d7   : > { %v2417_v5 = vadd.f32 %v2416_v47, %v8466_v43  ;;  %v2465_v61 = vpop.f32.mrf.mxu1 }
 0x2d8   : > { %v9018_v11 = vadd.f32 %v2561_v59, %v2513_v15  ;;  %v5356_v15 = vld [vmem:[%s10130_s1 + $0x358] sm:$0xf0] }
 0x2d9   : > { %v2466_v54 = vadd.f32 %v2465_v61, %v2417_v5  ;;  %v5359_v47 = vor.u32 %v6043_v40, %v5356_v15  ;;  %v10434_v40 = vld [vmem:[#allocation15_spill] sm:$0xff] }
 0x2da   : > { %v6103_v15 = vld [vmem:[%s10130_s1 + $0x52c] sm:$0xf] }
 0x2db   : > { %2792 = vmatpush.bf16.msra.mxu0 %v5359_v47 }
 0x2dd   : > { %v2514_v53 = vpop.f32.mrf.mxu2 }
 0x2de   : > { %v2515_v18 = vadd.f32 %v2514_v53, %v2466_v54  ;;  %v2563_v39 = vpop.f32.mrf.mxu3  ;;  %v2419_v63 = vpop.f32.mrf.mxu0  ;;  %v5484_v53 = vld [vmem:[%s10130_s1 + $0x458] sm:$0xf0] }
 0x2df   : > { %v2420_v43 = vadd.f32 %v2419_v63, %v8528_v23  ;;  %v2468_v49 = vpop.f32.mrf.mxu1  ;;  %v5612_v23 = vld [vmem:[%s10130_s1 + $0x558] sm:$0xf0] }
 0x2e0   : > { %v9027_v26 = vadd.f32 %v2563_v39, %v2515_v18  ;;  %v5615_v37 = vor.u32 %v6107_v62, %v5612_v23  ;;  %v5487_v39 = vor.u32 %v6075_v41, %v5484_v53  ;;  %v10433_v23 = vld [vmem:[#allocation37_spill] sm:$0xff] }
 0x2e1   : > { %v2469_v6 = vadd.f32 %v2468_v49, %v2420_v43  ;;  %5731 = vmatmul.msk.bf16.gmra.mxu0 %vm1586_vm0, %v10430_v46 }
 0x2e2   : > { %2663 = vmatmul.bf16.gmra.mxu1 %v10431_v45  ;;  %2712 = vmatmul.bf16.gmra.mxu2 %v10432_v4 }
 0x2e3   : > { %2761 = vmatmul.bf16.gmra.mxu3 %v6914_v2  ;;  %2890 = vmatpush.bf16.msra.mxu2 %v5615_v37  ;;  %v10435_v37 = vld [vmem:[#allocation16_spill] sm:$0xff] }
 0x2e4   : > { %2841 = vmatpush.bf16.msra.mxu1 %v5487_v39  ;;  %v6071_v39 = vld [vmem:[%s10130_s1 + $0x42c] sm:$0xf] }
 0x2e5   : > { %v2517_v59 = vpop.f32.mrf.mxu2 }
 0x2e6   : > { %v2518_v2 = vadd.f32 %v2517_v59, %v2469_v6  ;;  %v2566_v5 = vpop.f32.mrf.mxu3  ;;  %v2421_v61 = vpop.f32.mrf.mxu0  ;;  %v6039_v59 = vld [vmem:[%s10130_s1 + $0x32c] sm:$0xf] }
 0x2e7   : > { %v2422_v29 = vadd.f32 %v2421_v61, %v8541_v10  ;;  %v2470_v19 = vpop.f32.mrf.mxu1 }
 0x2e8   : > { %v9047_v54 = vadd.f32 %v2566_v5, %v2518_v2  ;;  %v5340_v2 = vld [vmem:[%s10130_s1 + $0x338] sm:$0xf0] }
 0x2e9   : > { %v2471_v18 = vadd.f32 %v2470_v19, %v2422_v29  ;;  %v5343_v61 = vor.u32 %v6039_v59, %v5340_v2  ;;  %v10437_v59 = vld [vmem:[#allocation17_spill] sm:$0xff]  ;;  %v6099_v2 = vld [vmem:[%s10130_s1 + $0x50c] sm:$0xf] }
 0x2eb   : > { %2793 = vmatpush.bf16.msra.mxu0 %v5343_v61 }
 0x2ed   : > { %v2519_v63 = vpop.f32.mrf.mxu2 }
 0x2ee   : > { %v2520_v43 = vadd.f32 %v2519_v63, %v2471_v18  ;;  %v2568_v49 = vpop.f32.mrf.mxu3  ;;  %v2424_v6 = vpop.f32.mrf.mxu0  ;;  %v5468_v63 = vld [vmem:[%s10130_s1 + $0x438] sm:$0xf0] }
 0x2ef   : > { %v2425_v10 = vadd.f32 %v2424_v6, %v8603_v35  ;;  %v2473_v45 = vpop.f32.mrf.mxu1  ;;  %v5596_v35 = vld [vmem:[%s10130_s1 + $0x538] sm:$0xf0] }
 0x2f0   : > { %v9056_v4 = vadd.f32 %v2568_v49, %v2520_v43  ;;  %v5599_v47 = vor.u32 %v6103_v15, %v5596_v35  ;;  %v5471_v49 = vor.u32 %v6071_v39, %v5468_v63  ;;  %v10436_v35 = vld [vmem:[#allocation39_spill] sm:$0xff] }
 0x2f1   : > { %v2474_v62 = vadd.f32 %v2473_v45, %v2425_v10  ;;  %5732 = vmatmul.msk.bf16.gmra.mxu0 %vm1586_vm0, %v10433_v23 }
 0x2f2   : > { %2668 = vmatmul.bf16.gmra.mxu1 %v10434_v40  ;;  %2717 = vmatmul.bf16.gmra.mxu2 %v10435_v37 }
 0x2f3   : > { %2766 = vmatmul.bf16.gmra.mxu3 %v6952_v27  ;;  %2891 = vmatpush.bf16.msra.mxu2 %v5599_v47  ;;  %v10438_v47 = vld [vmem:[#allocation18_spill] sm:$0xff] }
 0x2f4   : > { %2842 = vmatpush.bf16.msra.mxu1 %v5471_v49  ;;  %v6067_v49 = vld [vmem:[%s10130_s1 + $0x40c] sm:$0xf] }
 0x2f5   : > { %v2522_v5 = vpop.f32.mrf.mxu2 }
 0x2f6   : > { %v2523_v27 = vadd.f32 %v2522_v5, %v2474_v62  ;;  %v2571_v29 = vpop.f32.mrf.mxu3  ;;  %v2426_v19 = vpop.f32.mrf.mxu0  ;;  %v6035_v5 = vld [vmem:[%s10130_s1 + $0x30c] sm:$0xf] }
 0x2f7   : > { %v2427_v41 = vadd.f32 %v2426_v19, %v8616_v60  ;;  %v2475_v53 = vpop.f32.mrf.mxu1 }
 0x2f8   : > { %v9076_v18 = vadd.f32 %v2571_v29, %v2523_v27  ;;  %v5324_v27 = vld [vmem:[%s10130_s1 + $0x318] sm:$0xf0] }
 0x2f9   : > { %v2476_v43 = vadd.f32 %v2475_v53, %v2427_v41  ;;  %v5327_v19 = vor.u32 %v6035_v5, %v5324_v27  ;;  %v10440_v5 = vld [vmem:[#allocation19_spill] sm:$0xff] }
 0x2fb   : > { %2794 = vmatpush.bf16.msra.mxu0 %v5327_v19 }
 0x2fd   : > { %v2524_v6 = vpop.f32.mrf.mxu2 }
 0x2fe   : > { %v2525_v10 = vadd.f32 %v2524_v6, %v2476_v43  ;;  %v2573_v45 = vpop.f32.mrf.mxu3  ;;  %v2429_v62 = vpop.f32.mrf.mxu0  ;;  %v5452_v6 = vld [vmem:[%s10130_s1 + $0x418] sm:$0xf0] }
 0x2ff   : > { %v2430_v60 = vadd.f32 %v2429_v62, %v8678_v14  ;;  %v2478_v40 = vpop.f32.mrf.mxu1  ;;  %v5580_v14 = vld [vmem:[%s10130_s1 + $0x518] sm:$0xf0] }
 0x300   : > { %v9085_v37 = vadd.f32 %v2573_v45, %v2525_v10  ;;  %v5583_v61 = vor.u32 %v6099_v2, %v5580_v14  ;;  %v5455_v45 = vor.u32 %v6067_v49, %v5452_v6  ;;  %v10439_v14 = vld [vmem:[#allocation42_spill] sm:$0xff] }
 0x301   : > { %v2479_v15 = vadd.f32 %v2478_v40, %v2430_v60  ;;  %5733 = vmatmul.msk.bf16.gmra.mxu0 %vm1586_vm0, %v10436_v35 }
 0x302   : > { %2673 = vmatmul.bf16.gmra.mxu1 %v10437_v59  ;;  %2722 = vmatmul.bf16.gmra.mxu2 %v10438_v47 }
 0x303   : > { %2771 = vmatmul.bf16.gmra.mxu3 %v6990_v56  ;;  %2892 = vmatpush.bf16.msra.mxu2 %v5583_v61  ;;  %v10441_v61 = vld [vmem:[#allocation20_spill] sm:$0xff] }
 0x304   : > { %2843 = vmatpush.bf16.msra.mxu1 %v5455_v45 }
 0x305   : > { %v2527_v29 = vpop.f32.mrf.mxu2 }
 0x306   : > { %v2528_v56 = vadd.f32 %v2527_v29, %v2479_v15  ;;  %v2576_v41 = vpop.f32.mrf.mxu3  ;;  %v2431_v53 = vpop.f32.mrf.mxu0 }
 0x307   : > { %v2432_v39 = vadd.f32 %v2431_v53, %v8710_v52  ;;  %v2480_v63 = vpop.f32.mrf.mxu1 }
 0x308   : > { %v9105_v43 = vadd.f32 %v2576_v41, %v2528_v56 }
 0x309   : > { %v2481_v10 = vadd.f32 %v2480_v63, %v2432_v39 }
 0x30d   : > { %v2529_v62 = vpop.f32.mrf.mxu2 }
 0x30e   : > { %v2530_v60 = vadd.f32 %v2529_v62, %v2481_v10  ;;  %v2578_v40 = vpop.f32.mrf.mxu3  ;;  %v2434_v15 = vpop.f32.mrf.mxu0 }
 0x30f   : > { %v2435_v52 = vadd.f32 %v2434_v15, %v8786_v13  ;;  %v2483_v59 = vpop.f32.mrf.mxu1  ;;  %v10443_v15 = vld [vmem:[#allocation21_spill] sm:$0xff] }
 0x310   : > { %v9114_v47 = vadd.f32 %v2578_v40, %v2530_v60  ;;  %v10442_v40 = vld [vmem:[#allocation45_spill] sm:$0xff] }
 0x311   : > { %v2484_v2 = vadd.f32 %v2483_v59, %v2435_v52  ;;  %5734 = vmatmul.msk.bf16.gmra.mxu0 %vm1586_vm0, %v10439_v14 }
 0x312   : > { %2678 = vmatmul.bf16.gmra.mxu1 %v10440_v5  ;;  %2727 = vmatmul.bf16.gmra.mxu2 %v10441_v61 }
 0x313   : > { %2776 = vmatmul.bf16.gmra.mxu3 %v7028_v17 }
 0x315   : > { %v2532_v27 = vpop.f32.mrf.mxu2 }
 0x316   : > { %v2533_v29 = vadd.f32 %v2532_v27, %v2484_v2  ;;  %v2581_v19 = vpop.f32.mrf.mxu3  ;;  %v2436_v56 = vpop.f32.mrf.mxu0 }
 0x317   : > { %v2437_v41 = vadd.f32 %v2436_v56, %v8808_v50  ;;  %v2485_v13 = vpop.f32.mrf.mxu1  ;;  %v10444_v50 = vld [vmem:[#allocation22_spill] sm:$0xff] }
 0x318   : > { %v9122_v53 = vadd.f32 %v2581_v19, %v2533_v29 }
 0x319   : > { %v2486_v39 = vadd.f32 %v2485_v13, %v2437_v41 }
 0x31d   : > { %v2534_v63 = vpop.f32.mrf.mxu2 }
 0x31e   : > { %v2535_v49 = vadd.f32 %v2534_v63, %v2486_v39  ;;  %v2583_v6 = vpop.f32.mrf.mxu3  ;;  %v2439_v10 = vpop.f32.mrf.mxu0  ;;  %v6497_v39 = vld [vmem:[%s10131_s2] sm:$0xf] }
 0x31f   : > { %v2440_v45 = vadd.f32 %v2439_v10, %v8864_v42  ;;  %v2488_v62 = vpop.f32.mrf.mxu1  ;;  %v9138_v63 = vperm.slane %v6497_v39, 3  ;;  %v10445_v10 = vld [vmem:[#allocation5_spill] sm:$0xff] }
 0x320   : > { %v9125_v60 = vadd.f32 %v2583_v6, %v2535_v49 }
 0x321   : > { %v2489_v17 = vadd.f32 %v2488_v62, %v2440_v45  ;;  %5735 = vmatmul.msk.bf16.gmra.mxu0 %vm1586_vm0, %v10442_v40  ;;  %v10446_v62 = vld [vmem:[#allocation25_spill] sm:$0xff] }
 0x322   : > { %2683 = vmatmul.bf16.gmra.mxu1 %v10443_v15  ;;  %2732 = vmatmul.bf16.gmra.mxu2 %v10444_v50 }
 0x323   : > { %2781 = vmatmul.bf16.gmra.mxu3 %v10405_v33 }
 0x325   : > { %v2537_v52 = vpop.f32.mrf.mxu2 }
 0x326   : > { %v2538_v59 = vadd.f32 %v2537_v52, %v2489_v17  ;;  %v2586_v2 = vpop.f32.mrf.mxu3  ;;  %v2441_v5 = vpop.f32.mrf.mxu0  ;;  %v10447_v17 = vld [vmem:[#allocation26_spill] sm:$0xff] }
 0x327   : > { %v2442_v61 = vadd.f32 %v2441_v5, %v8882_v1  ;;  %v2490_v42 = vpop.f32.mrf.mxu1 }
 0x328   : > { %v9133_v27 = vadd.f32 %v2586_v2, %v2538_v59 }
 0x329   : > { %v2491_v29 = vadd.f32 %v2490_v42, %v2442_v61 }
 0x32d   : > { %v2539_v19 = vpop.f32.mrf.mxu2 }
 0x32e   : > { %v2540_v56 = vadd.f32 %v2539_v19, %v2491_v29  ;;  %v2588_v41 = vpop.f32.mrf.mxu3  ;;  %v2600_v13 = vpop.f32.mrf.mxu0 }
 0x32f   : > { %v2601_v33 = vadd.f32 %v2600_v13, %v8934_v44  ;;  %v2649_v49 = vpop.f32.mrf.mxu1 }
 0x330   : > { %v9141_v6 = vadd.f32 %v2588_v41, %v2540_v56  ;;  %v2650_v45 = vadd.f32 %v2649_v49, %v9138_v63 }
 0x331   : > { %v5746_v1 = vmul.f32 -1.442695, %v2601_v33  ;;  %2795 = vmatmul.bf16.vlgmr.msra.gmra.mxu0 %v10445_v10  ;;  %v10448_v10 = vld [vmem:[#allocation9_spill] sm:$0xff] }
 0x332   : > { %2844 = vmatmul.bf16.vlgmr.msra.gmra.mxu1 %v10446_v62  ;;  %2893 = vmatmul.bf16.vlgmr.msra.gmra.mxu2 %v10447_v17 }
 0x333   : > { %6304 = vpow2.f32 %v5746_v1  ;;  %5736 = vmatmul.msk.bf16.vlgmr.msra.gmra.mxu3 %vm1586_vm0, %v10416_v0 }
 0x335   : > { %v2698_v15 = vpop.f32.mrf.mxu2 }
 0x336   : > { %v2699_v50 = vadd.f32 %v2698_v15, %v2650_v45  ;;  %v2747_v52 = vpop.f32.mrf.mxu3  ;;  %v2602_v44 = vpop.f32.mrf.mxu0  ;;  %v10449_v15 = vld [vmem:[#allocation28_spill] sm:$0xff] }
 0x337   : > { %v2603_v59 = vadd.f32 %v2602_v44, %v8948_v31  ;;  %v2651_v2 = vpop.f32.mrf.mxu1 }
 0x338   : > { %v9150_v5 = vadd.f32 %v2747_v52, %v2699_v50  ;;  %v2652_v19 = vadd.f32 %v2651_v2, %v9138_v63  ;;  %v10450_v50 = vld [vmem:[#allocation29_spill] sm:$0xff] }
 0x339   : > { %v6305_v61 = vpop.eup %6304  ;;  %v5750_v42 = vmul.f32 -1.442695, %v2603_v59  ;;  %v6157_v52 = vld [vmem:[%s10132_s3 + $0xb8] sm:$0xff] }
 0x33a   : > { %v9152_v29 = vadd.f32 1.0, %v6305_v61  ;;  %4589 = vmatpush.bf16.msrb.mxu2 %v6157_v52 }
 0x33b   : > { %6306 = vpow2.f32 %v5750_v42 }
 0x33c   : > { %6308 = vrcp.f32 %v9152_v29  ;;  %vm3274_vm10 = vweird.f32 %v9152_v29 }
 0x33d   : > { %v2700_v56 = vpop.f32.mrf.mxu2 }
 0x33e   : > { %v2701_v0 = vadd.f32 %v2700_v56, %v2652_v19  ;;  %v2749_v41 = vpop.f32.mrf.mxu3  ;;  %v2605_v13 = vpop.f32.mrf.mxu0 }
 0x33f   : > { %v2606_v39 = vadd.f32 %v2605_v13, %v8989_v16  ;;  %v2654_v33 = vpop.f32.mrf.mxu1 }
 0x340   : > { %v9157_v31 = vadd.f32 %v2749_v41, %v2701_v0  ;;  %v2655_v17 = vadd.f32 %v2654_v33, %v9138_v63 }
 0x341   : > { %v6307_v49 = vpop.eup %6306  ;;  %v5754_v1 = vmul.f32 -1.442695, %v2606_v39  ;;  %2800 = vmatmul.bf16.gmra.mxu0 %v10448_v10 }
 0x342   : > { %v9160_v45 = vpop.eup %6308  ;;  %v9162_v62 = vadd.f32 1.0, %v6307_v49  ;;  %2849 = vmatmul.bf16.gmra.mxu1 %v10449_v15  ;;  %2898 = vmatmul.bf16.gmra.mxu2 %v10450_v50 }
 0x343   : > { %v3270_v16 = vmul.f32 %v9160_v45, %v9152_v29  ;;  %6310 = vpow2.f32 %v5754_v1  ;;  %5737 = vmatmul.msk.bf16.gmra.mxu3 %vm1586_vm0, %v10424_v38  ;;  %v3280_v1 = vand.u32 2147483648, %v9152_v29  ;;  %vm3275_vm9 = vweird.f32 %v9160_v45 }
 0x344   : > { %6312 = vrcp.f32 %v9162_v62  ;;  %v3340_v50 = vand.u32 2147483648, %v9162_v62  ;;  %vm9194_vm12 = vmor %vm3274_vm10, %vm3275_vm9  ;;  %vm3334_vm13 = vweird.f32 %v9162_v62 }
 0x345   : > { %v3271_v44 = vsub.f32 1.0, %v3270_v16  ;;  %v2703_v59 = vpop.f32.mrf.mxu2 }
 0x346   : > { %v2704_v2 = vadd.f32 %v2703_v59, %v2655_v17  ;;  %v2752_v61 = vpop.f32.mrf.mxu3  ;;  %v2607_v42 = vpop.f32.mrf.mxu0  ;;  %v3278_v59 = vand.u32 2147483647, %v9152_v29 }
 0x347   : > { %v2608_v19 = vadd.f32 %v2607_v42, %v8998_v20  ;;  %v2656_v56 = vpop.f32.mrf.mxu1  ;;  %v3272_v38 = vmul.f32 %v9160_v45, %v3271_v44 }
 0x348   : > { %v9176_v0 = vadd.f32 %v2752_v61, %v2704_v2  ;;  %v2657_v10 = vadd.f32 %v2656_v56, %v9138_v63  ;;  %vm3279_vm14 = vcmp.eq.f32.partialorder %v3278_v59, 8.507059e+37  ;;  %v6149_v59 = vld [vmem:[%s10132_s3 + $0x78] sm:$0xff] }
 0x349   : > { %v6311_v41 = vpop.eup %6310  ;;  %v5758_v13 = vmul.f32 -1.442695, %v2608_v19  ;;  %v3273_v15 = vadd.f32 %v9160_v45, %v3272_v38  ;;  %v3338_v19 = vand.u32 2147483647, %v9162_v62  ;;  %4540 = vmatpush.bf16.msrb.mxu1 %v6149_v59 }
 0x34a   : > { %v6313_v39 = vpop.eup %6312  ;;  %v9179_v33 = vadd.f32 1.0, %v6311_v41  ;;  %v3281_v41 = vor.u32 1.1754944e-38, %v3280_v1  ;;  %v10454_v1 = vld [vmem:[#allocation31_spill] sm:$0xff] }
 0x34b   : > { %v3330_v49 = vmul.f32 %v6313_v39, %v9162_v62  ;;  %6314 = vpow2.f32 %v5758_v13  ;;  %vm3335_vm11 = vweird.f32 %v6313_v39  ;;  %v3341_v62 = vor.u32 1.1754944e-38, %v3340_v50 }
 0x34c   : > { %6316 = vrcp.f32 %v9179_v33  ;;  %vm3336_vm15 = vmor %vm3334_vm13, %vm3335_vm11  ;;  %vm3339_vm1 = vcmp.eq.f32.partialorder %v3338_v19, 8.507059e+37  ;;  %vm3394_vm3 = vweird.f32 %v9179_v33 }
 0x34d   : > { %v3331_v20 = vsub.f32 1.0, %v3330_v49  ;;  %v2705_v17 = vpop.f32.mrf.mxu2  ;;  %v10453_v49 = vld [vmem:[#allocation12_spill] sm:$0xff] }
 0x34e   : > { %v2706_v16 = vadd.f32 %v2705_v17, %v2657_v10  ;;  %v2754_v52 = vpop.f32.mrf.mxu3  ;;  %v2610_v44 = vpop.f32.mrf.mxu0 }
 0x34f   : > { %v3332_v2 = vmul.f32 %v6313_v39, %v3331_v20  ;;  %v2611_v61 = vadd.f32 %v2610_v44, %v9018_v11  ;;  %v2659_v42 = vpop.f32.mrf.mxu1  ;;  %v3277_v11 = vsel %vm9194_vm12, %v9160_v45, %v3273_v15  ;;  %v6141_v45 = vld [vmem:[%s10132_s3 + $0x38] sm:$0xff] }
 0x350   : > { %v9198_v38 = vadd.f32 %v2754_v52, %v2706_v16  ;;  %v2660_v44 = vadd.f32 %v2659_v42, %v9138_v63  ;;  %v10455_v16 = vld [vmem:[#allocation32_spill] sm:$0xff]  ;;  %v6165_v15 = vld [vmem:[%s10132_s3 + $0xf8] sm:$0xff]  ;;  %4491 = vmatpush.bf16.msrb.mxu0 %v6141_v45 }
 0x351   : > { %v6315_v13 = vpop.eup %6314  ;;  %v5762_v29 = vmul.f32 -1.442695, %v2611_v61  ;;  %2805 = vmatmul.bf16.gmra.mxu0 %v10453_v49  ;;  %v3333_v10 = vadd.f32 %v6313_v39, %v3332_v2  ;;  %v9230_v2 = vsel %vm3279_vm14, %v3281_v41, %v3277_v11  ;;  %4638 = vmatpush.bf16.msrb.mxu3 %v6165_v15  ;;  %v3398_v15 = vand.u32 2147483647, %v9179_v33 }
 0x352   : > { %v9205_v20 = vpop.eup %6316  ;;  %v9207_v17 = vadd.f32 1.0, %v6315_v13  ;;  %2854 = vmatmul.bf16.gmra.mxu1 %v10454_v1  ;;  %2903 = vmatmul.bf16.gmra.mxu2 %v10455_v16 }
 0x353   : > { %v3390_v52 = vmul.f32 %v9205_v20, %v9179_v33  ;;  %6318 = vpow2.f32 %v5762_v29  ;;  %5738 = vmatmul.msk.bf16.gmra.mxu3 %vm1586_vm0, %v10338_v34  ;;  %v3337_v50 = vsel %vm3336_vm15, %v6313_v39, %v3333_v10  ;;  %v6156_v34 = vld [vmem:[%s10132_s3 + $0xb0] sm:$0xff]  ;;  %vm3395_vm2 = vweird.f32 %v9205_v20 }
 0x354   : > { %6320 = vrcp.f32 %v9207_v17  ;;  %v9232_v61 = vsel %vm3339_vm1, %v3341_v62, %v3337_v50  ;;  %4590 = vmatpush.bf16.msrb.mxu2 %v6156_v34  ;;  %vm9255_vm5 = vmor %vm3394_vm3, %vm3395_vm2  ;;  %vm9259_vm6 = vcmp.eq.f32.partialorder %v3398_v15, 8.507059e+37  ;;  %vm3454_vm7 = vweird.f32 %v9207_v17 }
 0x355   : > { %v2708_v42 = vpop.f32.mrf.mxu2  ;;  %v4201_v56 = vpack.c.bf16 %v9232_v61, %v9230_v2  ;;  %v3391_v13 = vsub.f32 1.0, %v3390_v52 }
 0x356   : > { %v2709_v29 = vadd.f32 %v2708_v42, %v2660_v44  ;;  %v2757_v39 = vpop.f32.mrf.mxu3  ;;  %v2612_v19 = vpop.f32.mrf.mxu0 }
 0x357   : > { %v2613_v49 = vadd.f32 %v2612_v19, %v9027_v26  ;;  %v2661_v10 = vpop.f32.mrf.mxu1  ;;  %v3392_v16 = vmul.f32 %v9205_v20, %v3391_v13 }
 0x358   : > { %v9237_v1 = vadd.f32 %v2757_v39, %v2709_v29  ;;  %v2662_v44 = vadd.f32 %v2661_v10, %v9138_v63  ;;  %v3400_v29 = vand.u32 2147483648, %v9179_v33  ;;  %v3460_v39 = vand.u32 2147483648, %v9207_v17 }
 0x359   : > { %v6319_v41 = vpop.eup %6318  ;;  %v5766_v11 = vmul.f32 -1.442695, %v2613_v49  ;;  %v3393_v59 = vadd.f32 %v9205_v20, %v3392_v16 }
 0x35a   : > { %v6321_v62 = vpop.eup %6320  ;;  %v9240_v45 = vadd.f32 1.0, %v6319_v41  ;;  %v3458_v41 = vand.u32 2147483647, %v9207_v17 }
 0x35b   : > { %6322 = vpow2.f32 %v5766_v11  ;;  %v3450_v52 = vmul.f32 %v6321_v62, %v9207_v17  ;;  %vm3455_vm4 = vweird.f32 %v6321_v62  ;;  %v6140_v17 = vld [vmem:[%s10132_s3 + $0x30] sm:$0xff] }
 0x35c   : > { %6324 = vrcp.f32 %v9240_v45  ;;  %vm3456_vm8 = vmor %vm3454_vm7, %vm3455_vm4  ;;  %vm3459_vm9 = vcmp.eq.f32.partialorder %v3458_v41, 8.507059e+37  ;;  %4492 = vmatpush.bf16.msrb.mxu0 %v6140_v17  ;;  %v3518_v17 = vand.u32 2147483647, %v9240_v45  ;;  %vm3514_vm11 = vweird.f32 %v9240_v45 }
 0x35d   : > { %v2710_v26 = vpop.f32.mrf.mxu2  ;;  %v3451_v50 = vsub.f32 1.0, %v3450_v52 }
 0x35e   : > { %v2711_v34 = vadd.f32 %v2710_v26, %v2662_v44  ;;  %v2759_v42 = vpop.f32.mrf.mxu3  ;;  %v2615_v13 = vpop.f32.mrf.mxu0  ;;  %vm9324_vm14 = vcmp.eq.f32.partialorder %v3518_v17, 8.507059e+37 }
 0x35f   : > { %v2616_v19 = vadd.f32 %v2615_v13, %v9047_v54  ;;  %v2664_v49 = vpop.f32.mrf.mxu1  ;;  %v3452_v10 = vmul.f32 %v6321_v62, %v3451_v50  ;;  %v3397_v54 = vsel %vm9255_vm5, %v9205_v20, %v3393_v59 }
 0x360   : > { %v9253_v11 = vadd.f32 %v2759_v42, %v2711_v34  ;;  %v2665_v15 = vadd.f32 %v2664_v49, %v9138_v63  ;;  %v3401_v42 = vor.u32 1.1754944e-38, %v3400_v29 }
 0x361   : > { %v6323_v33 = vpop.eup %6322  ;;  %v5770_v44 = vmul.f32 -1.442695, %v2616_v19  ;;  %2810 = vmatmul.bf16.gmra.mxu0 %v6916_v3  ;;  %v3453_v26 = vadd.f32 %v6321_v62, %v3452_v10  ;;  %v3461_v3 = vor.u32 1.1754944e-38, %v3460_v39 }
 0x362   : > { %v9268_v50 = vpop.eup %6324  ;;  %v9270_v34 = vadd.f32 1.0, %v6323_v33  ;;  %2859 = vmatmul.bf16.gmra.mxu1 %v7254_v8  ;;  %2908 = vmatmul.bf16.gmra.mxu2 %v10340_v25  ;;  %v6164_v8 = vld [vmem:[%s10132_s3 + $0xf0] sm:$0xff]  ;;  %v9295_v13 = vsel %vm9259_vm6, %v3401_v42, %v3397_v54 }
 0x363   : > { %v3510_v20 = vmul.f32 %v9268_v50, %v9240_v45  ;;  %6326 = vpow2.f32 %v5770_v44  ;;  %5739 = vmatmul.msk.bf16.gmra.mxu3 %vm1586_vm0, %v10430_v46  ;;  %v6148_v25 = vld [vmem:[%s10132_s3 + $0x70] sm:$0xff]  ;;  %v3457_v59 = vsel %vm3456_vm8, %v6321_v62, %v3453_v26  ;;  %v6155_v46 = vld [vmem:[%s10132_s3 + $0xa8] sm:$0xff]  ;;  %vm3515_vm10 = vweird.f32 %v9268_v50 }
 0x364   : > { %6328 = vrcp.f32 %v9270_v34  ;;  %v9297_v29 = vsel %vm3459_vm9, %v3461_v3, %v3457_v59  ;;  %4639 = vmatpush.bf16.msrb.mxu3 %v6164_v8  ;;  %4541 = vmatpush.bf16.msrb.mxu1 %v6148_v25  ;;  %vm9320_vm13 = vmor %vm3514_vm11, %vm3515_vm10  ;;  %vm3574_vm15 = vweird.f32 %v9270_v34 }
 0x365   : > { %v2713_v39 = vpop.f32.mrf.mxu2  ;;  %v4205_v19 = vpack.c.bf16 %v9297_v29, %v9295_v13  ;;  %v3511_v62 = vsub.f32 1.0, %v3510_v20  ;;  %4591 = vmatpush.bf16.msrb.mxu2 %v6155_v46 }
 0x366   : > { %v2714_v49 = vadd.f32 %v2713_v39, %v2665_v15  ;;  %v2762_v10 = vpop.f32.mrf.mxu3  ;;  %v2617_v41 = vpop.f32.mrf.mxu0 }
 0x367   : > { %v2618_v16 = vadd.f32 %v2617_v41, %v9056_v4  ;;  %v2666_v33 = vpop.f32.mrf.mxu1  ;;  %v3512_v26 = vmul.f32 %v9268_v50, %v3511_v62  ;;  %v3520_v62 = vand.u32 2147483648, %v9240_v45 }
 0x368   : > { %v9302_v52 = vadd.f32 %v2762_v10, %v2714_v49  ;;  %v2667_v15 = vadd.f32 %v2666_v33, %v9138_v63  ;;  %v3580_v49 = vand.u32 2147483648, %v9270_v34  ;;  %v3578_v33 = vand.u32 2147483647, %v9270_v34 }
 0x369   : > { %v6327_v44 = vpop.eup %6326  ;;  %v5774_v54 = vmul.f32 -1.442695, %v2618_v16  ;;  %v3513_v8 = vadd.f32 %v9268_v50, %v3512_v26 }
 0x36a   : > { %v6329_v42 = vpop.eup %6328  ;;  %v9305_v3 = vadd.f32 1.0, %v6327_v44  ;;  %vm3579_vm2 = vcmp.eq.f32.partialorder %v3578_v33, 8.507059e+37 }
 0x36b   : > { %6330 = vpow2.f32 %v5774_v54  ;;  %v3570_v20 = vmul.f32 %v6329_v42, %v9270_v34  ;;  %vm3575_vm12 = vweird.f32 %v6329_v42  ;;  %v6139_v34 = vld [vmem:[%s10132_s3 + $0x28] sm:$0xff] }
 0x36c   : > { %6332 = vrcp.f32 %v9305_v3  ;;  %vm3576_vm1 = vmor %vm3574_vm15, %vm3575_vm12  ;;  %4493 = vmatpush.bf16.msrb.mxu0 %v6139_v34  ;;  %v3638_v34 = vand.u32 2147483647, %v9305_v3  ;;  %vm3634_vm5 = vweird.f32 %v9305_v3 }
 0x36d   : > { %v2715_v4 = vpop.f32.mrf.mxu2  ;;  %v3571_v25 = vsub.f32 1.0, %v3570_v20 }
 0x36e   : > { %v2716_v59 = vadd.f32 %v2715_v4, %v2667_v15  ;;  %v2764_v46 = vpop.f32.mrf.mxu3  ;;  %v2620_v39 = vpop.f32.mrf.mxu0  ;;  %vm9404_vm8 = vcmp.eq.f32.partialorder %v3638_v34, 8.507059e+37  ;;  %v6145_v34 = vld [vmem:[%s10132_s3 + $0x58] sm:$0xff] }
 0x36f   : > { %v2621_v10 = vadd.f32 %v2620_v39, %v9076_v18  ;;  %v2669_v41 = vpop.f32.mrf.mxu1  ;;  %v3572_v16 = vmul.f32 %v6329_v42, %v3571_v25  ;;  %v3517_v18 = vsel %vm9320_vm13, %v9268_v50, %v3513_v8 }
 0x370   : > { %v9318_v44 = vadd.f32 %v2764_v46, %v2716_v59  ;;  %v2670_v17 = vadd.f32 %v2669_v41, %v9138_v63  ;;  %v3521_v59 = vor.u32 1.1754944e-38, %v3520_v62 }
 0x371   : > { %v6331_v45 = vpop.eup %6330  ;;  %v5778_v20 = vmul.f32 -1.442695, %v2621_v10  ;;  %2815 = vmatmul.bf16.gmra.mxu0 %v6954_v28  ;;  %v3573_v15 = vadd.f32 %v6329_v42, %v3572_v16  ;;  %v3581_v28 = vor.u32 1.1754944e-38, %v3580_v49 }
 0x372   : > { %v9333_v4 = vpop.eup %6332  ;;  %v9335_v25 = vadd.f32 1.0, %v6331_v45  ;;  %2864 = vmatmul.bf16.gmra.mxu1 %v7301_v9  ;;  %2913 = vmatmul.bf16.gmra.mxu2 %v10343_v58  ;;  %v6163_v9 = vld [vmem:[%s10132_s3 + $0xe8] sm:$0xff]  ;;  %v9360_v46 = vsel %vm9324_vm14, %v3521_v59, %v3517_v18 }
 0x373   : > { %v3630_v50 = vmul.f32 %v9333_v4, %v9305_v3  ;;  %6334 = vpow2.f32 %v5778_v20  ;;  %5740 = vmatmul.msk.bf16.gmra.mxu3 %vm1586_vm0, %v10433_v23  ;;  %v6147_v58 = vld [vmem:[%s10132_s3 + $0x68] sm:$0xff]  ;;  %v3577_v8 = vsel %vm3576_vm1, %v6329_v42, %v3573_v15  ;;  %v6154_v23 = vld [vmem:[%s10132_s3 + $0xa0] sm:$0xff]  ;;  %vm3635_vm3 = vweird.f32 %v9333_v4 }
 0x374   : > { %6336 = vrcp.f32 %v9335_v25  ;;  %v9362_v39 = vsel %vm3579_vm2, %v3581_v28, %v3577_v8  ;;  %4640 = vmatpush.bf16.msrb.mxu3 %v6163_v9  ;;  %4542 = vmatpush.bf16.msrb.mxu1 %v6147_v58  ;;  %vm9395_vm6 = vmor %vm3634_vm5, %vm3635_vm3  ;;  %vm3694_vm7 = vweird.f32 %v9335_v25 }
 0x375   : > { %v2718_v62 = vpop.f32.mrf.mxu2  ;;  %v4209_v49 = vpack.c.bf16 %v9362_v39, %v9360_v46  ;;  %v3631_v42 = vsub.f32 1.0, %v3630_v50  ;;  %4592 = vmatpush.bf16.msrb.mxu2 %v6154_v23 }
 0x376   : > { %v2719_v10 = vadd.f32 %v2718_v62, %v2670_v17  ;;  %v2767_v41 = vpop.f32.mrf.mxu3  ;;  %v2622_v16 = vpop.f32.mrf.mxu0  ;;  %v6138_v62 = vld [vmem:[%s10132_s3 + $0x20] sm:$0xff] }
 0x377   : > { %v2623_v33 = vadd.f32 %v2622_v16, %v9085_v37  ;;  %v2671_v54 = vpop.f32.mrf.mxu1  ;;  %v3632_v18 = vmul.f32 %v9333_v4, %v3631_v42  ;;  %v6146_v42 = vld [vmem:[%s10132_s3 + $0x60] sm:$0xff]  ;;  %4494 = vmatpush.bf16.msrb.mxu0 %v6138_v62 }
 0x378   : > { %v9367_v26 = vadd.f32 %v2767_v41, %v2719_v10  ;;  %v2672_v17 = vadd.f32 %v2671_v54, %v9138_v63  ;;  %v3640_v10 = vand.u32 2147483648, %v9305_v3  ;;  %v3700_v41 = vand.u32 2147483648, %v9335_v25  ;;  %4543 = vmatpush.bf16.msrb.mxu1 %v6146_v42 }
 0x379   : > { %v6335_v45 = vpop.eup %6334  ;;  %v5782_v20 = vmul.f32 -1.442695, %v2623_v33  ;;  %v3633_v37 = vadd.f32 %v9333_v4, %v3632_v18 }
 0x37a   : > { %v6337_v15 = vpop.eup %6336  ;;  %v9370_v59 = vadd.f32 1.0, %v6335_v45  ;;  %v3698_v45 = vand.u32 2147483647, %v9335_v25  ;;  %v3701_v62 = vor.u32 1.1754944e-38, %v3700_v41 }
 0x37b   : > { %6338 = vpow2.f32 %v5782_v20  ;;  %v3690_v28 = vmul.f32 %v6337_v15, %v9335_v25  ;;  %vm3695_vm4 = vweird.f32 %v6337_v15  ;;  %v6136_v20 = vld [vmem:[%s10132_s3 + $0x10] sm:$0xff] }
 0x37c   : > { %6340 = vrcp.f32 %v9370_v59  ;;  %vm9409_vm9 = vmor %vm3694_vm7, %vm3695_vm4  ;;  %vm3699_vm10 = vcmp.eq.f32.partialorder %v3698_v45, 8.507059e+37  ;;  %4544 = vmatpush.bf16.msrb.mxu1 %v6145_v34  ;;  %vm3754_vm12 = vweird.f32 %v9370_v59 }
 0x37d   : > { %v2720_v50 = vpop.f32.mrf.mxu2  ;;  %v3691_v9 = vsub.f32 1.0, %v3690_v28 }
 0x37e   : > { %v9378_v58 = vadd.f32 %v2720_v50, %v2672_v17  ;;  %v9380_v8 = vpop.f32.mrf.mxu3  ;;  %v2625_v23 = vpop.f32.mrf.mxu0 }
 0x37f   : > { %v2626_v16 = vadd.f32 %v2625_v23, %v9105_v43  ;;  %v2674_v33 = vpop.f32.mrf.mxu1  ;;  %v3692_v54 = vmul.f32 %v6337_v15, %v3691_v9  ;;  %v3637_v43 = vsel %vm9395_vm6, %v9333_v4, %v3633_v37  ;;  %v6153_v4 = vld [vmem:[%s10132_s3 + $0x98] sm:$0xff]  ;;  %v3641_v23 = vor.u32 1.1754944e-38, %v3640_v10 }
 0x380   : > { %v6137_v37 = vld [vmem:[%s10132_s3 + $0x18] sm:$0xff]  ;;  %4593 = vmatpush.bf16.msrb.mxu2 %v6153_v4 }
 0x381   : > { %v6339_v18 = vpop.eup %6338  ;;  %v5786_v28 = vmul.f32 -1.442695, %v2626_v16  ;;  %2820 = vmatmul.bf16.gmra.mxu0 %v6992_v57  ;;  %v3693_v17 = vadd.f32 %v6337_v15, %v3692_v54  ;;  %v2675_v57 = vadd.f32 %v2674_v33, %v9138_v63  ;;  %v9441_v10 = vsel %vm9404_vm8, %v3641_v23, %v3637_v43  ;;  %v6135_v23 = vld [vmem:[%s10132_s3 + $0x8] sm:$0xff] }
 0x382   : > { %v9413_v9 = vpop.eup %6340  ;;  %v9415_v25 = vadd.f32 1.0, %v6339_v18  ;;  %2869 = vmatmul.bf16.gmra.mxu1 %v7348_v7  ;;  %2918 = vmatmul.bf16.gmra.mxu2 %v10346_v21  ;;  %v6162_v7 = vld [vmem:[%s10132_s3 + $0xe0] sm:$0xff]  ;;  %v6144_v18 = vld [vmem:[%s10132_s3 + $0x50] sm:$0xff] }
 0x383   : > { %v3750_v42 = vmul.f32 %v9413_v9, %v9370_v59  ;;  %6342 = vpow2.f32 %v5786_v28  ;;  %5741 = vmatmul.msk.bf16.gmra.mxu3 %vm1586_vm0, %v10436_v35  ;;  %v3697_v21 = vsel %vm9409_vm9, %v6337_v15, %v3693_v17  ;;  %4495 = vmatpush.bf16.msrb.mxu0 %v6137_v37  ;;  %v6152_v28 = vld [vmem:[%s10132_s3 + $0x90] sm:$0xff]  ;;  %vm3755_vm11 = vweird.f32 %v9413_v9 }
 0x384   : > { %6344 = vrcp.f32 %v9415_v25  ;;  %v9443_v41 = vsel %vm3699_vm10, %v3701_v62, %v3697_v21  ;;  %4641 = vmatpush.bf16.msrb.mxu3 %v6162_v7  ;;  %4594 = vmatpush.bf16.msrb.mxu2 %v6152_v28  ;;  %v6151_v62 = vld [vmem:[%s10132_s3 + $0x88] sm:$0xff]  ;;  %v3758_v21 = vand.u32 2147483647, %v9370_v59  ;;  %v6142_v28 = vld [vmem:[%s10132_s3 + $0x40] sm:$0xff]  ;;  %vm9497_vm14 = vmor %vm3754_vm12, %vm3755_vm11  ;;  %vm3814_vm1 = vweird.f32 %v9415_v25 }
 0x385   : > { %v2723_v16 = vpop.f32.mrf.mxu2  ;;  %v4213_v35 = vpack.c.bf16 %v9443_v41, %v9441_v10  ;;  %v3751_v33 = vsub.f32 1.0, %v3750_v42  ;;  %4545 = vmatpush.bf16.msrb.mxu1 %v6144_v18  ;;  %v6134_v18 = vld [vmem:[%s10132_s3] sm:$0xff] }
 0x386   : > { %v2724_v54 = vadd.f32 %v2723_v16, %v2675_v57  ;;  %v2772_v15 = vpop.f32.mrf.mxu3  ;;  %v2627_v45 = vpop.f32.mrf.mxu0  ;;  %vm9501_vm15 = vcmp.eq.f32.partialorder %v3758_v21, 8.507059e+37 }
 0x387   : > { %v2628_v43 = vadd.f32 %v2627_v45, %v9114_v47  ;;  %v2676_v3 = vpop.f32.mrf.mxu1  ;;  %4496 = vmatpush.bf16.msrb.mxu0 %v6136_v20  ;;  %v3752_v4 = vmul.f32 %v9413_v9, %v3751_v33  ;;  %v6143_v47 = vld [vmem:[%s10132_s3 + $0x48] sm:$0xff] }
 0x388   : > { %v9457_v17 = vadd.f32 %v2772_v15, %v2724_v54  ;;  %v2677_v7 = vadd.f32 %v2676_v3, %v9138_v63  ;;  %4595 = vmatpush.bf16.msrb.mxu2 %v6151_v62  ;;  %v3760_v3 = vand.u32 2147483648, %v9370_v59 }
 0x389   : > { %v6343_v50 = vpop.eup %6342  ;;  %v5790_v57 = vmul.f32 -1.442695, %v2628_v43  ;;  %4546 = vmatpush.bf16.msrb.mxu1 %v6143_v47  ;;  %v3753_v33 = vadd.f32 %v9413_v9, %v3752_v4  ;;  %v6150_v43 = vld [vmem:[%s10132_s3 + $0x80] sm:$0xff]  ;;  %v3818_v47 = vand.u32 2147483647, %v9415_v25 }
 0x38a   : > { %v6345_v37 = vpop.eup %6344  ;;  %v9460_v34 = vadd.f32 1.0, %v6343_v50  ;;  %v3820_v50 = vand.u32 2147483648, %v9415_v25 }
 0x38b   : > { %6346 = vpow2.f32 %v5790_v57  ;;  %v3810_v42 = vmul.f32 %v6345_v37, %v9415_v25  ;;  %4497 = vmatpush.bf16.msrb.mxu0 %v6135_v23  ;;  %vm3815_vm13 = vweird.f32 %v6345_v37  ;;  %v6161_v25 = vld [vmem:[%s10132_s3 + $0xd8] sm:$0xff]  ;;  %vm3819_vm3 = vcmp.eq.f32.partialorder %v3818_v47, 8.507059e+37 }
 0x38c   : > { %6348 = vrcp.f32 %v9460_v34  ;;  %4596 = vmatpush.bf16.msrb.mxu2 %v6150_v43  ;;  %vm3816_vm2 = vmor %vm3814_vm1, %vm3815_vm13  ;;  %4642 = vmatpush.bf16.msrb.mxu3 %v6161_v25  ;;  %vm3874_vm5 = vweird.f32 %v9460_v34 }
 0x38d   : > { %v2725_v16 = vpop.f32.mrf.mxu2  ;;  %v3811_v54 = vsub.f32 1.0, %v3810_v42  ;;  %4547 = vmatpush.bf16.msrb.mxu1 %v6142_v28 }
 0x38e   : > { %v9477_v15 = vadd.f32 %v2725_v16, %v2677_v7  ;;  %v9479_v45 = vpop.f32.mrf.mxu3  ;;  %v2630_v20 = vpop.f32.mrf.mxu0 }
 0x38f   : > { %v2631_v57 = vadd.f32 %v2630_v20, %v9122_v53  ;;  %v2679_v4 = vpop.f32.mrf.mxu1  ;;  %v3812_v23 = vmul.f32 %v6345_v37, %v3811_v54  ;;  %4498 = vmatpush.bf16.msrb.mxu0 %v6134_v18  ;;  %v3757_v53 = vsel %vm9497_vm14, %v9413_v9, %v3753_v33  ;;  %v3761_v18 = vor.u32 1.1754944e-38, %v3760_v3 }
 0x390   : > { %v2680_v21 = vadd.f32 %v2679_v4, %v9138_v63 }
 0x391   : > { %v6347_v59 = vpop.eup %6346  ;;  %v5794_v7 = vmul.f32 -1.442695, %v2631_v57  ;;  %2825 = vmatmul.bf16.gmra.mxu0 %v7030_v22  ;;  %v3813_v16 = vadd.f32 %v6345_v37, %v3812_v23  ;;  %v3821_v22 = vor.u32 1.1754944e-38, %v3820_v50 }
 0x392   : > { %v9510_v54 = vpop.eup %6348  ;;  %v9512_v20 = vadd.f32 1.0, %v6347_v59  ;;  %2874 = vmatmul.bf16.gmra.mxu1 %v10394_v24  ;;  %2923 = vmatmul.bf16.gmra.mxu2 %v10349_v51  ;;  %v9528_v51 = vsel %vm9501_vm15, %v3761_v18, %v3757_v53 }
 0x393   : > { %v3870_v9 = vmul.f32 %v9510_v54, %v9460_v34  ;;  %6350 = vpow2.f32 %v5794_v7  ;;  %5742 = vmatmul.msk.bf16.gmra.mxu3 %vm1586_vm0, %v10439_v14  ;;  %v3817_v33 = vsel %vm3816_vm2, %v6345_v37, %v3813_v16  ;;  %v6160_v14 = vld [vmem:[%s10132_s3 + $0xd0] sm:$0xff]  ;;  %vm3875_vm4 = vweird.f32 %v9510_v54 }
 0x394   : > { %6352 = vrcp.f32 %v9512_v20  ;;  %v9530_v24 = vsel %vm3819_vm3, %v3821_v22, %v3817_v33  ;;  %4643 = vmatpush.bf16.msrb.mxu3 %v6160_v14  ;;  %v3880_v14 = vand.u32 2147483648, %v9460_v34  ;;  %vm9558_vm7 = vmor %vm3874_vm5, %vm3875_vm4  ;;  %vm3934_vm9 = vweird.f32 %v9512_v20 }
 0x395   : > { %v2728_v28 = vpop.f32.mrf.mxu2  ;;  %v4217_v43 = vpack.c.bf16 %v9530_v24, %v9528_v51  ;;  %v3871_v3 = vsub.f32 1.0, %v3870_v9 }
 0x396   : > { %v2729_v37 = vadd.f32 %v2728_v28, %v2680_v21  ;;  %v2777_v50 = vpop.f32.mrf.mxu3  ;;  %v2632_v57 = vpop.f32.mrf.mxu0 }
 0x397   : > { %v2633_v4 = vadd.f32 %v2632_v57, %v9125_v60  ;;  %v2681_v23 = vpop.f32.mrf.mxu1  ;;  %v3872_v59 = vmul.f32 %v9510_v54, %v3871_v3  ;;  %v3878_v60 = vand.u32 2147483647, %v9460_v34  ;;  %v3940_v3 = vand.u32 2147483648, %v9512_v20 }
 0x398   : > { %v9538_v47 = vadd.f32 %v2777_v50, %v2729_v37  ;;  %v2682_v21 = vadd.f32 %v2681_v23, %v9138_v63 }
 0x399   : > { %v6351_v62 = vpop.eup %6350  ;;  %v5798_v42 = vmul.f32 -1.442695, %v2633_v4  ;;  %v3873_v22 = vadd.f32 %v9510_v54, %v3872_v59  ;;  %v3938_v4 = vand.u32 2147483647, %v9512_v20  ;;  %vm9562_vm8 = vcmp.eq.f32.partialorder %v3878_v60, 8.507059e+37 }
 0x39a   : > { %v6353_v7 = vpop.eup %6352  ;;  %v9541_v53 = vadd.f32 1.0, %v6351_v62 }
 0x39b   : > { %6354 = vpow2.f32 %v5798_v42  ;;  %v3930_v16 = vmul.f32 %v6353_v7, %v9512_v20  ;;  %vm3935_vm6 = vweird.f32 %v6353_v7  ;;  %vm3939_vm11 = vcmp.eq.f32.partialorder %v3938_v4, 8.507059e+37 }
 0x39c   : > { %6356 = vrcp.f32 %v9541_v53  ;;  %vm3936_vm10 = vmor %vm3934_vm9, %vm3935_vm6  ;;  %vm3994_vm12 = vweird.f32 %v9541_v53 }
 0x39d   : > { %v2730_v18 = vpop.f32.mrf.mxu2  ;;  %v3931_v9 = vsub.f32 1.0, %v3930_v16 }
 0x39e   : > { %v9549_v25 = vadd.f32 %v2730_v18, %v2682_v21  ;;  %v9551_v33 = vpop.f32.mrf.mxu3  ;;  %v2635_v28 = vpop.f32.mrf.mxu0  ;;  %v10478_v18 = vld [vmem:[#allocation44_spill] sm:$0xff] }
 0x39f   : > { %v2636_v37 = vadd.f32 %v2635_v28, %v9133_v27  ;;  %v2684_v50 = vpop.f32.mrf.mxu1  ;;  %v3932_v57 = vmul.f32 %v6353_v7, %v3931_v9  ;;  %v3877_v27 = vsel %vm9558_vm7, %v9510_v54, %v3873_v22  ;;  %v3881_v9 = vor.u32 1.1754944e-38, %v3880_v14 }
 0x3a0   : > { %v2685_v60 = vadd.f32 %v2684_v50, %v9138_v63 }
 0x3a1   : > { %v6355_v42 = vpop.eup %6354  ;;  %v5802_v59 = vmul.f32 -1.442695, %v2636_v37  ;;  %2830 = vmatmul.bf16.gmra.mxu0 %v10406_v12  ;;  %v3933_v34 = vadd.f32 %v6353_v7, %v3932_v57  ;;  %v3941_v12 = vor.u32 1.1754944e-38, %v3940_v3 }
 0x3a2   : > { %v9571_v16 = vpop.eup %6356  ;;  %v9573_v21 = vadd.f32 1.0, %v6355_v42  ;;  %2879 = vmatmul.bf16.gmra.mxu1 %v10407_v55  ;;  %2928 = vmatmul.bf16.gmra.mxu2 %v10478_v18  ;;  %v9586_v55 = vsel %vm9562_vm8, %v3881_v9, %v3877_v27 }
 0x3a3   : > { %v3990_v54 = vmul.f32 %v9571_v16, %v9541_v53  ;;  %6358 = vpow2.f32 %v5802_v59  ;;  %5743 = vmatmul.msk.bf16.gmra.mxu3 %vm1586_vm0, %v10442_v40  ;;  %v3937_v20 = vsel %vm3936_vm10, %v6353_v7, %v3933_v34  ;;  %vm3995_vm0 = vweird.f32 %v9571_v16 }
 0x3a4   : > { %6360 = vrcp.f32 %v9573_v21  ;;  %v9588_v22 = vsel %vm3939_vm11, %v3941_v12, %v3937_v20  ;;  %vm9613_vm14 = vmor %vm3994_vm12, %vm3995_vm0  ;;  %vm4054_vm15 = vweird.f32 %v9573_v21 }
 0x3a5   : > { %v2733_v28 = vpop.f32.mrf.mxu2  ;;  %v4221_v14 = vpack.c.bf16 %v9588_v22, %v9586_v55  ;;  %v3991_v3 = vsub.f32 1.0, %v3990_v54 }
 0x3a6   : > { %v2734_v37 = vadd.f32 %v2733_v28, %v2685_v60  ;;  %v2782_v50 = vpop.f32.mrf.mxu3  ;;  %v2637_v57 = vpop.f32.mrf.mxu0  ;;  %v4000_v28 = vand.u32 2147483648, %v9541_v53 }
 0x3a7   : > { %v2638_v40 = vadd.f32 %v2637_v57, %v9141_v6  ;;  %v2686_v7 = vpop.f32.mrf.mxu1  ;;  %v3992_v62 = vmul.f32 %v9571_v16, %v3991_v3  ;;  %v4060_v3 = vand.u32 2147483648, %v9573_v21  ;;  %v4058_v57 = vand.u32 2147483647, %v9573_v21 }
 0x3a8   : > { %v9593_v4 = vadd.f32 %v2782_v50, %v2734_v37  ;;  %v2687_v60 = vadd.f32 %v2686_v7, %v9138_v63  ;;  %v3998_v63 = vand.u32 2147483647, %v9541_v53 }
 0x3a9   : > { %v6359_v23 = vpop.eup %6358  ;;  %v5806_v42 = vmul.f32 -1.442695, %v2638_v40  ;;  %v3993_v6 = vadd.f32 %v9571_v16, %v3992_v62  ;;  %v10482_v62 = vld [vmem:[#allocation46_spill] sm:$0xff]  ;;  %vm4059_vm3 = vcmp.eq.f32.partialorder %v4058_v57, 8.507059e+37 }
 0x3aa   : > { %v6361_v59 = vpop.eup %6360  ;;  %v9596_v27 = vadd.f32 1.0, %v6359_v23  ;;  %vm3999_vm2 = vcmp.eq.f32.partialorder %v3998_v63, 8.507059e+37 }
 0x3ab   : > { %6362 = vpow2.f32 %v5806_v42  ;;  %v4050_v34 = vmul.f32 %v6361_v59, %v9573_v21  ;;  %vm4055_vm13 = vweird.f32 %v6361_v59  ;;  %v10481_v42 = vld [vmem:[#allocation47_spill] sm:$0xff] }
 0x3ac   : > { %6364 = vrcp.f32 %v9596_v27  ;;  %vm4056_vm1 = vmor %vm4054_vm15, %vm4055_vm13  ;;  %vm4114_vm6 = vweird.f32 %v9596_v27 }
 0x3ad   : > { %v2735_v18 = vpop.f32.mrf.mxu2  ;;  %v4051_v9 = vsub.f32 1.0, %v4050_v34  ;;  %v10483_v34 = vpack.c.bf16 %v10481_v42, %v10482_v62  ;;  %v4001_v42 = vor.u32 1.1754944e-38, %v4000_v28  ;;  %v4061_v62 = vor.u32 1.1754944e-38, %v4060_v3 }
 0x3ae   : > { %v9603_v12 = vadd.f32 %v2735_v18, %v2687_v60  ;;  %v9605_v54 = vpop.f32.mrf.mxu3  ;;  %v2796_v20 = vpop.f32.mrf.mxu0  ;;  %v3997_v60 = vsel %vm9613_vm14, %v9571_v16, %v3993_v6 }
 0x3af   : > { %v2845_v37 = vpop.f32.mrf.mxu1  ;;  %v4052_v50 = vmul.f32 %v6361_v59, %v4051_v9  ;;  %v2797_v40 = vadd.f32 %v2796_v20, %v9150_v5  ;;  %v10484_v5 = vld [vmem:[#allocation10_spill] sm:$0xff]  ;;  %v10485_v20 = vld [vmem:[#allocation33_spill] sm:$0xff] }
 0x3b0   : > { %v10486_v36 = vpack.c.bf16 %v10484_v5, %v10485_v20  ;;  %v6158_v20 = vld [vmem:[%s10132_s3 + $0xc0] sm:$0xff] }
 0x3b1   : > { %v6363_v23 = vpop.eup %6362  ;;  %4499 = vmatmul.bf16.vlgmr.msrb.gmra.mxu0 %v10483_v34  ;;  %v4053_v53 = vadd.f32 %v6361_v59, %v4052_v50  ;;  %v2846_v6 = vadd.f32 %v2845_v37, %v2797_v40  ;;  %v9637_v50 = vsel %vm3999_vm2, %v4001_v42, %v3997_v60  ;;  %v6159_v37 = vld [vmem:[%s10132_s3 + $0xc8] sm:$0xff] }
 0x3b2   : > { %v9624_v18 = vpop.eup %6364  ;;  %v9626_v9 = vadd.f32 1.0, %v6363_v23  ;;  %4548 = vmatmul.bf16.vlgmr.msrb.gmra.mxu1 %v10486_v36  ;;  %4597 = vmatmul.bf16.vlgmr.msrb.gmra.mxu2 %v4201_v56 }
 0x3b3   : > { %v4110_v16 = vmul.f32 %v9624_v18, %v9596_v27  ;;  %v4057_v21 = vsel %vm4056_vm1, %v6361_v59, %v4053_v53  ;;  %4644 = vmatpush.bf16.msrb.mxu3 %v6159_v37  ;;  %vm4115_vm4 = vweird.f32 %v9624_v18  ;;  %v10488_v37 = vld [vmem:[#allocation48_spill] sm:$0xff] }
 0x3b4   : > { %6366 = vrcp.f32 %v9626_v9  ;;  %v9639_v7 = vsel %vm4059_vm3, %v4061_v62, %v4057_v21  ;;  %vm9663_vm7 = vmor %vm4114_vm6, %vm4115_vm4  ;;  %vm4174_vm8 = vweird.f32 %v9626_v9 }
 0x3b5   : > { %v2894_v36 = vpop.f32.mrf.mxu2  ;;  %v4225_v2 = vpack.c.bf16 %v9639_v7, %v9637_v50  ;;  %v4111_v3 = vsub.f32 1.0, %v4110_v16 }
 0x3b6   : > { %v2895_v61 = vadd.f32 %v2894_v36, %v2846_v6  ;;  %v2943_v56 = vpop.f32.mrf.mxu3  ;;  %v2798_v28 = vpop.f32.mrf.mxu0  ;;  %v4180_v6 = vand.u32 2147483648, %v9626_v9 }
 0x3b7   : > { %v2847_v23 = vpop.f32.mrf.mxu1  ;;  %v2799_v59 = vadd.f32 %v2798_v28, %v9157_v31  ;;  %v4112_v40 = vmul.f32 %v9624_v18, %v4111_v3  ;;  %4645 = vmatpush.bf16.msrb.mxu3 %v6158_v20  ;;  %v4178_v28 = vand.u32 2147483647, %v9626_v9  ;;  %v10492_v20 = vld [vmem:[#allocation36_spill] sm:$0xff] }
 0x3b8   : > { %v2944_v34 = vadd.f32 %v2943_v56, %v2895_v61  ;;  %v4120_v61 = vand.u32 2147483648, %v9596_v27 }
 0x3b9   : > { %v2848_v53 = vadd.f32 %v2847_v23, %v2799_v59  ;;  %v4113_v21 = vadd.f32 %v9624_v18, %v4112_v40  ;;  %v10487_v59 = vld [vmem:[#allocation49_spill] sm:$0xff]  ;;  %vm4179_vm10 = vcmp.eq.f32.partialorder %v4178_v28, 8.507059e+37 }
 0x3ba   : > { %v6367_v63 = vpop.eup %6366  ;;  %v5747_v57 = vmul.f32 -1.442695, %v2944_v34  ;;  %v4118_v34 = vand.u32 2147483647, %v9596_v27 }
 0x3bb   : > { %v4170_v60 = vmul.f32 %v6367_v63, %v9626_v9  ;;  %vm4175_vm5 = vweird.f32 %v6367_v63  ;;  %v4117_v27 = vsel %vm9663_vm7, %v9624_v18, %v4113_v21  ;;  %v4121_v9 = vor.u32 1.1754944e-38, %v4120_v61 }
 0x3bc   : > { %6368 = vpow2.f32 %v5747_v57  ;;  %v10489_v57 = vpack.c.bf16 %v10487_v59, %v10488_v37  ;;  %vm4176_vm9 = vmor %vm4174_vm8, %vm4175_vm5  ;;  %vm4119_vm11 = vcmp.eq.f32.partialorder %v4118_v34, 8.507059e+37 }
 0x3bd   : > { %v2896_v5 = vpop.f32.mrf.mxu2  ;;  %v4171_v42 = vsub.f32 1.0, %v4170_v60  ;;  %v9683_v29 = vsel %vm4119_vm11, %v4121_v9, %v4117_v27  ;;  %v10495_v27 = vld [vmem:[#allocation51_spill] sm:$0xff] }
 0x3be   : > { %v2897_v31 = vadd.f32 %v2896_v5, %v2848_v53  ;;  %v2945_v62 = vpop.f32.mrf.mxu3  ;;  %v2801_v16 = vpop.f32.mrf.mxu0 }
 0x3bf   : > { %v2850_v36 = vpop.f32.mrf.mxu1  ;;  %v4172_v56 = vmul.f32 %v6367_v63, %v4171_v42  ;;  %v2802_v23 = vadd.f32 %v2801_v16, %v9176_v0  ;;  %v10493_v42 = vld [vmem:[#allocation34_spill] sm:$0xff] }
 0x3c0   : > { %v2946_v3 = vadd.f32 %v2945_v62, %v2897_v31  ;;  %v10494_v0 = vpack.c.bf16 %v10492_v20, %v10493_v42  ;;  %v4181_v31 = vor.u32 1.1754944e-38, %v4180_v6 }
 0x3c1   : > { %4504 = vmatmul.bf16.gmra.mxu0 %v10489_v57  ;;  %v4173_v60 = vadd.f32 %v6367_v63, %v4172_v56  ;;  %v2851_v56 = vadd.f32 %v2850_v36, %v2802_v23 }
 0x3c2   : > { %v6369_v53 = vpop.eup %6368  ;;  %v5751_v5 = vmul.f32 -1.442695, %v2946_v3  ;;  %4553 = vmatmul.bf16.gmra.mxu1 %v10494_v0  ;;  %4602 = vmatmul.bf16.gmra.mxu2 %v4205_v19 }
 0x3c3   : > { %v9678_v62 = vadd.f32 1.0, %v6369_v53  ;;  %v4177_v16 = vsel %vm4176_vm9, %v6367_v63, %v4173_v60 }
 0x3c4   : > { %6370 = vpow2.f32 %v5751_v5  ;;  %v9680_v3 = vsel %vm4179_vm10, %v4181_v31, %v4177_v16  ;;  %v10496_v31 = vld [vmem:[#allocation50_spill] sm:$0xff] }
 0x3c5   : > { %6372 = vrcp.f32 %v9678_v62  ;;  %v2899_v13 = vpop.f32.mrf.mxu2  ;;  %v4229_v6 = vpack.c.bf16 %v9680_v3, %v9683_v29  ;;  %v10497_v9 = vpack.c.bf16 %v10495_v27, %v10496_v31  ;;  %vm3289_vm12 = vweird.f32 %v9678_v62 }
 0x3c6   : > { %v2900_v19 = vadd.f32 %v2899_v13, %v2851_v56  ;;  %v2948_v18 = vpop.f32.mrf.mxu3  ;;  %v2803_v21 = vpop.f32.mrf.mxu0 }
 0x3c7   : > { %v2852_v59 = vpop.f32.mrf.mxu1  ;;  %v2804_v63 = vadd.f32 %v2803_v21, %v9198_v38 }
 0x3c8   : > { %v2949_v61 = vadd.f32 %v2948_v18, %v2900_v19  ;;  %v10498_v19 = vld [vmem:[#allocation41_spill] sm:$0xff]  ;;  %v10499_v18 = vld [vmem:[#allocation38_spill] sm:$0xff] }
 0x3c9   : > { %v2853_v57 = vadd.f32 %v2852_v59, %v2804_v63  ;;  %v10500_v21 = vpack.c.bf16 %v10498_v19, %v10499_v18 }
 0x3ca   : > { %v6371_v28 = vpop.eup %6370  ;;  %v5755_v36 = vmul.f32 -1.442695, %v2949_v61 }
 0x3cb   : > { %v9688_v23 = vpop.eup %6372  ;;  %v3182_v34 = vadd.f32 1.0, %v6371_v28  ;;  %v3295_v28 = vand.u32 2147483648, %v9678_v62 }
 0x3cc   : > { %v3285_v37 = vmul.f32 %v9688_v23, %v9678_v62  ;;  %6374 = vpow2.f32 %v5755_v36  ;;  %vm3290_vm0 = vweird.f32 %v9688_v23 }
 0x3cd   : > { %6376 = vrcp.f32 %v3182_v34  ;;  %v2901_v40 = vpop.f32.mrf.mxu2  ;;  %v3355_v39 = vand.u32 2147483648, %v3182_v34  ;;  %vm9714_vm14 = vmor %vm3289_vm12, %vm3290_vm0  ;;  %v3296_v27 = vor.u32 1.1754944e-38, %v3295_v28  ;;  %vm3349_vm15 = vweird.f32 %v3182_v34 }
 0x3ce   : > { %v3286_v60 = vsub.f32 1.0, %v3285_v37  ;;  %v2902_v53 = vadd.f32 %v2901_v40, %v2853_v57  ;;  %v2950_v5 = vpop.f32.mrf.mxu3  ;;  %v2806_v20 = vpop.f32.mrf.mxu0 }
 0x3cf   : > { %v2855_v42 = vpop.f32.mrf.mxu1  ;;  %v2807_v38 = vadd.f32 %v2806_v20, %v9237_v1 }
 0x3d0   : > { %v2951_v0 = vadd.f32 %v2950_v5, %v2902_v53  ;;  %v3287_v56 = vmul.f32 %v9688_v23, %v3286_v60  ;;  %v3293_v53 = vand.u32 2147483647, %v9678_v62  ;;  %v3353_v5 = vand.u32 2147483647, %v3182_v34 }
 0x3d1   : > { %4509 = vmatmul.bf16.gmra.mxu0 %v10497_v9  ;;  %v2856_v63 = vadd.f32 %v2855_v42, %v2807_v38 }
 0x3d2   : > { %v6375_v16 = vpop.eup %6374  ;;  %v5759_v13 = vmul.f32 -1.442695, %v2951_v0  ;;  %4558 = vmatmul.bf16.gmra.mxu1 %v10500_v21  ;;  %4607 = vmatmul.bf16.gmra.mxu2 %v4209_v49  ;;  %v3288_v46 = vadd.f32 %v9688_v23, %v3287_v56  ;;  %vm3294_vm1 = vcmp.eq.f32.partialorder %v3293_v53, 8.507059e+37  ;;  %vm3354_vm3 = vcmp.eq.f32.partialorder %v3353_v5, 8.507059e+37  ;;  %v10504_v53 = vld [vmem:[#allocation52_spill] sm:$0xff] }
 0x3d3   : > { %v6377_v59 = vpop.eup %6376  ;;  %v9703_v61 = vadd.f32 1.0, %v6375_v16 }
 0x3d4   : > { %v3345_v1 = vmul.f32 %v6377_v59, %v3182_v34  ;;  %6378 = vpow2.f32 %v5759_v13  ;;  %vm3350_vm13 = vweird.f32 %v6377_v59  ;;  %v3292_v62 = vsel %vm9714_vm14, %v9688_v23, %v3288_v46 }
 0x3d5   : > { %6380 = vrcp.f32 %v9703_v61  ;;  %v2904_v36 = vpop.f32.mrf.mxu2  ;;  %vm3351_vm2 = vmor %vm3349_vm15, %vm3350_vm13  ;;  %vm3409_vm5 = vweird.f32 %v9703_v61 }
 0x3d6   : > { %v3346_v37 = vsub.f32 1.0, %v3345_v1  ;;  %v2905_v57 = vadd.f32 %v2904_v36, %v2856_v63  ;;  %v2953_v40 = vpop.f32.mrf.mxu3  ;;  %v2808_v60 = vpop.f32.mrf.mxu0  ;;  %v3297_v1 = vsel %vm3294_vm1, %v3296_v27, %v3292_v62 }
 0x3d7   : > { %v2857_v49 = vpop.f32.mrf.mxu1  ;;  %v2809_v0 = vadd.f32 %v2808_v60, %v9253_v11  ;;  %v3356_v11 = vor.u32 1.1754944e-38, %v3355_v39  ;;  %v10503_v39 = vld [vmem:[#allocation53_spill] sm:$0xff] }
 0x3d8   : > { %v3347_v20 = vmul.f32 %v6377_v59, %v3346_v37  ;;  %v2954_v42 = vadd.f32 %v2953_v40, %v2905_v57  ;;  %v10505_v5 = vpack.c.bf16 %v10503_v39, %v10504_v53 }
 0x3d9   : > { %v2858_v18 = vadd.f32 %v2857_v49, %v2809_v0 }
 0x3da   : > { %v6379_v31 = vpop.eup %6378  ;;  %v5763_v9 = vmul.f32 -1.442695, %v2954_v42  ;;  %v3348_v16 = vadd.f32 %v6377_v59, %v3347_v20  ;;  %v10506_v20 = vld [vmem:[#allocation8_spill] sm:$0xff] }
 0x3db   : > { %v9721_v56 = vpop.eup %6380  ;;  %v9723_v13 = vadd.f32 1.0, %v6379_v31  ;;  %v10507_v42 = vld [vmem:[#allocation4_spill] sm:$0xff] }
 0x3dc   : > { %v3405_v19 = vmul.f32 %v9721_v56, %v9703_v61  ;;  %6382 = vpow2.f32 %v5763_v9  ;;  %v3352_v34 = vsel %vm3351_vm2, %v6377_v59, %v3348_v16  ;;  %v10508_v0 = vpack.c.bf16 %v10506_v20, %v10507_v42 }
 0x3dd   : > { %6384 = vrcp.f32 %v9723_v13  ;;  %v2906_v21 = vpop.f32.mrf.mxu2  ;;  %v3357_v23 = vsel %vm3354_vm3, %v3356_v11, %v3352_v34  ;;  %v3413_v16 = vand.u32 2147483647, %v9703_v61  ;;  %vm3410_vm4 = vweird.f32 %v9721_v56 }
 0x3de   : > { %v2907_v63 = vadd.f32 %v2906_v21, %v2858_v18  ;;  %v2955_v28 = vpop.f32.mrf.mxu3  ;;  %v2811_v36 = vpop.f32.mrf.mxu0  ;;  %v4202_v37 = vpack.c.bf16 %v3357_v23, %v3297_v1  ;;  %v3406_v57 = vsub.f32 1.0, %v3405_v19  ;;  %v3415_v34 = vand.u32 2147483648, %v9703_v61  ;;  %vm9751_vm7 = vmor %vm3409_vm5, %vm3410_vm4 }
 0x3df   : > { %v2860_v40 = vpop.f32.mrf.mxu1  ;;  %v2812_v46 = vadd.f32 %v2811_v36, %v9302_v52  ;;  %v3473_v21 = vand.u32 2147483647, %v9723_v13  ;;  %v3475_v1 = vand.u32 2147483648, %v9723_v13  ;;  %vm9755_vm8 = vcmp.eq.f32.partialorder %v3413_v16, 8.507059e+37 }
 0x3e0   : > { %v2956_v60 = vadd.f32 %v2955_v28, %v2907_v63  ;;  %4646 = vmatmul.bf16.vlgmr.msrb.gmra.mxu3 %v4202_v37  ;;  %v3407_v38 = vmul.f32 %v9721_v56, %v3406_v57  ;;  %vm3469_vm9 = vweird.f32 %v9723_v13  ;;  %v3416_v39 = vor.u32 1.1754944e-38, %v3415_v34  ;;  %v10517_v34 = vld [vmem:[#allocation40_spill] sm:$0xff] }
 0x3e1   : > { %4514 = vmatmul.bf16.gmra.mxu0 %v10505_v5  ;;  %v2861_v52 = vadd.f32 %v2860_v40, %v2812_v46  ;;  %vm3474_vm11 = vcmp.eq.f32.partialorder %v3473_v21, 8.507059e+37  ;;  %v3476_v53 = vor.u32 1.1754944e-38, %v3475_v1  ;;  %v2770_v36 = vadd.f32 %v9380_v8, %v9378_v58 }
 0x3e2   : > { %v6383_v59 = vpop.eup %6382  ;;  %v5767_v49 = vmul.f32 -1.442695, %v2956_v60  ;;  %4563 = vmatmul.bf16.gmra.mxu1 %v10508_v0  ;;  %4612 = vmatmul.bf16.gmra.mxu2 %v4213_v35  ;;  %v3408_v10 = vadd.f32 %v9721_v56, %v3407_v38 }
 0x3e3   : > { %v6385_v27 = vpop.eup %6384  ;;  %v9739_v31 = vadd.f32 1.0, %v6383_v59 }
 0x3e4   : > { %6386 = vpow2.f32 %v5767_v49  ;;  %v3465_v9 = vmul.f32 %v6385_v27, %v9723_v13  ;;  %vm3470_vm6 = vweird.f32 %v6385_v27  ;;  %v3412_v61 = vsel %vm9751_vm7, %v9721_v56, %v3408_v10 }
 0x3e5   : > { %6388 = vrcp.f32 %v9739_v31  ;;  %v2909_v62 = vpop.f32.mrf.mxu2  ;;  %vm3471_vm10 = vmor %vm3469_vm9, %vm3470_vm6  ;;  %v3417_v13 = vsel %vm9755_vm8, %v3416_v39, %v3412_v61  ;;  %vm3529_vm12 = vweird.f32 %v9739_v31  ;;  %v3535_v39 = vand.u32 2147483648, %v9739_v31 }
 0x3e6   : > { %v2910_v11 = vadd.f32 %v2909_v62, %v2861_v52  ;;  %v2958_v19 = vpop.f32.mrf.mxu3  ;;  %v2813_v18 = vpop.f32.mrf.mxu0  ;;  %v3466_v41 = vsub.f32 1.0, %v3465_v9 }
 0x3e7   : > { %v2862_v35 = vpop.f32.mrf.mxu1  ;;  %v2814_v63 = vadd.f32 %v2813_v18, %v9318_v44  ;;  %v10514_v18 = vld [vmem:[#allocation54_spill] sm:$0xff] }
 0x3e8   : > { %v2959_v23 = vadd.f32 %v2958_v19, %v2910_v11  ;;  %v3467_v28 = vmul.f32 %v6385_v27, %v3466_v41  ;;  %v10513_v19 = vld [vmem:[#allocation55_spill] sm:$0xff] }
 0x3e9   : > { %v2863_v59 = vadd.f32 %v2862_v35, %v2814_v63  ;;  %v10516_v35 = vld [vmem:[#allocation62_spill] sm:$0xff] }
 0x3ea   : > { %v6387_v57 = vpop.eup %6386  ;;  %v5771_v40 = vmul.f32 -1.442695, %v2959_v23  ;;  %v3468_v60 = vadd.f32 %v6385_v27, %v3467_v28  ;;  %v10518_v21 = vpack.c.bf16 %v10516_v35, %v10517_v34 }
 0x3eb   : > { %v9763_v44 = vpop.eup %6388  ;;  %v9765_v46 = vadd.f32 1.0, %v6387_v57  ;;  %v3533_v57 = vand.u32 2147483647, %v9739_v31 }
 0x3ec   : > { %v3525_v5 = vmul.f32 %v9763_v44, %v9739_v31  ;;  %6390 = vpow2.f32 %v5771_v40  ;;  %v3472_v49 = vsel %vm3471_vm10, %v6385_v27, %v3468_v60  ;;  %v10515_v27 = vpack.c.bf16 %v10513_v19, %v10514_v18 }
 0x3ed   : > { %6392 = vrcp.f32 %v9765_v46  ;;  %v2911_v56 = vpop.f32.mrf.mxu2  ;;  %v3477_v20 = vsel %vm3474_vm11, %v3476_v53, %v3472_v49  ;;  %vm3530_vm0 = vweird.f32 %v9763_v44  ;;  %v3593_v58 = vand.u32 2147483647, %v9765_v46 }
 0x3ee   : > { %v2912_v42 = vadd.f32 %v2911_v56, %v2863_v59  ;;  %v2960_v0 = vpop.f32.mrf.mxu3  ;;  %v2816_v38 = vpop.f32.mrf.mxu0  ;;  %v4206_v52 = vpack.c.bf16 %v3477_v20, %v3417_v13  ;;  %v3526_v9 = vsub.f32 1.0, %v3525_v5  ;;  %v3595_v8 = vand.u32 2147483648, %v9765_v46  ;;  %vm9796_vm14 = vmor %vm3529_vm12, %vm3530_vm0 }
 0x3ef   : > { %v2865_v62 = vpop.f32.mrf.mxu1  ;;  %v2817_v11 = vadd.f32 %v2816_v38, %v9367_v26  ;;  %vm9800_vm15 = vcmp.eq.f32.partialorder %v3533_v57, 8.507059e+37  ;;  %vm3589_vm1 = vweird.f32 %v9765_v46  ;;  %vm3594_vm3 = vcmp.eq.f32.partialorder %v3593_v58, 8.507059e+37  ;;  %v10526_v57 = vld [vmem:[#allocation24_spill] sm:$0xff] }
 0x3f0   : > { %v2961_v16 = vadd.f32 %v2960_v0, %v2912_v42  ;;  %4651 = vmatmul.bf16.gmra.mxu3 %v4206_v52  ;;  %v3527_v1 = vmul.f32 %v9763_v44, %v3526_v9  ;;  %v3536_v52 = vor.u32 1.1754944e-38, %v3535_v39  ;;  %v3596_v9 = vor.u32 1.1754944e-38, %v3595_v8 }
 0x3f1   : > { %4519 = vmatmul.bf16.gmra.mxu0 %v10515_v27  ;;  %v2866_v26 = vadd.f32 %v2865_v62, %v2817_v11  ;;  %v2775_v39 = vadd.f32 %v9479_v45, %v9477_v15 }
 0x3f2   : > { %v6391_v10 = vpop.eup %6390  ;;  %v5775_v41 = vmul.f32 -1.442695, %v2961_v16  ;;  %4568 = vmatmul.bf16.gmra.mxu1 %v10518_v21  ;;  %4617 = vmatmul.bf16.gmra.mxu2 %v4217_v43  ;;  %v3528_v43 = vadd.f32 %v9763_v44, %v3527_v1 }
 0x3f3   : > { %v6393_v23 = vpop.eup %6392  ;;  %v9783_v63 = vadd.f32 1.0, %v6391_v10 }
 0x3f4   : > { %6394 = vpow2.f32 %v5775_v41  ;;  %v3585_v28 = vmul.f32 %v6393_v23, %v9765_v46  ;;  %vm3590_vm13 = vweird.f32 %v6393_v23  ;;  %v3532_v31 = vsel %vm9796_vm14, %v9763_v44, %v3528_v43 }
 0x3f5   : > { %6396 = vrcp.f32 %v9783_v63  ;;  %v2914_v37 = vpop.f32.mrf.mxu2  ;;  %vm3591_vm2 = vmor %vm3589_vm1, %vm3590_vm13  ;;  %v3537_v46 = vsel %vm9800_vm15, %v3536_v52, %v3532_v31  ;;  %v3653_v8 = vand.u32 2147483647, %v9783_v63  ;;  %vm3649_vm5 = vweird.f32 %v9783_v63 }
 0x3f6   : > { %v2915_v40 = vadd.f32 %v2914_v37, %v2866_v26  ;;  %v2963_v51 = vpop.f32.mrf.mxu3  ;;  %v2818_v24 = vpop.f32.mrf.mxu0  ;;  %v3586_v61 = vsub.f32 1.0, %v3585_v28  ;;  %v10523_v26 = vld [vmem:[#allocation57_spill] sm:$0xff]  ;;  %v10524_v28 = vld [vmem:[#allocation56_spill] sm:$0xff]  ;;  %v3655_v49 = vand.u32 2147483648, %v9783_v63 }
 0x3f7   : > { %v2867_v60 = vpop.f32.mrf.mxu1  ;;  %v2819_v5 = vadd.f32 %v2818_v24, %v2770_v36  ;;  %vm9845_vm8 = vcmp.eq.f32.partialorder %v3653_v8, 8.507059e+37  ;;  %v2780_v8 = vadd.f32 %v9551_v33, %v9549_v25 }
 0x3f8   : > { %v2964_v53 = vadd.f32 %v2963_v51, %v2915_v40  ;;  %v3587_v59 = vmul.f32 %v6393_v23, %v3586_v61  ;;  %v10527_v40 = vld [vmem:[#allocation23_spill] sm:$0xff] }
 0x3f9   : > { %v2868_v16 = vadd.f32 %v2867_v60, %v2819_v5  ;;  %v10528_v51 = vpack.c.bf16 %v10526_v57, %v10527_v40 }
 0x3fa   : > { %v6395_v13 = vpop.eup %6394  ;;  %v5779_v20 = vmul.f32 -1.442695, %v2964_v53  ;;  %v3588_v42 = vadd.f32 %v6393_v23, %v3587_v59 }
 0x3fb   : > { %v9808_v0 = vpop.eup %6396  ;;  %v9810_v38 = vadd.f32 1.0, %v6395_v13 }
 0x3fc   : > { %v3645_v62 = vmul.f32 %v9808_v0, %v9783_v63  ;;  %6398 = vpow2.f32 %v5779_v20  ;;  %v3592_v11 = vsel %vm3591_vm2, %v6393_v23, %v3588_v42  ;;  %v10525_v23 = vpack.c.bf16 %v10523_v26, %v10524_v28 }
 0x3fd   : > { %6400 = vrcp.f32 %v9810_v38  ;;  %v2916_v44 = vpop.f32.mrf.mxu2  ;;  %v3597_v19 = vsel %vm3594_vm3, %v3596_v9, %v3592_v11  ;;  %vm3650_vm4 = vweird.f32 %v9808_v0  ;;  %v3713_v15 = vand.u32 2147483647, %v9810_v38 }
 0x3fe   : > { %v2917_v18 = vadd.f32 %v2916_v44, %v2868_v16  ;;  %v2965_v27 = vpop.f32.mrf.mxu3  ;;  %v2821_v10 = vpop.f32.mrf.mxu0  ;;  %v4210_v41 = vpack.c.bf16 %v3597_v19, %v3537_v46  ;;  %v3646_v35 = vsub.f32 1.0, %v3645_v62  ;;  %v3715_v45 = vand.u32 2147483648, %v9810_v38  ;;  %vm9841_vm7 = vmor %vm3649_vm5, %vm3650_vm4 }
 0x3ff   : > { %v2870_v34 = vpop.f32.mrf.mxu1  ;;  %v2822_v1 = vadd.f32 %v2821_v10, %v9457_v17  ;;  %vm3709_vm9 = vweird.f32 %v9810_v38  ;;  %v3656_v44 = vor.u32 1.1754944e-38, %v3655_v49  ;;  %vm3714_vm11 = vcmp.eq.f32.partialorder %v3713_v15, 8.507059e+37 }
 0x400   : > { %v2966_v21 = vadd.f32 %v2965_v27, %v2917_v18  ;;  %4656 = vmatmul.bf16.gmra.mxu3 %v4210_v41  ;;  %v3647_v24 = vmul.f32 %v9808_v0, %v3646_v35  ;;  %v3716_v46 = vor.u32 1.1754944e-38, %v3715_v45 }
 0x401   : > { %4524 = vmatmul.bf16.gmra.mxu0 %v10525_v23  ;;  %v2871_v17 = vadd.f32 %v2870_v34, %v2822_v1 }
 0x402   : > { %v6399_v36 = vpop.eup %6398  ;;  %v5783_v37 = vmul.f32 -1.442695, %v2966_v21  ;;  %4573 = vmatmul.bf16.gmra.mxu1 %v10528_v51  ;;  %4622 = vmatmul.bf16.gmra.mxu2 %v4221_v14  ;;  %v3648_v14 = vadd.f32 %v9808_v0, %v3647_v24  ;;  %v10536_v24 = vld [vmem:[#allocation43_spill] sm:$0xff] }
 0x403   : > { %v6401_v43 = vpop.eup %6400  ;;  %v9828_v61 = vadd.f32 1.0, %v6399_v36  ;;  %v10533_v36 = vld [vmem:[#allocation59_spill] sm:$0xff] }
 0x404   : > { %6402 = vpow2.f32 %v5783_v37  ;;  %v3705_v60 = vmul.f32 %v6401_v43, %v9810_v38  ;;  %vm3710_vm6 = vweird.f32 %v6401_v43  ;;  %v3652_v63 = vsel %vm9841_vm7, %v9808_v0, %v3648_v14  ;;  %v10534_v37 = vld [vmem:[#allocation58_spill] sm:$0xff] }
 0x405   : > { %6404 = vrcp.f32 %v9828_v61  ;;  %v2919_v58 = vpop.f32.mrf.mxu2  ;;  %vm3711_vm10 = vmor %vm3709_vm9, %vm3710_vm6  ;;  %v3657_v38 = vsel %vm9845_vm8, %v3656_v44, %v3652_v63  ;;  %v10535_v57 = vpack.c.bf16 %v10533_v36, %v10534_v37  ;;  %vm3769_vm12 = vweird.f32 %v9828_v61 }
 0x406   : > { %v2920_v53 = vadd.f32 %v2919_v58, %v2871_v17  ;;  %v2968_v55 = vpop.f32.mrf.mxu3  ;;  %v2823_v22 = vpop.f32.mrf.mxu0  ;;  %v3706_v5 = vsub.f32 1.0, %v3705_v60  ;;  %v10545_v36 = vpack.c.bf16 %v8984_v48, %v8982_v30 }
 0x407   : > { %v2872_v59 = vpop.f32.mrf.mxu1  ;;  %v2824_v13 = vadd.f32 %v2823_v22, %v2775_v39 }
 0x408   : > { %v2969_v56 = vadd.f32 %v2968_v55, %v2920_v53  ;;  %v3707_v20 = vmul.f32 %v6401_v43, %v3706_v5  ;;  %v3773_v53 = vand.u32 2147483647, %v9828_v61  ;;  %v3775_v5 = vand.u32 2147483648, %v9828_v61 }
 0x409   : > { %v2873_v18 = vadd.f32 %v2872_v59, %v2824_v13 }
 0x40a   : > { %v6403_v52 = vpop.eup %6402  ;;  %v5787_v9 = vmul.f32 -1.442695, %v2969_v56  ;;  %v3708_v62 = vadd.f32 %v6401_v43, %v3707_v20  ;;  %vm9890_vm15 = vcmp.eq.f32.partialorder %v3773_v53, 8.507059e+37 }
 0x40b   : > { %v9853_v16 = vpop.eup %6404  ;;  %v9855_v11 = vadd.f32 1.0, %v6403_v52 }
 0x40c   : > { %v3765_v19 = vmul.f32 %v9853_v16, %v9828_v61  ;;  %6406 = vpow2.f32 %v5787_v9  ;;  %v3712_v27 = vsel %vm3711_vm10, %v6401_v43, %v3708_v62  ;;  %v10537_v43 = vpack.c.bf16 %v8929_v32, %v10536_v24 }
 0x40d   : > { %6408 = vrcp.f32 %v9855_v11  ;;  %v2921_v0 = vpop.f32.mrf.mxu2  ;;  %v3717_v10 = vsel %vm3714_vm11, %v3716_v46, %v3712_v27  ;;  %vm3770_vm0 = vweird.f32 %v9853_v16  ;;  %v3833_v25 = vand.u32 2147483647, %v9855_v11 }
 0x40e   : > { %v2922_v41 = vadd.f32 %v2921_v0, %v2873_v18  ;;  %v2970_v35 = vpop.f32.mrf.mxu3  ;;  %v2826_v34 = vpop.f32.mrf.mxu0  ;;  %v4214_v21 = vpack.c.bf16 %v3717_v10, %v3657_v38  ;;  %v3766_v1 = vsub.f32 1.0, %v3765_v19  ;;  %v3835_v33 = vand.u32 2147483648, %v9855_v11  ;;  %vm9886_vm14 = vmor %vm3769_vm12, %vm3770_vm0 }
 0x40f   : > { %v2875_v26 = vpop.f32.mrf.mxu1  ;;  %v2827_v23 = vadd.f32 %v2826_v34, %v9538_v47  ;;  %vm3829_vm1 = vweird.f32 %v9855_v11  ;;  %v3776_v9 = vor.u32 1.1754944e-38, %v3775_v5  ;;  %vm3834_vm3 = vcmp.eq.f32.partialorder %v3833_v25, 8.507059e+37 }
 0x410   : > { %v2971_v28 = vadd.f32 %v2970_v35, %v2922_v41  ;;  %4661 = vmatmul.bf16.gmra.mxu3 %v4214_v21  ;;  %v3767_v17 = vmul.f32 %v9853_v16, %v3766_v1  ;;  %v3836_v63 = vor.u32 1.1754944e-38, %v3835_v33  ;;  %v10542_v21 = vld [vmem:[#allocation61_spill] sm:$0xff]  ;;  %v10543_v1 = vld [vmem:[#allocation60_spill] sm:$0xff]  ;;  %v2785_v24 = vadd.f32 %v9605_v54, %v9603_v12 }
 0x411   : > { %4529 = vmatmul.bf16.gmra.mxu0 %v10535_v57  ;;  %v2876_v58 = vadd.f32 %v2875_v26, %v2827_v23  ;;  %v10544_v26 = vpack.c.bf16 %v10542_v21, %v10543_v1 }
 0x412   : > { %v6407_v40 = vpop.eup %6406  ;;  %v5791_v51 = vmul.f32 -1.442695, %v2971_v28  ;;  %4578 = vmatmul.bf16.gmra.mxu1 %v10537_v43  ;;  %4627 = vmatmul.bf16.gmra.mxu2 %v4225_v2  ;;  %v3768_v2 = vadd.f32 %v9853_v16, %v3767_v17 }
 0x413   : > { %v6409_v60 = vpop.eup %6408  ;;  %v9873_v39 = vadd.f32 1.0, %v6407_v40 }
 0x414   : > { %v3825_v47 = vmul.f32 %v6409_v60, %v9855_v11  ;;  %6410 = vpow2.f32 %v5791_v51  ;;  %vm3830_vm13 = vweird.f32 %v6409_v60  ;;  %v3772_v61 = vsel %vm9886_vm14, %v9853_v16, %v3768_v2 }
 0x415   : > { %6412 = vrcp.f32 %v9873_v39  ;;  %v2924_v32 = vpop.f32.mrf.mxu2  ;;  %vm3831_vm2 = vmor %vm3829_vm1, %vm3830_vm13  ;;  %v3777_v11 = vsel %vm9890_vm15, %v3776_v9, %v3772_v61  ;;  %v3893_v48 = vand.u32 2147483647, %v9873_v39  ;;  %vm3889_vm5 = vweird.f32 %v9873_v39 }
 0x416   : > { %v2925_v55 = vadd.f32 %v2924_v32, %v2876_v58  ;;  %v2973_v50 = vpop.f32.mrf.mxu3  ;;  %v2828_v7 = vpop.f32.mrf.mxu0  ;;  %v3826_v22 = vsub.f32 1.0, %v3825_v47 }
 0x417   : > { %v2877_v14 = vpop.f32.mrf.mxu1  ;;  %v2829_v49 = vadd.f32 %v2828_v7, %v2780_v8  ;;  %vm9935_vm8 = vcmp.eq.f32.partialorder %v3893_v48, 8.507059e+37 }
 0x418   : > { %v2974_v59 = vadd.f32 %v2973_v50, %v2925_v55  ;;  %v3827_v15 = vmul.f32 %v6409_v60, %v3826_v22 }
 0x419   : > { %v2878_v44 = vadd.f32 %v2877_v14, %v2829_v49 }
 0x41a   : > { %v6411_v13 = vpop.eup %6410  ;;  %v5795_v20 = vmul.f32 -1.442695, %v2974_v59  ;;  %v3828_v31 = vadd.f32 %v6409_v60, %v3827_v15 }
 0x41b   : > { %v9898_v42 = vpop.eup %6412  ;;  %v9900_v52 = vadd.f32 1.0, %v6411_v13 }
 0x41c   : > { %v3885_v62 = vmul.f32 %v9898_v42, %v9873_v39  ;;  %6414 = vpow2.f32 %v5795_v20  ;;  %v3832_v46 = vsel %vm3831_vm2, %v6409_v60, %v3828_v31  ;;  %vm3890_vm4 = vweird.f32 %v9898_v42 }
 0x41d   : > { %6416 = vrcp.f32 %v9900_v52  ;;  %v2926_v16 = vpop.f32.mrf.mxu2  ;;  %v3837_v19 = vsel %vm3834_vm3, %v3836_v63, %v3832_v46  ;;  %v3895_v60 = vand.u32 2147483648, %v9873_v39  ;;  %v3953_v47 = vand.u32 2147483647, %v9900_v52  ;;  %vm9931_vm7 = vmor %vm3889_vm5, %vm3890_vm4 }
 0x41e   : > { %v2927_v18 = vadd.f32 %v2926_v16, %v2878_v44  ;;  %v2975_v27 = vpop.f32.mrf.mxu3  ;;  %v2831_v0 = vpop.f32.mrf.mxu0  ;;  %v4218_v38 = vpack.c.bf16 %v3837_v19, %v3777_v11  ;;  %v3886_v10 = vsub.f32 1.0, %v3885_v62  ;;  %v3955_v12 = vand.u32 2147483648, %v9900_v52 }
 0x41f   : > { %v2832_v35 = vadd.f32 %v2831_v0, %v9593_v4  ;;  %v2880_v34 = vpop.f32.mrf.mxu1  ;;  %vm3949_vm9 = vweird.f32 %v9900_v52  ;;  %v3896_v5 = vor.u32 1.1754944e-38, %v3895_v60  ;;  %vm3954_vm11 = vcmp.eq.f32.partialorder %v3953_v47, 8.507059e+37 }
 0x420   : > { %v2976_v41 = vadd.f32 %v2975_v27, %v2927_v18  ;;  %4666 = vmatmul.bf16.gmra.mxu3 %v4218_v38  ;;  %v3887_v37 = vmul.f32 %v9898_v42, %v3886_v10  ;;  %v3956_v25 = vor.u32 1.1754944e-38, %v3955_v12 }
 0x421   : > { %4534 = vmatmul.bf16.gmra.mxu0 %v10544_v26  ;;  %v2881_v51 = vadd.f32 %v2880_v34, %v2832_v35 }
 0x422   : > { %v6415_v28 = vpop.eup %6414  ;;  %v5799_v23 = vmul.f32 -1.442695, %v2976_v41  ;;  %4583 = vmatmul.bf16.gmra.mxu1 %v10545_v36  ;;  %4632 = vmatmul.bf16.gmra.mxu2 %v4229_v6  ;;  %v3888_v6 = vadd.f32 %v9898_v42, %v3887_v37 }
 0x423   : > { %v6417_v57 = vpop.eup %6416  ;;  %v9918_v4 = vadd.f32 1.0, %v6415_v28 }
 0x424   : > { %v3945_v40 = vmul.f32 %v6417_v57, %v9900_v52  ;;  %6418 = vpow2.f32 %v5799_v23  ;;  %vm3950_vm6 = vweird.f32 %v6417_v57  ;;  %v3892_v39 = vsel %vm9931_vm7, %v9898_v42, %v3888_v6 }
 0x425   : > { %6420 = vrcp.f32 %v9918_v4  ;;  %v2929_v30 = vpop.f32.mrf.mxu2  ;;  %vm3951_vm10 = vmor %vm3949_vm9, %vm3950_vm6  ;;  %v3897_v45 = vsel %vm9935_vm8, %v3896_v5, %v3892_v39  ;;  %vm4009_vm12 = vweird.f32 %v9918_v4  ;;  %v4015_v19 = vand.u32 2147483648, %v9918_v4 }
 0x426   : > { %v2930_v43 = vadd.f32 %v2929_v30, %v2881_v51  ;;  %v2978_v3 = vpop.f32.mrf.mxu3  ;;  %v2833_v29 = vpop.f32.mrf.mxu0  ;;  %v3946_v17 = vsub.f32 1.0, %v3945_v40  ;;  %v4013_v27 = vand.u32 2147483647, %v9918_v4 }
 0x427   : > { %v2834_v58 = vadd.f32 %v2833_v29, %v2785_v24  ;;  %v2882_v14 = vpop.f32.mrf.mxu1  ;;  %v4016_v28 = vor.u32 1.1754944e-38, %v4015_v19 }
 0x428   : > { %v2979_v54 = vadd.f32 %v2978_v3, %v2930_v43  ;;  %v3947_v8 = vmul.f32 %v6417_v57, %v3946_v17  ;;  %vm4014_vm2 = vcmp.eq.f32.partialorder %v4013_v27, 8.507059e+37 }
 0x429   : > { %v2883_v59 = vadd.f32 %v2882_v14, %v2834_v58 }
 0x42a   : > { %v6419_v55 = vpop.eup %6418  ;;  %v5803_v50 = vmul.f32 -1.442695, %v2979_v54  ;;  %v3948_v7 = vadd.f32 %v6417_v57, %v3947_v8 }
 0x42b   : > { %v6421_v2 = vpop.eup %6420  ;;  %v3230_v22 = vadd.f32 1.0, %v6419_v55 }
 0x42c   : > { %v4005_v33 = vmul.f32 %v6421_v2, %v9918_v4  ;;  %6422 = vpow2.f32 %v5803_v50  ;;  %v3952_v49 = vsel %vm3951_vm10, %v6417_v57, %v3948_v7  ;;  %vm4010_vm0 = vweird.f32 %v6421_v2 }
 0x42d   : > { %6424 = vrcp.f32 %v3230_v22  ;;  %v2931_v15 = vpop.f32.mrf.mxu2  ;;  %v3957_v56 = vsel %vm3954_vm11, %v3956_v25, %v3952_v49  ;;  %v4075_v18 = vand.u32 2147483648, %v3230_v22  ;;  %v4073_v38 = vand.u32 2147483647, %v3230_v22  ;;  %vm9949_vm14 = vmor %vm4009_vm12, %vm4010_vm0 }
 0x42e   : > { %v2932_v13 = vadd.f32 %v2931_v15, %v2883_v59  ;;  %v4222_v20 = vpack.c.bf16 %v3957_v56, %v3897_v45  ;;  %v4006_v61 = vsub.f32 1.0, %v4005_v33  ;;  %v2980_v31 = vpop.f32.mrf.mxu3  ;;  %vm4069_vm15 = vweird.f32 %v3230_v22  ;;  %v4500_v26 = vpop.f32.mrf.mxu0  ;;  %v9958_v59 = vld [vmem:[%s10133_s4] ss:$0 sm:$0xff] }
 0x42f   : > { %v4076_v23 = vor.u32 1.1754944e-38, %v4075_v18  ;;  %vm4074_vm3 = vcmp.eq.f32.partialorder %v4073_v38, 8.507059e+37  ;;  %v4549_v24 = vpop.f32.mrf.mxu1  ;;  %v4501_v15 = vadd.f32 %v9958_v59, %v4500_v26 }
 0x430   : > { %v2981_v42 = vadd.f32 %v2980_v31, %v2932_v13  ;;  %4671 = vmatmul.bf16.gmra.mxu3 %v4222_v20  ;;  %v4007_v63 = vmul.f32 %v6421_v2, %v4006_v61 }
 0x431   : > { %v4550_v13 = vadd.f32 %v4549_v24, %v4501_v15 }
 0x432   : > { %v6423_v52 = vpop.eup %6422  ;;  %v5807_v9 = vmul.f32 -1.442695, %v2981_v42  ;;  %v4008_v16 = vadd.f32 %v6421_v2, %v4007_v63 }
 0x433   : > { %v6425_v62 = vpop.eup %6424  ;;  %v3234_v44 = vadd.f32 1.0, %v6423_v52 }
 0x434   : > { %v4065_v46 = vmul.f32 %v6425_v62, %v3230_v22  ;;  %6426 = vpow2.f32 %v5807_v9  ;;  %vm4070_vm13 = vweird.f32 %v6425_v62  ;;  %v4012_v35 = vsel %vm9949_vm14, %v6421_v2, %v4008_v16 }
 0x435   : > { %6428 = vrcp.f32 %v3234_v44  ;;  %vm4071_vm1 = vmor %vm4069_vm15, %vm4070_vm13  ;;  %v4017_v57 = vsel %vm4014_vm2, %v4016_v28, %v4012_v35  ;;  %v4598_v30 = vpop.f32.mrf.mxu2  ;;  %vm4129_vm5 = vweird.f32 %v3234_v44  ;;  %v4135_v60 = vand.u32 2147483648, %v3234_v44 }
 0x436   : > { %v4066_v11 = vsub.f32 1.0, %v4065_v46  ;;  %v4502_v29 = vpop.f32.mrf.mxu0  ;;  %v4133_v12 = vand.u32 2147483647, %v3234_v44  ;;  %v4599_v20 = vadd.f32 %v4598_v30, %v4550_v13 }
 0x437   : > { %v4551_v8 = vpop.f32.mrf.mxu1  ;;  %v4136_v50 = vor.u32 1.1754944e-38, %v4135_v60  ;;  %v4503_v42 = vadd.f32 %v9958_v59, %v4502_v29 }
 0x438   : > { %v4067_v0 = vmul.f32 %v6425_v62, %v4066_v11  ;;  %vm4134_vm10 = vcmp.eq.f32.partialorder %v4133_v12, 8.507059e+37 }
 0x439   : > { %v4552_v9 = vadd.f32 %v4551_v8, %v4503_v42 }
 0x43a   : > { %v6427_v41 = vpop.eup %6426  ;;  %v4068_v34 = vadd.f32 %v6425_v62, %v4067_v0 }
 0x43b   : > { %v6429_v21 = vpop.eup %6428  ;;  %v3238_v1 = vadd.f32 1.0, %v6427_v41 }
 0x43c   : > { %v4125_v36 = vmul.f32 %v6429_v21, %v3234_v44  ;;  %v4072_v37 = vsel %vm4071_vm1, %v6425_v62, %v4068_v34  ;;  %vm4130_vm4 = vweird.f32 %v6429_v21 }
 0x43d   : > { %6430 = vrcp.f32 %v3238_v1  ;;  %v4077_v4 = vsel %vm4074_vm3, %v4076_v23, %v4072_v37  ;;  %v4195_v47 = vand.u32 2147483648, %v3238_v1  ;;  %v4193_v58 = vand.u32 2147483647, %v3238_v1  ;;  %vm4131_vm7 = vmor %vm4129_vm5, %vm4130_vm4  ;;  %v4600_v55 = vpop.f32.mrf.mxu2 }
 0x43e   : > { %v4226_v40 = vpack.c.bf16 %v4077_v4, %v4017_v57  ;;  %v4126_v51 = vsub.f32 1.0, %v4125_v36  ;;  %vm4189_vm8 = vweird.f32 %v3238_v1  ;;  %v4505_v5 = vpop.f32.mrf.mxu0  ;;  %v4601_v44 = vadd.f32 %v4600_v55, %v4552_v9 }
 0x43f   : > { %v4196_v39 = vor.u32 1.1754944e-38, %v4195_v47  ;;  %vm4194_vm11 = vcmp.eq.f32.partialorder %v4193_v58, 8.507059e+37  ;;  %v4554_v25 = vpop.f32.mrf.mxu1  ;;  %v4506_v16 = vadd.f32 %v9958_v59, %v4505_v5 }
 0x440   : > { %4676 = vmatmul.bf16.gmra.mxu3 %v4226_v40  ;;  %v4127_v48 = vmul.f32 %v6429_v21, %v4126_v51 }
 0x441   : > { %v4555_v18 = vadd.f32 %v4554_v25, %v4506_v16 }
 0x442   : > { %v4128_v6 = vadd.f32 %v6429_v21, %v4127_v48 }
 0x443   : > { %v6431_v43 = vpop.eup %6430 }
 0x444   : > { %v4185_v3 = vmul.f32 %v6431_v43, %v3238_v1  ;;  %vm4190_vm6 = vweird.f32 %v6431_v43  ;;  %v4132_v32 = vsel %vm4131_vm7, %v6429_v21, %v4128_v6 }
 0x445   : > { %vm4191_vm9 = vmor %vm4189_vm8, %vm4190_vm6  ;;  %v4137_v2 = vsel %vm4134_vm10, %v4136_v50, %v4132_v32  ;;  %v4603_v33 = vpop.f32.mrf.mxu2 }
 0x446   : > { %v4186_v17 = vsub.f32 1.0, %v4185_v3  ;;  %v4507_v49 = vpop.f32.mrf.mxu0  ;;  %v4604_v27 = vadd.f32 %v4603_v33, %v4555_v18 }
 0x447   : > { %v4556_v45 = vpop.f32.mrf.mxu1  ;;  %v4508_v41 = vadd.f32 %v9958_v59, %v4507_v49 }
 0x448   : > { %v4187_v54 = vmul.f32 %v6431_v43, %v4186_v17 }
 0x449   : > { %v4557_v21 = vadd.f32 %v4556_v45, %v4508_v41 }
 0x44a   : > { %v4188_v53 = vadd.f32 %v6431_v43, %v4187_v54 }
 0x44c   : > { %v4192_v7 = vsel %vm4191_vm9, %v6431_v43, %v4188_v53 }
 0x44d   : > { %v4197_v22 = vsel %vm4194_vm11, %v4196_v39, %v4192_v7  ;;  %v4605_v56 = vpop.f32.mrf.mxu2 }
 0x44e   : > { %v4230_v14 = vpack.c.bf16 %v4197_v22, %v4137_v2  ;;  %v4510_v61 = vpop.f32.mrf.mxu0  ;;  %v4606_v1 = vadd.f32 %v4605_v56, %v4557_v21 }
 0x44f   : > { %v4559_v63 = vpop.f32.mrf.mxu1  ;;  %v4511_v28 = vadd.f32 %v9958_v59, %v4510_v61 }
 0x450   : > { %4681 = vmatmul.bf16.gmra.mxu3 %v4230_v14 }
 0x451   : > { %v4560_v57 = vadd.f32 %v4559_v63, %v4511_v28 }
 0x455   : > { %v4608_v62 = vpop.f32.mrf.mxu2 }
 0x456   : > { %v4512_v19 = vpop.f32.mrf.mxu0  ;;  %v4609_v40 = vadd.f32 %v4608_v62, %v4560_v57 }
 0x457   : > { %v4561_v0 = vpop.f32.mrf.mxu1  ;;  %v4513_v24 = vadd.f32 %v9958_v59, %v4512_v19 }
 0x459   : > { %v4562_v3 = vadd.f32 %v4561_v0, %v4513_v24 }
 0x45d   : > { %v4610_v38 = vpop.f32.mrf.mxu2 }
 0x45e   : > { %v4515_v34 = vpop.f32.mrf.mxu0  ;;  %v4611_v29 = vadd.f32 %v4610_v38, %v4562_v3 }
 0x45f   : > { %v4564_v23 = vpop.f32.mrf.mxu1  ;;  %v4516_v60 = vadd.f32 %v9958_v59, %v4515_v34 }
 0x461   : > { %v4565_v12 = vadd.f32 %v4564_v23, %v4516_v60 }
 0x463   : > { %v4647_v31 = vpop.f32.mrf.mxu3 }
 0x464   : > { %v9962_v52 = vadd.f32 %v4647_v31, %v4599_v20 }
 0x465   : > { %v4613_v37 = vpop.f32.mrf.mxu2 }
 0x466   : > { %4687 = vmax.xlane.f32.xlu0 %v9962_v52  ;;  %v4517_v4 = vpop.f32.mrf.mxu0  ;;  %v4614_v8 = vadd.f32 %v4613_v37, %v4565_v12 }
 0x467   : > { %v4566_v48 = vpop.f32.mrf.mxu1  ;;  %v4518_v53 = vadd.f32 %v9958_v59, %v4517_v4 }
 0x469   : > { %v4567_v39 = vadd.f32 %v4566_v48, %v4518_v53 }
 0x46b   : > { %v4649_v46 = vpop.f32.mrf.mxu3 }
 0x46c   : > { %v9966_v11 = vadd.f32 %v4649_v46, %v4601_v44 }
 0x46d   : > { %v4615_v43 = vpop.f32.mrf.mxu2 }
 0x46e   : > { %4689 = vmax.xlane.f32.xlu0 %v9966_v11  ;;  %v4520_v6 = vpop.f32.mrf.mxu0  ;;  %v4616_v7 = vadd.f32 %v4615_v43, %v4567_v39 }
 0x46f   : > { %v4569_v54 = vpop.f32.mrf.mxu1  ;;  %v4521_v5 = vadd.f32 %v9958_v59, %v4520_v6 }
 0x471   : > { %v4570_v49 = vadd.f32 %v4569_v54, %v4521_v5 }
 0x473   : > { %v4652_v10 = vpop.f32.mrf.mxu3 }
 0x474   : > { %v9970_v35 = vadd.f32 %v4652_v10, %v4604_v27 }
 0x475   : > { %v4618_v58 = vpop.f32.mrf.mxu2 }
 0x476   : > { %4691 = vmax.xlane.f32.xlu1 %v9970_v35  ;;  %v4522_v50 = vpop.f32.mrf.mxu0  ;;  %v4619_v15 = vadd.f32 %v4618_v58, %v4570_v49 }
 0x477   : > { %v4571_v2 = vpop.f32.mrf.mxu1  ;;  %v4523_v56 = vadd.f32 %v9958_v59, %v4522_v50 }
 0x479   : > { %v4572_v31 = vadd.f32 %v4571_v2, %v4523_v56 }
 0x47b   : > { %v4654_v26 = vpop.f32.mrf.mxu3 }
 0x47c   : > { %v9974_v36 = vadd.f32 %v4654_v26, %v4606_v1 }
 0x47d   : > { %v4620_v22 = vpop.f32.mrf.mxu2 }
 0x47e   : > { %4693 = vmax.xlane.f32.xlu1 %v9974_v36  ;;  %v4525_v33 = vpop.f32.mrf.mxu0  ;;  %v4621_v9 = vadd.f32 %v4620_v22, %v4572_v31 }
 0x47f   : > { %v4574_v13 = vpop.f32.mrf.mxu1  ;;  %v4526_v62 = vadd.f32 %v9958_v59, %v4525_v33 }
 0x481   : > { %v4575_v19 = vadd.f32 %v4574_v13, %v4526_v62 }
 0x483   : > { %v4657_v51 = vpop.f32.mrf.mxu3 }
 0x484   : > { %v9978_v30 = vadd.f32 %v4657_v51, %v4609_v40 }
 0x485   : > { %v4623_v61 = vpop.f32.mrf.mxu2 }
 0x486   : > { %4695 = vmax.xlane.f32.xlu2 %v9978_v30  ;;  %v4527_v42 = vpop.f32.mrf.mxu0  ;;  %v4624_v18 = vadd.f32 %v4623_v61, %v4575_v19 }
 0x487   : > { %v4576_v46 = vpop.f32.mrf.mxu1  ;;  %v4528_v38 = vadd.f32 %v9958_v59, %v4527_v42 }
 0x489   : > { %v4577_v41 = vadd.f32 %v4576_v46, %v4528_v38 }
 0x48b   : > { %v4659_v17 = vpop.f32.mrf.mxu3 }
 0x48c   : > { %v9982_v47 = vadd.f32 %v4659_v17, %v4611_v29 }
 0x48d   : > { %v4625_v16 = vpop.f32.mrf.mxu2 }
 0x48e   : > { %4697 = vmax.xlane.f32.xlu2 %v9982_v47  ;;  %v4530_v27 = vpop.f32.mrf.mxu0  ;;  %v4626_v1 = vadd.f32 %v4625_v16, %v4577_v41 }
 0x48f   : > { %v4579_v34 = vpop.f32.mrf.mxu1  ;;  %v4531_v28 = vadd.f32 %v9958_v59, %v4530_v27 }
 0x491   : > { %v4580_v57 = vadd.f32 %v4579_v34, %v4531_v28 }
 0x493   : > { %v4662_v32 = vpop.f32.mrf.mxu3 }
 0x494   : > { %v9986_v55 = vadd.f32 %v4662_v32, %v4614_v8 }
 0x495   : > { %v4628_v21 = vpop.f32.mrf.mxu2 }
 0x496   : > { %4699 = vmax.xlane.f32.xlu0 %v9986_v55  ;;  %v4532_v37 = vpop.f32.mrf.mxu0  ;;  %v4629_v4 = vadd.f32 %v4628_v21, %v4580_v57 }
 0x497   : > { %v4581_v40 = vpop.f32.mrf.mxu1  ;;  %v4533_v48 = vadd.f32 %v9958_v59, %v4532_v37 }
 0x499   : > { %v4582_v29 = vadd.f32 %v4581_v40, %v4533_v48 }
 0x49b   : > { %v4664_v14 = vpop.f32.mrf.mxu3 }
 0x49c   : > { %v9990_v25 = vadd.f32 %v4664_v14, %v4616_v7 }
 0x49d   : > { %v4630_v51 = vpop.f32.mrf.mxu2 }
 0x49e   : > { %4701 = vmax.xlane.f32.xlu1 %v9990_v25  ;;  %v4535_v3 = vpop.f32.mrf.mxu0  ;;  %v4631_v6 = vadd.f32 %v4630_v51, %v4582_v29 }
 0x49f   : > { %v4536_v60 = vadd.f32 %v9958_v59, %v4535_v3  ;;  %v4584_v54 = vpop.f32.mrf.mxu1 }
 0x4a1   : > { %v4585_v8 = vadd.f32 %v4584_v54, %v4536_v60 }
 0x4a3   : > { %v4667_v45 = vpop.f32.mrf.mxu3 }
 0x4a4   : > { %v9994_v20 = vadd.f32 %v4667_v45, %v4619_v15 }
 0x4a5   : > { %v4633_v58 = vpop.f32.mrf.mxu2 }
 0x4a6   : > { %4703 = vmax.xlane.f32.xlu2 %v9994_v20  ;;  %v4537_v32 = vpop.f32.mrf.mxu0  ;;  %v4634_v53 = vadd.f32 %v4633_v58, %v4585_v8 }
 0x4a7   : > { %v4538_v39 = vadd.f32 %v9958_v59, %v4537_v32  ;;  %v4586_v2 = vpop.f32.mrf.mxu1 }
 0x4a9   : > { %v4587_v14 = vadd.f32 %v4586_v2, %v4538_v39 }
 0x4ab   : > { %v4669_v63 = vpop.f32.mrf.mxu3 }
 0x4ac   : > { %v9998_v44 = vadd.f32 %v4669_v63, %v4621_v9 }
 0x4ad   : > { %v4635_v22 = vpop.f32.mrf.mxu2 }
 0x4ae   : > { %4705 = vmax.xlane.f32.xlu0 %v9998_v44  ;;  %v4636_v33 = vadd.f32 %v4635_v22, %v4587_v14 }
 0x4b3   : > { %v4672_v0 = vpop.f32.mrf.mxu3 }
 0x4b4   : > { %v10002_v10 = vadd.f32 %v4672_v0, %v4624_v18 }
 0x4b6   : > { %4707 = vmax.xlane.f32.xlu1 %v10002_v10 }
 0x4bb   : > { %v4674_v26 = vpop.f32.mrf.mxu3 }
 0x4bc   : > { %v10006_v23 = vadd.f32 %v4674_v26, %v4626_v1 }
 0x4be   : > { %4709 = vmax.xlane.f32.xlu2 %v10006_v23 }
 0x4c3   : > { %v4677_v24 = vpop.f32.mrf.mxu3 }
 0x4c4   : > { %v10010_v43 = vadd.f32 %v4677_v24, %v4629_v4 }
 0x4c6   : > { %4711 = vmax.xlane.f32.xlu0 %v10010_v43 }
 0x4cb   : > { %v4679_v17 = vpop.f32.mrf.mxu3 }
 0x4cc   : > { %v10014_v12 = vadd.f32 %v4679_v17, %v4631_v6 }
 0x4ce   : > { %4713 = vmax.xlane.f32.xlu1 %v10014_v12 }
 0x4d3   : > { %v4682_v50 = vpop.f32.mrf.mxu3 }
 0x4d4   : > { %v10018_v7 = vadd.f32 %v4682_v50, %v4634_v53 }
 0x4d6   : > { %4715 = vmax.xlane.f32.xlu2 %v10018_v7 }
 0x4d9   : > { %v4688_v5 = vpop.xlane.xlu0 %4687 }
 0x4da   : > { %v10022_v49 = vsub.f32 %v9962_v52, %v4688_v5 }
 0x4db   : > { %v4684_v15 = vpop.f32.mrf.mxu3 }
 0x4dc   : > { %v4735_v45 = vmul.f32 1.442695, %v10022_v49  ;;  %v10025_v56 = vadd.f32 %v4684_v15, %v4636_v33 }
 0x4de   : > { %6432 = vpow2.f32 %v4735_v45  ;;  %4717 = vmax.xlane.f32.xlu0 %v10025_v56 }
 0x4e1   : > { %v4690_v59 = vpop.xlane.xlu0 %4689 }
 0x4e2   : > { %v10029_v13 = vsub.f32 %v9966_v11, %v4690_v59 }
 0x4e4   : > { %v6433_v61 = vpop.eup %6432  ;;  %v4737_v31 = vmul.f32 1.442695, %v10029_v13 }
 0x4e5   : > { %4767 = vadd.xlane.f32.xlu1 %v6433_v61 }
 0x4e6   : > { %6434 = vpow2.f32 %v4737_v31 }
 0x4e9   : > { %v4692_v42 = vpop.xlane.xlu1 %4691 }
 0x4ea   : > { %v10033_v52 = vsub.f32 %v9970_v35, %v4692_v42 }
 0x4ec   : > { %v6435_v9 = vpop.eup %6434  ;;  %v4739_v63 = vmul.f32 1.442695, %v10033_v52 }
 0x4ed   : > { %4769 = vadd.xlane.f32.xlu2 %v6435_v9 }
 0x4ee   : > { %6436 = vpow2.f32 %v4739_v63 }
 0x4f1   : > { %v4694_v62 = vpop.xlane.xlu1 %4693 }
 0x4f2   : > { %v10037_v46 = vsub.f32 %v9974_v36, %v4694_v62 }
 0x4f4   : > { %v6437_v11 = vpop.eup %6436  ;;  %v4741_v16 = vmul.f32 1.442695, %v10037_v46 }
 0x4f5   : > { %4771 = vadd.xlane.f32.xlu0 %v6437_v11 }
 0x4f6   : > { %6438 = vpow2.f32 %v4741_v16 }
 0x4f9   : > { %v4696_v19 = vpop.xlane.xlu2 %4695 }
 0x4fa   : > { %v10041_v18 = vsub.f32 %v9978_v30, %v4696_v19 }
 0x4fc   : > { %v6439_v35 = vpop.eup %6438  ;;  %v4743_v27 = vmul.f32 1.442695, %v10041_v18 }
 0x4fd   : > { %4773 = vadd.xlane.f32.xlu1 %v6439_v35 }
 0x4fe   : > { %6440 = vpow2.f32 %v4743_v27 }
 0x501   : > { %v4698_v0 = vpop.xlane.xlu2 %4697 }
 0x502   : > { %v10045_v38 = vsub.f32 %v9982_v47, %v4698_v0 }
 0x504   : > { %v6441_v36 = vpop.eup %6440  ;;  %v4745_v41 = vmul.f32 1.442695, %v10045_v38 }
 0x505   : > { %4775 = vadd.xlane.f32.xlu2 %v6441_v36 }
 0x506   : > { %6442 = vpow2.f32 %v4745_v41 }
 0x509   : > { %v4700_v34 = vpop.xlane.xlu0 %4699 }
 0x50a   : > { %v10049_v21 = vsub.f32 %v9986_v55, %v4700_v34 }
 0x50c   : > { %v6443_v30 = vpop.eup %6442  ;;  %v4747_v1 = vmul.f32 1.442695, %v10049_v21 }
 0x50d   : > { %4777 = vadd.xlane.f32.xlu0 %v6443_v30 }
 0x50e   : > { %6444 = vpow2.f32 %v4747_v1 }
 0x511   : > { %v4702_v26 = vpop.xlane.xlu1 %4701 }
 0x512   : > { %v10053_v28 = vsub.f32 %v9990_v25, %v4702_v26 }
 0x514   : > { %v6445_v47 = vpop.eup %6444  ;;  %v4749_v37 = vmul.f32 1.442695, %v10053_v28 }
 0x515   : > { %4779 = vadd.xlane.f32.xlu1 %v6445_v47 }
 0x516   : > { %6446 = vpow2.f32 %v4749_v37 }
 0x519   : > { %v4704_v57 = vpop.xlane.xlu2 %4703 }
 0x51a   : > { %v10057_v4 = vsub.f32 %v9994_v20, %v4704_v57 }
 0x51c   : > { %v6447_v55 = vpop.eup %6446  ;;  %v4751_v40 = vmul.f32 1.442695, %v10057_v4 }
 0x51d   : > { %4781 = vadd.xlane.f32.xlu2 %v6447_v55 }
 0x51e   : > { %6448 = vpow2.f32 %v4751_v40 }
 0x521   : > { %v4706_v51 = vpop.xlane.xlu0 %4705 }
 0x522   : > { %v10061_v24 = vsub.f32 %v9998_v44, %v4706_v51 }
 0x524   : > { %v6449_v25 = vpop.eup %6448  ;;  %v4753_v48 = vmul.f32 1.442695, %v10061_v24 }
 0x525   : > { %4783 = vadd.xlane.f32.xlu0 %v6449_v25 }
 0x526   : > { %6450 = vpow2.f32 %v4753_v48 }
 0x529   : > { %v4708_v3 = vpop.xlane.xlu1 %4707 }
 0x52a   : > { %v10065_v29 = vsub.f32 %v10002_v10, %v4708_v3 }
 0x52c   : > { %v6451_v20 = vpop.eup %6450  ;;  %v4755_v6 = vmul.f32 1.442695, %v10065_v29 }
 0x52d   : > { %4785 = vadd.xlane.f32.xlu1 %v6451_v20 }
 0x52e   : > { %6452 = vpow2.f32 %v4755_v6 }
 0x531   : > { %v4710_v17 = vpop.xlane.xlu2 %4709 }
 0x532   : > { %v10069_v60 = vsub.f32 %v10006_v23, %v4710_v17 }
 0x534   : > { %v6453_v44 = vpop.eup %6452  ;;  %v4757_v54 = vmul.f32 1.442695, %v10069_v60 }
 0x535   : > { %4787 = vadd.xlane.f32.xlu2 %v6453_v44 }
 0x536   : > { %6454 = vpow2.f32 %v4757_v54 }
 0x539   : > { %v4712_v58 = vpop.xlane.xlu0 %4711 }
 0x53a   : > { %v10073_v8 = vsub.f32 %v10010_v43, %v4712_v58 }
 0x53c   : > { %v6455_v10 = vpop.eup %6454  ;;  %v4759_v32 = vmul.f32 1.442695, %v10073_v8 }
 0x53d   : > { %4789 = vadd.xlane.f32.xlu0 %v6455_v10 }
 0x53e   : > { %6456 = vpow2.f32 %v4759_v32 }
 0x541   : > { %v4714_v53 = vpop.xlane.xlu1 %4713 }
 0x542   : > { %v10077_v50 = vsub.f32 %v10014_v12, %v4714_v53 }
 0x544   : > { %v6457_v23 = vpop.eup %6456  ;;  %v4761_v39 = vmul.f32 1.442695, %v10077_v50 }
 0x545   : > { %4791 = vadd.xlane.f32.xlu1 %v6457_v23 }
 0x546   : > { %6458 = vpow2.f32 %v4761_v39 }
 0x549   : > { %v4716_v2 = vpop.xlane.xlu2 %4715 }
 0x54a   : > { %v10081_v22 = vsub.f32 %v10018_v7, %v4716_v2 }
 0x54c   : > { %v6459_v43 = vpop.eup %6458  ;;  %v4763_v14 = vmul.f32 1.442695, %v10081_v22 }
 0x54d   : > { %4793 = vadd.xlane.f32.xlu2 %v6459_v43 }
 0x54e   : > { %6460 = vpow2.f32 %v4763_v14 }
 0x551   : > { %v4718_v5 = vpop.xlane.xlu0 %4717 }
 0x552   : > { %v10085_v33 = vsub.f32 %v10025_v56, %v4718_v5 }
 0x554   : > { %v6461_v12 = vpop.eup %6460  ;;  %v4765_v15 = vmul.f32 1.442695, %v10085_v33 }
 0x555   : > { %4795 = vadd.xlane.f32.xlu0 %v6461_v12 }
 0x556   : > { %6462 = vpow2.f32 %v4765_v15 }
 0x558   : > { %v4768_v45 = vpop.xlane.xlu1 %4767 }
 0x559   : > { %6464 = vlog2.f32 %v4768_v45 }
 0x55c   : > { %v6463_v59 = vpop.eup %6462 }
 0x55d   : > { %4797 = vadd.xlane.f32.xlu1 %v6463_v59 }
 0x55f   : > { %v6465_v7 = vpop.eup %6464 }
 0x560   : > { %v4800_v61 = vmul.f32 0.6931472, %v6465_v7  ;;  %v4770_v31 = vpop.xlane.xlu2 %4769 }
 0x561   : > { %6466 = vlog2.f32 %v4770_v31 }
 0x562   : > { %v4831_v56 = vsub.f32 %v10022_v49, %v4800_v61 }
 0x564   : > { %4847 = vst [vmem:[%s10092_s17] sm:$0xff] %v4831_v56 }
 0x567   : > { %v6467_v42 = vpop.eup %6466 }
 0x568   : > { %v4802_v9 = vmul.f32 0.6931472, %v6467_v42  ;;  %v4772_v63 = vpop.xlane.xlu0 %4771 }
 0x569   : > { %6468 = vlog2.f32 %v4772_v63 }
 0x56a   : > { %v4832_v62 = vsub.f32 %v10029_v13, %v4802_v9 }
 0x56c   : > { %4848 = vst [vmem:[%s10092_s17 + $0x8] sm:$0xff] %v4832_v62 }
 0x56f   : > { %v6469_v11 = vpop.eup %6468 }
 0x570   : > { %v4804_v16 = vmul.f32 0.6931472, %v6469_v11  ;;  %v4774_v19 = vpop.xlane.xlu1 %4773 }
 0x571   : > { %6470 = vlog2.f32 %v4774_v19 }
 0x572   : > { %v4833_v35 = vsub.f32 %v10033_v52, %v4804_v16 }
 0x574   : > { %4849 = vst [vmem:[%s10092_s17 + $0x10] sm:$0xff] %v4833_v35 }
 0x577   : > { %v6471_v27 = vpop.eup %6470 }
 0x578   : > { %v4806_v0 = vmul.f32 0.6931472, %v6471_v27  ;;  %v4776_v49 = vpop.xlane.xlu2 %4775 }
 0x579   : > { %6472 = vlog2.f32 %v4776_v49 }
 0x57a   : > { %v4834_v36 = vsub.f32 %v10037_v46, %v4806_v0 }
 0x57c   : > { %4850 = vst [vmem:[%s10092_s17 + $0x18] sm:$0xff] %v4834_v36 }
 0x57f   : > { %v6473_v41 = vpop.eup %6472 }
 0x580   : > { %v4808_v34 = vmul.f32 0.6931472, %v6473_v41  ;;  %v4778_v13 = vpop.xlane.xlu0 %4777 }
 0x581   : > { %6474 = vlog2.f32 %v4778_v13 }
 0x582   : > { %v4835_v30 = vsub.f32 %v10041_v18, %v4808_v34 }
 0x584   : > { %4851 = vst [vmem:[%s10092_s17 + $0x20] sm:$0xff] %v4835_v30 }
 0x587   : > { %v6475_v1 = vpop.eup %6474 }
 0x588   : > { %v4810_v26 = vmul.f32 0.6931472, %v6475_v1  ;;  %v4780_v52 = vpop.xlane.xlu1 %4779 }
 0x589   : > { %6476 = vlog2.f32 %v4780_v52 }
 0x58a   : > { %v4836_v47 = vsub.f32 %v10045_v38, %v4810_v26 }
 0x58c   : > { %4852 = vst [vmem:[%s10092_s17 + $0x28] sm:$0xff] %v4836_v47 }
 0x58f   : > { %v6477_v37 = vpop.eup %6476 }
 0x590   : > { %v4812_v57 = vmul.f32 0.6931472, %v6477_v37  ;;  %v4782_v46 = vpop.xlane.xlu2 %4781 }
 0x591   : > { %6478 = vlog2.f32 %v4782_v46 }
 0x592   : > { %v4837_v55 = vsub.f32 %v10049_v21, %v4812_v57 }
 0x594   : > { %4853 = vst [vmem:[%s10092_s17 + $0x30] sm:$0xff] %v4837_v55 }
 0x597   : > { %v6479_v40 = vpop.eup %6478 }
 0x598   : > { %v4814_v51 = vmul.f32 0.6931472, %v6479_v40  ;;  %v4784_v18 = vpop.xlane.xlu0 %4783 }
 0x599   : > { %6480 = vlog2.f32 %v4784_v18 }
 0x59a   : > { %v4838_v25 = vsub.f32 %v10053_v28, %v4814_v51 }
 0x59c   : > { %4854 = vst [vmem:[%s10092_s17 + $0x38] sm:$0xff] %v4838_v25 }
 0x59f   : > { %v6481_v48 = vpop.eup %6480 }
 0x5a0   : > { %v4816_v3 = vmul.f32 0.6931472, %v6481_v48  ;;  %v4786_v38 = vpop.xlane.xlu1 %4785 }
 0x5a1   : > { %6482 = vlog2.f32 %v4786_v38 }
 0x5a2   : > { %v4839_v20 = vsub.f32 %v10057_v4, %v4816_v3 }
 0x5a4   : > { %4855 = vst [vmem:[%s10092_s17 + $0x40] sm:$0xff] %v4839_v20 }
 0x5a7   : > { %v6483_v6 = vpop.eup %6482 }
 0x5a8   : > { %v4818_v17 = vmul.f32 0.6931472, %v6483_v6  ;;  %v4788_v21 = vpop.xlane.xlu2 %4787 }
 0x5a9   : > { %6484 = vlog2.f32 %v4788_v21 }
 0x5aa   : > { %v4840_v44 = vsub.f32 %v10061_v24, %v4818_v17 }
 0x5ac   : > { %4856 = vst [vmem:[%s10092_s17 + $0x48] sm:$0xff] %v4840_v44 }
 0x5af   : > { %v6485_v54 = vpop.eup %6484 }
 0x5b0   : > { %v4820_v58 = vmul.f32 0.6931472, %v6485_v54  ;;  %v4790_v28 = vpop.xlane.xlu0 %4789 }
 0x5b1   : > { %6486 = vlog2.f32 %v4790_v28 }
 0x5b2   : > { %v4841_v10 = vsub.f32 %v10065_v29, %v4820_v58 }
 0x5b4   : > { %4857 = vst [vmem:[%s10092_s17 + $0x50] sm:$0xff] %v4841_v10 }
 0x5b7   : > { %v6487_v32 = vpop.eup %6486 }
 0x5b8   : > { %v4822_v53 = vmul.f32 0.6931472, %v6487_v32  ;;  %v4792_v4 = vpop.xlane.xlu1 %4791 }
 0x5b9   : > { %6488 = vlog2.f32 %v4792_v4 }
 0x5ba   : > { %v4842_v23 = vsub.f32 %v10069_v60, %v4822_v53 }
 0x5bc   : > { %4858 = vst [vmem:[%s10092_s17 + $0x58] sm:$0xff] %v4842_v23 }
 0x5bf   : > { %v6489_v39 = vpop.eup %6488 }
 0x5c0   : > { %v4824_v2 = vmul.f32 0.6931472, %v6489_v39  ;;  %v4794_v24 = vpop.xlane.xlu2 %4793 }
 0x5c1   : > { %6490 = vlog2.f32 %v4794_v24 }
 0x5c2   : > { %v4843_v43 = vsub.f32 %v10073_v8, %v4824_v2 }
 0x5c4   : > { %4859 = vst [vmem:[%s10092_s17 + $0x60] sm:$0xff] %v4843_v43 }
 0x5c7   : > { %v6491_v14 = vpop.eup %6490 }
 0x5c8   : > { %v4826_v29 = vmul.f32 0.6931472, %v6491_v14  ;;  %v4796_v5 = vpop.xlane.xlu0 %4795 }
 0x5c9   : > { %6492 = vlog2.f32 %v4796_v5 }
 0x5ca   : > { %v4844_v12 = vsub.f32 %v10077_v50, %v4826_v29 }
 0x5cc   : > { %4860 = vst [vmem:[%s10092_s17 + $0x68] sm:$0xff] %v4844_v12 }
 0x5cf   : > { %v6493_v15 = vpop.eup %6492 }
 0x5d0   : > { %v4828_v45 = vmul.f32 0.6931472, %v6493_v15  ;;  %v4798_v60 = vpop.xlane.xlu1 %4797 }
 0x5d1   : > { %6494 = vlog2.f32 %v4798_v60 }
 0x5d2   : > { %v4845_v59 = vsub.f32 %v10081_v22, %v4828_v45 }
 0x5d4   : > { %4861 = vst [vmem:[%s10092_s17 + $0x70] sm:$0xff] %v4845_v59 }
 0x5d7   : > { %v6495_v7 = vpop.eup %6494 }
 0x5d8   : > { %v4830_v61 = vmul.f32 0.6931472, %v6495_v7 }
 0x5da   : > { %v4846_v8 = vsub.f32 %v10085_v33, %v4830_v61 }
 0x5dc   : > { %4862 = vst [vmem:[%s10092_s17 + $0x78] sm:$0xff] %v4846_v8 }
 0x5dd PF: > { %s15_s18 = sadd.s32 1, %s6504_s18  }
 0x5de   : > { %p12_p4 = scmp.ge.s32.totalorder %s15_s18, 6  }
 0x5e0   :  { %14 = sbr.rel (!%p12_p4) target bundleno = 1 (0x1), region = 70 }

</bundles_post_ra>
